<compile_context>
chip_gen: v6e
topology: v6e:2x2x1
jax: 0.10.0
libtpu: 0.0.40
codegen_flags: <defaults>
</compile_context>

<pallas_src>
import jax
import jax.numpy as jnp
from jax.experimental import pallas as pl
from jax.experimental.pallas import tpu as pltpu

# Scoped-VMEM budget: must fit v7x's 64 MiB physical VMEM per TensorCore (v5e/v6e
# have 128 MiB, so v7x is the binding constraint).  At real sizes (TB=8, T=197,
# D=768): ~20 MiB double-buffered activations + ~10 MiB single-buffered weights
# + transient matmul intermediates -> 48 MiB leaves headroom on every generation.
_VMEM_LIMIT_BYTES = 48 * 1024 * 1024

_HEAD_WIDTH = 128   # lane-dense packing for the three (B, 1) classifier heads


def _resident_spec(shape):
    """Whole-array, grid-invariant block; single-buffered (stays resident in VMEM)."""
    zeros = (0,) * len(shape)
    index_map = lambda i: zeros
    try:
        return pl.BlockSpec(shape, index_map, pipeline_mode=pl.Buffered(1))
    except (TypeError, AttributeError):   # older jax without pipeline_mode / Buffered
        return pl.BlockSpec(shape, index_map)


def _pick_row_block(batch):
    # 8 rows/step amortizes per-step overhead and keeps (rows, ...) output stores
    # full-sublane; block == full batch keeps the BlockSpec legal otherwise.
    return 8 if batch % 8 == 0 else batch


# -----------------------------------------------------------------------------
# The fused kernel
# -----------------------------------------------------------------------------
def _multiview_kernel(
        # activations (blocked over batch)
        img_ref, txt_ref,
        # TokenAttention: [stream | mm] fused first linear, biases, score heads
        aw1_img_ref, ab1_img_ref, aw1_txt_ref, ab1_txt_ref, aw2_ref, ab2_ref,
        # gate MLPs (rows: image_gate_mae, text_gate, mm_gate, mm_gate_1)
        gw1_img_ref, gw1_txt_ref, gw1_mm_ref, gb1_ref, gw2s_ref, gb2s_ref,
        # trim -> classifier (rows: image, text, mix/aux)
        tw1_ref, tb1_ref, cw2_ref, cb2_ref,
        # mapping MLPs (rows: Img_mu, Img_sigma, T_mu, T_sigma, CC_mu, CC_sigma)
        mw1_ref, mb1_ref, mw2_ref, mb2_ref,
        irr_ref,
        # outputs
        feat_ref, heads_ref,
        # VMEM scratch
        img_atn_ref, txt_atn_ref, mm_atn_ref, img_tok0_ref, txt_tok0_ref):
    rows = img_ref.shape[0]
    d = irr_ref.shape[1]

    def silu(h):
        return h * jax.nn.sigmoid(h)      # f32 transcendental (EUP); works on all gens

    aw2 = aw2_ref[...]            # (3, D)  score-head rows: image, text, mm
    ab2 = ab2_ref[...]            # (3, 1)
    ab1_img = ab1_img_ref[...]    # (1, 2D)
    ab1_txt = ab1_txt_ref[...]

    # ---- TokenAttention pooling, one batch row at a time (2-D MXU matmuls) ------
    for r in range(rows):
        x_i = img_ref[r]                       # (Ti, D) f32
        x_t = txt_ref[r]                       # (Tt, D) f32

        def pooled(x, w1_ref, b1, w2_stream, b2_stream):
            # One (T, D) @ (D, 2D) matmul scores the per-stream head AND the shared
            # mm head (RHS concat => the LHS streams through the MXU once).
            h = jnp.dot(x.astype(jnp.bfloat16), w1_ref[...],
                        preferred_element_type=jnp.float32) + b1
            h = silu(h)
            # TODO(synk): if vld/vst saturate on v6e, keep h in bf16 between SiLU
            # and the reduce (accumulate the reduce in f32).
            # Linear(D, 1) score heads as lane reductions (no N=1 matmuls).
            s_s = jnp.sum(h[:, :d] * w2_stream, axis=-1, keepdims=True) + b2_stream
            s_m = jnp.sum(h[:, d:] * aw2[2:3, :], axis=-1, keepdims=True) + ab2[2:3, :]
            # scores^T @ x as a VPU multiply + token (sublane) reduce (no M=1 matmul).
            return (jnp.sum(s_s * x, axis=0, keepdims=True),
                    jnp.sum(s_m * x, axis=0, keepdims=True))

        pool_i, pool_mi = pooled(x_i, aw1_img_ref, ab1_img, aw2[0:1, :], ab2[0:1, :])
        pool_t, pool_mt = pooled(x_t, aw1_txt_ref, ab1_txt, aw2[1:2, :], ab2[1:2, :])

        img_atn_ref[r:r + 1, :] = pool_i
        txt_atn_ref[r:r + 1, :] = pool_t
        # No token softmax -> pooling over cat(img, txt) = sum of per-stream pools.
        mm_atn_ref[r:r + 1, :] = pool_mi + pool_mt
        img_tok0_ref[r:r + 1, :] = x_i[0:1, :]
        txt_tok0_ref[r:r + 1, :] = x_t[0:1, :]

    img_atn = img_atn_ref[...]        # (rows, D)
    txt_atn = txt_atn_ref[...]
    mm_atn = mm_atn_ref[...]
    img_tok0 = img_tok0_ref[...]
    txt_tok0 = txt_tok0_ref[...]

    # ---- gates: sum over experts of Linear(D,D)->SiLU->Linear(D,E) --------------
    gb1 = gb1_ref[...]
    gw2s = gw2s_ref[...]
    gb2s = gb2s_ref[...]

    def gate_sum(h_pre, i):
        #   sum_e gate[:, e] == silu(x @ W1 + b1) @ W2.sum(axis=1) + b2.sum()
        h = silu(h_pre + gb1[i:i + 1, :])
        return jnp.sum(h * gw2s[i:i + 1, :], axis=-1, keepdims=True) + gb2s[i:i + 1, :]

    h_gi = jnp.dot(img_atn.astype(jnp.bfloat16), gw1_img_ref[...],
                   preferred_element_type=jnp.float32)
    h_gt = jnp.dot(txt_atn.astype(jnp.bfloat16), gw1_txt_ref[...],
                   preferred_element_type=jnp.float32)
    # mm_gate and mm_gate_1 share their LHS -> one (D, 2D) matmul, split the halves.
    h_gm = jnp.dot(mm_atn.astype(jnp.bfloat16), gw1_mm_ref[...],
                   preferred_element_type=jnp.float32)

    g_img = gate_sum(h_gi, 0)
    g_txt = gate_sum(h_gt, 1)
    g_mm = gate_sum(h_gm[:, :d], 2)
    g_mm1 = gate_sum(h_gm[:, d:], 3)

    # TODO(synk): `Block` experts / positional embeddings are undefined in the source;
    # with identity experts and only token 0 kept, (sum_i x*g_i)[:, 0] == x[:, 0]*sum_i g_i.
    shared_image = img_tok0 * g_img
    shared_text = txt_tok0 * g_txt
    shared_mm = img_tok0 * g_mm        # token 0 of cat(img, txt) is image token 0
    shared_mm_cc = img_tok0 * g_mm1

    # ---- trim -> classifier heads ------------------------------------------------
    tb1 = tb1_ref[...]
    cw2 = cw2_ref[...]
    cb2 = cb2_ref[...]

    def trim_cls(x, i):
        # Linear(D, trim) -> SiLU -> Linear(trim, 1) (classifier as a lane reduce).
        h = jnp.dot(x.astype(jnp.bfloat16), tw1_ref[i],
                    preferred_element_type=jnp.float32) + tb1[i:i + 1, :]
        h = silu(h)
        return jnp.sum(h * cw2[i:i + 1, :], axis=-1, keepdims=True) + cb2[i:i + 1, :]

    image_only = trim_cls(shared_image, 0)    # (rows, 1)
    text_only = trim_cls(shared_text, 1)
    aux = trim_cls(shared_mm_cc, 2)

    img_sig = jax.nn.sigmoid(image_only)
    txt_sig = jax.nn.sigmoid(text_only)
    aux_atn = 1.0 - jax.nn.sigmoid(aux)

    # ---- mapping MLPs: Linear(1,D)->SiLU->Linear(D,1) == outer product + lane reduce
    mw1 = mw1_ref[...]
    mb1 = mb1_ref[...]
    mw2 = mw2_ref[...]
    mb2 = mb2_ref[...]

    def mapping(x, i):
        h = silu(x * mw1[i:i + 1, :] + mb1[i:i + 1, :])            # (rows, D), pure VPU
        return jnp.sum(h * mw2[i:i + 1, :], axis=-1, keepdims=True) + mb2[i:i + 1, :]

    is_mu = mapping(img_sig, 0)
    is_sigma = mapping(img_sig, 1)
    t_mu = mapping(txt_sig, 2)
    t_sigma = mapping(txt_sig, 3)
    cc_mu = mapping(aux_atn, 4)
    cc_sigma = mapping(aux_atn, 5)

    inv_d = 1.0 / d

    def adain(x, mu, sigma):
        # AdaIN as written in the reference: stats over the feature dim of (rows, D),
        # eps added to the sum of squares before dividing by D.
        x_mean = jnp.sum(x, axis=-1, keepdims=True) * inv_d
        xc = x - x_mean
        var = (jnp.sum(xc * xc, axis=-1, keepdims=True) + 2.3e-08) * inv_d
        return sigma * (xc * jax.lax.rsqrt(var) + mu)              # rsqrt -> EUP slot

    # Irrelevant token: every row equals the (1, D) parameter, so normalize it once
    # and only apply the per-row (cc_mu, cc_sigma) scale/shift.
    irr = irr_ref[...]
    irr_mean = jnp.sum(irr, axis=-1, keepdims=True) * inv_d
    irr_c = irr - irr_mean
    irr_var = (jnp.sum(irr_c * irr_c, axis=-1, keepdims=True) + 2.3e-08) * inv_d
    irr_norm = irr_c * jax.lax.rsqrt(irr_var)                      # (1, D)
    irr_tok = cc_sigma * (irr_norm + cc_mu)                        # (rows, D)

    # ---- outputs: one lane-dense (rows, 4D) feature slab + one (rows, 128) head slab
    feat_ref[...] = jnp.concatenate(
        [adain(shared_image, is_mu, is_sigma),
         adain(shared_text, t_mu, t_sigma),
         shared_mm,
         irr_tok], axis=-1)

    lane = jax.lax.broadcasted_iota(jnp.int32, (rows, _HEAD_WIDTH), 1)
    heads_ref[...] = (jnp.where(lane == 0, image_only, 0.0)
                      + jnp.where(lane == 1, text_only, 0.0)
                      + jnp.where(lane == 2, aux, 0.0))


# -----------------------------------------------------------------------------
# Parameter initialization (deterministic, synthetic)
# -----------------------------------------------------------------------------
def _init_mlp2(key, din, dh, dout, scale=0.02):
    k1, k2, k3, k4 = jax.random.split(key, 4)
    return dict(
        w1=scale * jax.random.normal(k1, (din, dh), jnp.float32),
        b1=scale * jax.random.normal(k2, (1, dh), jnp.float32),
        w2=scale * jax.random.normal(k3, (dh, dout), jnp.float32),
        b2=scale * jax.random.normal(k4, (1, dout), jnp.float32),
    )


def init_params(key, d, trim_dim, out_dim, num_expert):
    keys = jax.random.split(key, 20)
    p = {}
    # TokenAttention: Linear(d, d) -> SiLU -> Linear(d, 1)
    p["image_attention"] = _init_mlp2(keys[0], d, d, 1)
    p["mm_attention"] = _init_mlp2(keys[1], d, d, 1)
    # TODO(synk): self.text_attention is used in forward but never defined in __init__;
    # a TokenAttention parameter set is synthesized here.
    p["text_attention"] = _init_mlp2(keys[2], d, d, 1)

    p["image_gate_mae"] = _init_mlp2(keys[3], d, d, num_expert)
    p["text_gate"] = _init_mlp2(keys[4], d, d, num_expert)
    p["mm_gate"] = _init_mlp2(keys[5], d, d, num_expert)
    p["mm_gate_1"] = _init_mlp2(keys[6], d, d, num_expert)

    # trim (Linear(d,trim)->SiLU) fused with its classifier (Linear(trim,out_dim))
    p["image_trim_classifier"] = _init_mlp2(keys[7], d, trim_dim, out_dim)
    p["text_trim_classifier"] = _init_mlp2(keys[8], d, trim_dim, out_dim)
    # TODO(synk): forward uses self.aux_trim / self.aux_classifier which are undefined;
    # mapped to the defined mix_trim / mix_classifier.
    p["mix_trim_classifier"] = _init_mlp2(keys[9], d, trim_dim, out_dim)

    # TODO(synk): forward uses mapping_IS_MLP_* (undefined); mapped to mapping_Img_MLP_*.
    p["mapping_Img_MLP_mu"] = _init_mlp2(keys[10], 1, d, 1)
    p["mapping_Img_MLP_sigma"] = _init_mlp2(keys[11], 1, d, 1)
    p["mapping_T_MLP_mu"] = _init_mlp2(keys[12], 1, d, 1)
    p["mapping_T_MLP_sigma"] = _init_mlp2(keys[13], 1, d, 1)
    p["mapping_CC_MLP_mu"] = _init_mlp2(keys[14], 1, d, 1)
    p["mapping_CC_MLP_sigma"] = _init_mlp2(keys[15], 1, d, 1)

    p["irrelevant_tensor"] = jnp.ones((1, d), jnp.float32)
    return p


# -----------------------------------------------------------------------------
# MULTIVIEW forward
# -----------------------------------------------------------------------------
@jax.jit
def multiview_forward(image_feature, text_feature, params):
    # TODO(synk): the fused tail assumes out_dim == 1 (the reference's mapping MLPs
    # take a 1-wide input, so out_dim must be 1 there anyway).
    B, Ti, D = image_feature.shape
    _, Tt, _ = text_feature.shape
    rows = _pick_row_block(B)

    # --- weight packing for the fused kernel (tiny jnp ops, done under jit) -----
    ia, ta, ma = (params["image_attention"], params["text_attention"],
                  params["mm_attention"])
    attn_w1_img = jnp.concatenate([ia["w1"], ma["w1"]], axis=1).astype(jnp.bfloat16)
    attn_w1_txt = jnp.concatenate([ta["w1"], ma["w1"]], axis=1).astype(jnp.bfloat16)
    attn_b1_img = jnp.concatenate([ia["b1"], ma["b1"]], axis=1)
    attn_b1_txt = jnp.concatenate([ta["b1"], ma["b1"]], axis=1)
    attn_w2 = jnp.stack([ia["w2"][:, 0], ta["w2"][:, 0], ma["w2"][:, 0]])   # (3, D)
    attn_b2 = jnp.stack([ia["b2"][0], ta["b2"][0], ma["b2"][0]])            # (3, 1)

    gate_names = ["image_gate_mae", "text_gate", "mm_gate", "mm_gate_1"]
    gate_w1_img = params["image_gate_mae"]["w1"].astype(jnp.bfloat16)
    gate_w1_txt = params["text_gate"]["w1"].astype(jnp.bfloat16)
    gate_w1_mm = jnp.concatenate(
        [params["mm_gate"]["w1"], params["mm_gate_1"]["w1"]], axis=1).astype(jnp.bfloat16)
    gate_b1 = jnp.stack([params[n]["b1"][0] for n in gate_names])           # (4, D)
    gate_w2s = jnp.stack([params[n]["w2"].sum(axis=1) for n in gate_names])  # (4, D)
    gate_b2s = jnp.stack([params[n]["b2"].sum() for n in gate_names])[:, None]

    trim_names = ["image_trim_classifier", "text_trim_classifier", "mix_trim_classifier"]
    trim_w1 = jnp.stack([params[n]["w1"] for n in trim_names]).astype(jnp.bfloat16)
    trim_b1 = jnp.stack([params[n]["b1"][0] for n in trim_names])
    cls_w2 = jnp.stack([params[n]["w2"][:, 0] for n in trim_names])
    cls_b2 = jnp.stack([params[n]["b2"][0] for n in trim_names])

    map_names = ["mapping_Img_MLP_mu", "mapping_Img_MLP_sigma",
                 "mapping_T_MLP_mu", "mapping_T_MLP_sigma",
                 "mapping_CC_MLP_mu", "mapping_CC_MLP_sigma"]
    map_w1 = jnp.stack([params[n]["w1"][0] for n in map_names])
    map_b1 = jnp.stack([params[n]["b1"][0] for n in map_names])
    map_w2 = jnp.stack([params[n]["w2"][:, 0] for n in map_names])
    map_b2 = jnp.stack([params[n]["b2"][0] for n in map_names])

    weight_args = (attn_w1_img, attn_b1_img, attn_w1_txt, attn_b1_txt, attn_w2, attn_b2,
                   gate_w1_img, gate_w1_txt, gate_w1_mm, gate_b1, gate_w2s, gate_b2s,
                   trim_w1, trim_b1, cls_w2, cls_b2,
                   map_w1, map_b1, map_w2, map_b2,
                   params["irrelevant_tensor"])

    feat, heads = pl.pallas_call(
        _multiview_kernel,
        grid=(B // rows,),
        in_specs=([pl.BlockSpec((rows, Ti, D), lambda i: (i, 0, 0)),
                   pl.BlockSpec((rows, Tt, D), lambda i: (i, 0, 0))]
                  + [_resident_spec(w.shape) for w in weight_args]),
        out_specs=(pl.BlockSpec((rows, 4 * D), lambda i: (i, 0)),
                   pl.BlockSpec((rows, _HEAD_WIDTH), lambda i: (i, 0))),
        out_shape=(jax.ShapeDtypeStruct((B, 4 * D), jnp.float32),
                   jax.ShapeDtypeStruct((B, _HEAD_WIDTH), jnp.float32)),
        scratch_shapes=[pltpu.VMEM((rows, D), jnp.float32) for _ in range(5)],
        compiler_params=pltpu.CompilerParams(
            dimension_semantics=("parallel",),
            vmem_limit_bytes=_VMEM_LIMIT_BYTES),
    )(image_feature, text_feature, *weight_args)

    # TODO(synk): the reference forward() has no return statement (truncated);
    # returning the final stacked feature and the three classifier heads.
    concat_feature_main_biased = feat.reshape(B, 4, D)   # free reshape of the packed slab
    image_only_output = heads[:, 0:1]
    text_only_output = heads[:, 1:2]
    aux_output = heads[:, 2:3]
    return (concat_feature_main_biased, image_only_output,
            text_only_output, aux_output)


# -----------------------------------------------------------------------------
# Demo
# -----------------------------------------------------------------------------
if __name__ == "__main__":
    # Small stand-ins for the module's real sizes (batch=64, token_len=197, dim=768).
    B, T, D = 16, 8, 32
    TRIM, OUT_DIM, NUM_EXPERT = 16, 1, 2

    key = jax.random.PRNGKey(0)
    k_img, k_txt, k_par = jax.random.split(key, 3)
    image_feature = jax.random.normal(k_img, (B, T, D), jnp.float32)
    text_feature = jax.random.normal(k_txt, (B, T, D), jnp.float32)
    params = init_params(k_par, D, TRIM, OUT_DIM, NUM_EXPERT)

    outs = multiview_forward(image_feature, text_feature, params)
    jax.block_until_ready(outs)

    stacked, img_out, txt_out, aux_out = outs
    assert stacked.shape == (B, 4, D)
    assert img_out.shape == (B, OUT_DIM)
    assert txt_out.shape == (B, OUT_DIM)
    assert aux_out.shape == (B, OUT_DIM)
    assert all(bool(jnp.all(jnp.isfinite(o)))
               for o in (stacked, img_out, txt_out, aux_out))
    print("KERNEL_OK")
</pallas_src>

<mosaic_0001>
module attributes {stable_mosaic.version = 11 : i64} {
  func.func @_multiview_kernel(%arg0: i32, %arg1: memref<8x8x32xf32, #tpu.memory_space<vmem>>, %arg2: memref<8x8x32xf32, #tpu.memory_space<vmem>>, %arg3: memref<32x64xbf16, #tpu.memory_space<vmem>>, %arg4: memref<1x64xf32, #tpu.memory_space<vmem>>, %arg5: memref<32x64xbf16, #tpu.memory_space<vmem>>, %arg6: memref<1x64xf32, #tpu.memory_space<vmem>>, %arg7: memref<3x32xf32, #tpu.memory_space<vmem>>, %arg8: memref<3x1xf32, #tpu.memory_space<vmem>>, %arg9: memref<32x32xbf16, #tpu.memory_space<vmem>>, %arg10: memref<32x32xbf16, #tpu.memory_space<vmem>>, %arg11: memref<32x64xbf16, #tpu.memory_space<vmem>>, %arg12: memref<4x32xf32, #tpu.memory_space<vmem>>, %arg13: memref<4x32xf32, #tpu.memory_space<vmem>>, %arg14: memref<4x1xf32, #tpu.memory_space<vmem>>, %arg15: memref<3x32x16xbf16, #tpu.memory_space<vmem>>, %arg16: memref<3x16xf32, #tpu.memory_space<vmem>>, %arg17: memref<3x16xf32, #tpu.memory_space<vmem>>, %arg18: memref<3x1xf32, #tpu.memory_space<vmem>>, %arg19: memref<6x32xf32, #tpu.memory_space<vmem>>, %arg20: memref<6x32xf32, #tpu.memory_space<vmem>>, %arg21: memref<6x32xf32, #tpu.memory_space<vmem>>, %arg22: memref<6x1xf32, #tpu.memory_space<vmem>>, %arg23: memref<1x32xf32, #tpu.memory_space<vmem>>, %arg24: memref<8x128xf32, #tpu.memory_space<vmem>>, %arg25: memref<8x128xf32, #tpu.memory_space<vmem>>, %arg26: memref<8x32xf32, #tpu.memory_space<vmem>>, %arg27: memref<8x32xf32, #tpu.memory_space<vmem>>, %arg28: memref<8x32xf32, #tpu.memory_space<vmem>>, %arg29: memref<8x32xf32, #tpu.memory_space<vmem>>, %arg30: memref<8x32xf32, #tpu.memory_space<vmem>>) attributes {dimension_semantics = [#tpu.dimension_semantics<parallel>], iteration_bounds = array<i64: 2>, scalar_prefetch = 0 : i64, scratch_operands = 5 : i64, tpu.core_type = #tpu.core_type<tc>, window_params = [{transform_indices = @transform_0, window_bounds = array<i64: 8, 8, 32>}, {transform_indices = @transform_1, window_bounds = array<i64: 8, 8, 32>}, {pipeline_mode = #tpu.pipeline_mode<synchronous>, transform_indices = @transform_2, window_bounds = array<i64: 32, 64>}, {pipeline_mode = #tpu.pipeline_mode<synchronous>, transform_indices = @transform_3, window_bounds = array<i64: 1, 64>}, {pipeline_mode = #tpu.pipeline_mode<synchronous>, transform_indices = @transform_4, window_bounds = array<i64: 32, 64>}, {pipeline_mode = #tpu.pipeline_mode<synchronous>, transform_indices = @transform_5, window_bounds = array<i64: 1, 64>}, {pipeline_mode = #tpu.pipeline_mode<synchronous>, transform_indices = @transform_6, window_bounds = array<i64: 3, 32>}, {pipeline_mode = #tpu.pipeline_mode<synchronous>, transform_indices = @transform_7, window_bounds = array<i64: 3, 1>}, {pipeline_mode = #tpu.pipeline_mode<synchronous>, transform_indices = @transform_8, window_bounds = array<i64: 32, 32>}, {pipeline_mode = #tpu.pipeline_mode<synchronous>, transform_indices = @transform_9, window_bounds = array<i64: 32, 32>}, {pipeline_mode = #tpu.pipeline_mode<synchronous>, transform_indices = @transform_10, window_bounds = array<i64: 32, 64>}, {pipeline_mode = #tpu.pipeline_mode<synchronous>, transform_indices = @transform_11, window_bounds = array<i64: 4, 32>}, {pipeline_mode = #tpu.pipeline_mode<synchronous>, transform_indices = @transform_12, window_bounds = array<i64: 4, 32>}, {pipeline_mode = #tpu.pipeline_mode<synchronous>, transform_indices = @transform_13, window_bounds = array<i64: 4, 1>}, {pipeline_mode = #tpu.pipeline_mode<synchronous>, transform_indices = @transform_14, window_bounds = array<i64: 3, 32, 16>}, {pipeline_mode = #tpu.pipeline_mode<synchronous>, transform_indices = @transform_15, window_bounds = array<i64: 3, 16>}, {pipeline_mode = #tpu.pipeline_mode<synchronous>, transform_indices = @transform_16, window_bounds = array<i64: 3, 16>}, {pipeline_mode = #tpu.pipeline_mode<synchronous>, transform_indices = @transform_17, window_bounds = array<i64: 3, 1>}, {pipeline_mode = #tpu.pipeline_mode<synchronous>, transform_indices = @transform_18, window_bounds = array<i64: 6, 32>}, {pipeline_mode = #tpu.pipeline_mode<synchronous>, transform_indices = @transform_19, window_bounds = array<i64: 6, 32>}, {pipeline_mode = #tpu.pipeline_mode<synchronous>, transform_indices = @transform_20, window_bounds = array<i64: 6, 32>}, {pipeline_mode = #tpu.pipeline_mode<synchronous>, transform_indices = @transform_21, window_bounds = array<i64: 6, 1>}, {pipeline_mode = #tpu.pipeline_mode<synchronous>, transform_indices = @transform_22, window_bounds = array<i64: 1, 32>}, {transform_indices = @transform_23, window_bounds = array<i64: 8, 128>}, {transform_indices = @transform_24, window_bounds = array<i64: 8, 128>}]} {
    %c0 = arith.constant 0 : index
    %c0_0 = arith.constant 0 : index
    %0 = vector.load %arg7[%c0, %c0_0] : memref<3x32xf32, #tpu.memory_space<vmem>>, vector<3x32xf32>
    %c0_1 = arith.constant 0 : index
    %c0_2 = arith.constant 0 : index
    %1 = vector.load %arg8[%c0_1, %c0_2] : memref<3x1xf32, #tpu.memory_space<vmem>>, vector<3x1xf32>
    %c0_3 = arith.constant 0 : index
    %c0_4 = arith.constant 0 : index
    %2 = vector.load %arg4[%c0_3, %c0_4] : memref<1x64xf32, #tpu.memory_space<vmem>>, vector<1x64xf32>
    %c0_5 = arith.constant 0 : index
    %c0_6 = arith.constant 0 : index
    %3 = vector.load %arg6[%c0_5, %c0_6] : memref<1x64xf32, #tpu.memory_space<vmem>>, vector<1x64xf32>
    %c0_7 = arith.constant 0 : index
    %c0_8 = arith.constant 0 : index
    %c0_9 = arith.constant 0 : index
    %4 = vector.load %arg1[%c0_7, %c0_8, %c0_9] : memref<8x8x32xf32, #tpu.memory_space<vmem>>, vector<1x8x32xf32>
    %5 = vector.shape_cast %4 : vector<1x8x32xf32> to vector<8x32xf32>
    %c0_10 = arith.constant 0 : index
    %c0_11 = arith.constant 0 : index
    %c0_12 = arith.constant 0 : index
    %6 = vector.load %arg2[%c0_10, %c0_11, %c0_12] : memref<8x8x32xf32, #tpu.memory_space<vmem>>, vector<1x8x32xf32>
    %7 = vector.shape_cast %6 : vector<1x8x32xf32> to vector<8x32xf32>
    %8 = vector.extract_strided_slice %0 {offsets = [0, 0], sizes = [1, 32], strides = [1, 1]} : vector<3x32xf32> to vector<1x32xf32>
    %9 = vector.extract_strided_slice %1 {offsets = [0, 0], sizes = [1, 1], strides = [1, 1]} : vector<3x1xf32> to vector<1x1xf32>
    %10 = arith.truncf %5 : vector<8x32xf32> to vector<8x32xbf16>
    %c0_13 = arith.constant 0 : index
    %c0_14 = arith.constant 0 : index
    %11 = vector.load %arg3[%c0_13, %c0_14] : memref<32x64xbf16, #tpu.memory_space<vmem>>, vector<32x64xbf16>
    %cst = arith.constant dense<0.000000e+00> : vector<8x64xf32>
    %12 = tpu.matmul %10, %11, %cst {dimension_numbers = #tpu.dot_dimension_numbers<[1], [0], [0], [1], [0, 0, 1, 1], [], []>} : vector<8x32xbf16>, vector<32x64xbf16>, vector<8x64xf32> -> vector<8x64xf32>
    %13 = vector.broadcast %2 : vector<1x64xf32> to vector<8x64xf32>
    %14 = arith.addf %12, %13 : vector<8x64xf32>
    %15 = arith.negf %14 : vector<8x64xf32>
    %16 = math.exp %15 : vector<8x64xf32>
    %cst_15 = arith.constant 1.000000e+00 : f32
    %17 = vector.broadcast %cst_15 : f32 to vector<8x64xf32>
    %18 = arith.addf %17, %16 : vector<8x64xf32>
    %19 = arith.divf %17, %18 : vector<8x64xf32>
    %20 = arith.mulf %14, %19 : vector<8x64xf32>
    %21 = vector.extract_strided_slice %20 {offsets = [0, 0], sizes = [8, 32], strides = [1, 1]} : vector<8x64xf32> to vector<8x32xf32>
    %22 = vector.broadcast %8 : vector<1x32xf32> to vector<8x32xf32>
    %23 = arith.mulf %21, %22 : vector<8x32xf32>
    %cst_16 = arith.constant dense<0.000000e+00> : vector<8xf32>
    %24 = vector.multi_reduction <add>, %23, %cst_16 [1] : vector<8x32xf32> to vector<8xf32>
    %25 = vector.shape_cast %24 : vector<8xf32> to vector<8x1xf32>
    %26 = vector.broadcast %9 : vector<1x1xf32> to vector<8x1xf32>
    %27 = arith.addf %25, %26 : vector<8x1xf32>
    %28 = vector.extract_strided_slice %20 {offsets = [0, 32], sizes = [8, 32], strides = [1, 1]} : vector<8x64xf32> to vector<8x32xf32>
    %29 = vector.extract_strided_slice %0 {offsets = [2, 0], sizes = [1, 32], strides = [1, 1]} : vector<3x32xf32> to vector<1x32xf32>
    %30 = vector.broadcast %29 : vector<1x32xf32> to vector<8x32xf32>
    %31 = arith.mulf %28, %30 : vector<8x32xf32>
    %cst_17 = arith.constant dense<0.000000e+00> : vector<8xf32>
    %32 = vector.multi_reduction <add>, %31, %cst_17 [1] : vector<8x32xf32> to vector<8xf32>
    %33 = vector.shape_cast %32 : vector<8xf32> to vector<8x1xf32>
    %34 = vector.extract_strided_slice %1 {offsets = [2, 0], sizes = [1, 1], strides = [1, 1]} : vector<3x1xf32> to vector<1x1xf32>
    %35 = vector.broadcast %34 : vector<1x1xf32> to vector<8x1xf32>
    %36 = arith.addf %33, %35 : vector<8x1xf32>
    %37 = vector.broadcast %27 : vector<8x1xf32> to vector<8x32xf32>
    %38 = arith.mulf %37, %5 : vector<8x32xf32>
    %cst_18 = arith.constant dense<0.000000e+00> : vector<32xf32>
    %39 = vector.multi_reduction <add>, %38, %cst_18 [0] : vector<8x32xf32> to vector<32xf32>
    %40 = vector.shape_cast %39 : vector<32xf32> to vector<1x32xf32>
    %41 = vector.broadcast %36 : vector<8x1xf32> to vector<8x32xf32>
    %42 = arith.mulf %41, %5 : vector<8x32xf32>
    %cst_19 = arith.constant dense<0.000000e+00> : vector<32xf32>
    %43 = vector.multi_reduction <add>, %42, %cst_19 [0] : vector<8x32xf32> to vector<32xf32>
    %44 = vector.shape_cast %43 : vector<32xf32> to vector<1x32xf32>
    %45 = vector.extract_strided_slice %0 {offsets = [1, 0], sizes = [1, 32], strides = [1, 1]} : vector<3x32xf32> to vector<1x32xf32>
    %46 = vector.extract_strided_slice %1 {offsets = [1, 0], sizes = [1, 1], strides = [1, 1]} : vector<3x1xf32> to vector<1x1xf32>
    %47 = arith.truncf %7 : vector<8x32xf32> to vector<8x32xbf16>
    %c0_20 = arith.constant 0 : index
    %c0_21 = arith.constant 0 : index
    %48 = vector.load %arg5[%c0_20, %c0_21] : memref<32x64xbf16, #tpu.memory_space<vmem>>, vector<32x64xbf16>
    %cst_22 = arith.constant dense<0.000000e+00> : vector<8x64xf32>
    %49 = tpu.matmul %47, %48, %cst_22 {dimension_numbers = #tpu.dot_dimension_numbers<[1], [0], [0], [1], [0, 0, 1, 1], [], []>} : vector<8x32xbf16>, vector<32x64xbf16>, vector<8x64xf32> -> vector<8x64xf32>
    %50 = vector.broadcast %3 : vector<1x64xf32> to vector<8x64xf32>
    %51 = arith.addf %49, %50 : vector<8x64xf32>
    %52 = arith.negf %51 : vector<8x64xf32>
    %53 = math.exp %52 : vector<8x64xf32>
    %cst_23 = arith.constant 1.000000e+00 : f32
    %54 = vector.broadcast %cst_23 : f32 to vector<8x64xf32>
    %55 = arith.addf %54, %53 : vector<8x64xf32>
    %56 = arith.divf %54, %55 : vector<8x64xf32>
    %57 = arith.mulf %51, %56 : vector<8x64xf32>
    %58 = vector.extract_strided_slice %57 {offsets = [0, 0], sizes = [8, 32], strides = [1, 1]} : vector<8x64xf32> to vector<8x32xf32>
    %59 = vector.broadcast %45 : vector<1x32xf32> to vector<8x32xf32>
    %60 = arith.mulf %58, %59 : vector<8x32xf32>
    %cst_24 = arith.constant dense<0.000000e+00> : vector<8xf32>
    %61 = vector.multi_reduction <add>, %60, %cst_24 [1] : vector<8x32xf32> to vector<8xf32>
    %62 = vector.shape_cast %61 : vector<8xf32> to vector<8x1xf32>
    %63 = vector.broadcast %46 : vector<1x1xf32> to vector<8x1xf32>
    %64 = arith.addf %62, %63 : vector<8x1xf32>
    %65 = vector.extract_strided_slice %57 {offsets = [0, 32], sizes = [8, 32], strides = [1, 1]} : vector<8x64xf32> to vector<8x32xf32>
    %66 = vector.extract_strided_slice %0 {offsets = [2, 0], sizes = [1, 32], strides = [1, 1]} : vector<3x32xf32> to vector<1x32xf32>
    %67 = vector.broadcast %66 : vector<1x32xf32> to vector<8x32xf32>
    %68 = arith.mulf %65, %67 : vector<8x32xf32>
    %cst_25 = arith.constant dense<0.000000e+00> : vector<8xf32>
    %69 = vector.multi_reduction <add>, %68, %cst_25 [1] : vector<8x32xf32> to vector<8xf32>
    %70 = vector.shape_cast %69 : vector<8xf32> to vector<8x1xf32>
    %71 = vector.extract_strided_slice %1 {offsets = [2, 0], sizes = [1, 1], strides = [1, 1]} : vector<3x1xf32> to vector<1x1xf32>
    %72 = vector.broadcast %71 : vector<1x1xf32> to vector<8x1xf32>
    %73 = arith.addf %70, %72 : vector<8x1xf32>
    %74 = vector.broadcast %64 : vector<8x1xf32> to vector<8x32xf32>
    %75 = arith.mulf %74, %7 : vector<8x32xf32>
    %cst_26 = arith.constant dense<0.000000e+00> : vector<32xf32>
    %76 = vector.multi_reduction <add>, %75, %cst_26 [0] : vector<8x32xf32> to vector<32xf32>
    %77 = vector.shape_cast %76 : vector<32xf32> to vector<1x32xf32>
    %78 = vector.broadcast %73 : vector<8x1xf32> to vector<8x32xf32>
    %79 = arith.mulf %78, %7 : vector<8x32xf32>
    %cst_27 = arith.constant dense<0.000000e+00> : vector<32xf32>
    %80 = vector.multi_reduction <add>, %79, %cst_27 [0] : vector<8x32xf32> to vector<32xf32>
    %81 = vector.shape_cast %80 : vector<32xf32> to vector<1x32xf32>
    %c0_28 = arith.constant 0 : index
    %c0_29 = arith.constant 0 : index
    %82 = vector.load %arg26[%c0_28, %c0_29] : memref<8x32xf32, #tpu.memory_space<vmem>>, vector<1x32xf32>
    tpu.vector_store %arg26[%c0_28, %c0_29], %40 {strides = array<i32>} : memref<8x32xf32, #tpu.memory_space<vmem>>, vector<1x32xf32>,
    %c0_30 = arith.constant 0 : index
    %c0_31 = arith.constant 0 : index
    %83 = vector.load %arg27[%c0_30, %c0_31] : memref<8x32xf32, #tpu.memory_space<vmem>>, vector<1x32xf32>
    tpu.vector_store %arg27[%c0_30, %c0_31], %77 {strides = array<i32>} : memref<8x32xf32, #tpu.memory_space<vmem>>, vector<1x32xf32>,
    %84 = arith.addf %44, %81 : vector<1x32xf32>
    %c0_32 = arith.constant 0 : index
    %c0_33 = arith.constant 0 : index
    %85 = vector.load %arg28[%c0_32, %c0_33] : memref<8x32xf32, #tpu.memory_space<vmem>>, vector<1x32xf32>
    tpu.vector_store %arg28[%c0_32, %c0_33], %84 {strides = array<i32>} : memref<8x32xf32, #tpu.memory_space<vmem>>, vector<1x32xf32>,
    %86 = vector.extract_strided_slice %5 {offsets = [0, 0], sizes = [1, 32], strides = [1, 1]} : vector<8x32xf32> to vector<1x32xf32>
    %c0_34 = arith.constant 0 : index
    %c0_35 = arith.constant 0 : index
    %87 = vector.load %arg29[%c0_34, %c0_35] : memref<8x32xf32, #tpu.memory_space<vmem>>, vector<1x32xf32>
    tpu.vector_store %arg29[%c0_34, %c0_35], %86 {strides = array<i32>} : memref<8x32xf32, #tpu.memory_space<vmem>>, vector<1x32xf32>,
    %88 = vector.extract_strided_slice %7 {offsets = [0, 0], sizes = [1, 32], strides = [1, 1]} : vector<8x32xf32> to vector<1x32xf32>
    %c0_36 = arith.constant 0 : index
    %c0_37 = arith.constant 0 : index
    %89 = vector.load %arg30[%c0_36, %c0_37] : memref<8x32xf32, #tpu.memory_space<vmem>>, vector<1x32xf32>
    tpu.vector_store %arg30[%c0_36, %c0_37], %88 {strides = array<i32>} : memref<8x32xf32, #tpu.memory_space<vmem>>, vector<1x32xf32>,
    %c1 = arith.constant 1 : index
    %c0_38 = arith.constant 0 : index
    %c0_39 = arith.constant 0 : index
    %90 = vector.load %arg1[%c1, %c0_38, %c0_39] : memref<8x8x32xf32, #tpu.memory_space<vmem>>, vector<1x8x32xf32>
    %91 = vector.shape_cast %90 : vector<1x8x32xf32> to vector<8x32xf32>
    %c1_40 = arith.constant 1 : index
    %c0_41 = arith.constant 0 : index
    %c0_42 = arith.constant 0 : index
    %92 = vector.load %arg2[%c1_40, %c0_41, %c0_42] : memref<8x8x32xf32, #tpu.memory_space<vmem>>, vector<1x8x32xf32>
    %93 = vector.shape_cast %92 : vector<1x8x32xf32> to vector<8x32xf32>
    %94 = vector.extract_strided_slice %0 {offsets = [0, 0], sizes = [1, 32], strides = [1, 1]} : vector<3x32xf32> to vector<1x32xf32>
    %95 = vector.extract_strided_slice %1 {offsets = [0, 0], sizes = [1, 1], strides = [1, 1]} : vector<3x1xf32> to vector<1x1xf32>
    %96 = arith.truncf %91 : vector<8x32xf32> to vector<8x32xbf16>
    %c0_43 = arith.constant 0 : index
    %c0_44 = arith.constant 0 : index
    %97 = vector.load %arg3[%c0_43, %c0_44] : memref<32x64xbf16, #tpu.memory_space<vmem>>, vector<32x64xbf16>
    %cst_45 = arith.constant dense<0.000000e+00> : vector<8x64xf32>
    %98 = tpu.matmul %96, %97, %cst_45 {dimension_numbers = #tpu.dot_dimension_numbers<[1], [0], [0], [1], [0, 0, 1, 1], [], []>} : vector<8x32xbf16>, vector<32x64xbf16>, vector<8x64xf32> -> vector<8x64xf32>
    %99 = vector.broadcast %2 : vector<1x64xf32> to vector<8x64xf32>
    %100 = arith.addf %98, %99 : vector<8x64xf32>
    %101 = arith.negf %100 : vector<8x64xf32>
    %102 = math.exp %101 : vector<8x64xf32>
    %cst_46 = arith.constant 1.000000e+00 : f32
    %103 = vector.broadcast %cst_46 : f32 to vector<8x64xf32>
    %104 = arith.addf %103, %102 : vector<8x64xf32>
    %105 = arith.divf %103, %104 : vector<8x64xf32>
    %106 = arith.mulf %100, %105 : vector<8x64xf32>
    %107 = vector.extract_strided_slice %106 {offsets = [0, 0], sizes = [8, 32], strides = [1, 1]} : vector<8x64xf32> to vector<8x32xf32>
    %108 = vector.broadcast %94 : vector<1x32xf32> to vector<8x32xf32>
    %109 = arith.mulf %107, %108 : vector<8x32xf32>
    %cst_47 = arith.constant dense<0.000000e+00> : vector<8xf32>
    %110 = vector.multi_reduction <add>, %109, %cst_47 [1] : vector<8x32xf32> to vector<8xf32>
    %111 = vector.shape_cast %110 : vector<8xf32> to vector<8x1xf32>
    %112 = vector.broadcast %95 : vector<1x1xf32> to vector<8x1xf32>
    %113 = arith.addf %111, %112 : vector<8x1xf32>
    %114 = vector.extract_strided_slice %106 {offsets = [0, 32], sizes = [8, 32], strides = [1, 1]} : vector<8x64xf32> to vector<8x32xf32>
    %115 = vector.extract_strided_slice %0 {offsets = [2, 0], sizes = [1, 32], strides = [1, 1]} : vector<3x32xf32> to vector<1x32xf32>
    %116 = vector.broadcast %115 : vector<1x32xf32> to vector<8x32xf32>
    %117 = arith.mulf %114, %116 : vector<8x32xf32>
    %cst_48 = arith.constant dense<0.000000e+00> : vector<8xf32>
    %118 = vector.multi_reduction <add>, %117, %cst_48 [1] : vector<8x32xf32> to vector<8xf32>
    %119 = vector.shape_cast %118 : vector<8xf32> to vector<8x1xf32>
    %120 = vector.extract_strided_slice %1 {offsets = [2, 0], sizes = [1, 1], strides = [1, 1]} : vector<3x1xf32> to vector<1x1xf32>
    %121 = vector.broadcast %120 : vector<1x1xf32> to vector<8x1xf32>
    %122 = arith.addf %119, %121 : vector<8x1xf32>
    %123 = vector.broadcast %113 : vector<8x1xf32> to vector<8x32xf32>
    %124 = arith.mulf %123, %91 : vector<8x32xf32>
    %cst_49 = arith.constant dense<0.000000e+00> : vector<32xf32>
    %125 = vector.multi_reduction <add>, %124, %cst_49 [0] : vector<8x32xf32> to vector<32xf32>
    %126 = vector.shape_cast %125 : vector<32xf32> to vector<1x32xf32>
    %127 = vector.broadcast %122 : vector<8x1xf32> to vector<8x32xf32>
    %128 = arith.mulf %127, %91 : vector<8x32xf32>
    %cst_50 = arith.constant dense<0.000000e+00> : vector<32xf32>
    %129 = vector.multi_reduction <add>, %128, %cst_50 [0] : vector<8x32xf32> to vector<32xf32>
    %130 = vector.shape_cast %129 : vector<32xf32> to vector<1x32xf32>
    %131 = vector.extract_strided_slice %0 {offsets = [1, 0], sizes = [1, 32], strides = [1, 1]} : vector<3x32xf32> to vector<1x32xf32>
    %132 = vector.extract_strided_slice %1 {offsets = [1, 0], sizes = [1, 1], strides = [1, 1]} : vector<3x1xf32> to vector<1x1xf32>
    %133 = arith.truncf %93 : vector<8x32xf32> to vector<8x32xbf16>
    %c0_51 = arith.constant 0 : index
    %c0_52 = arith.constant 0 : index
    %134 = vector.load %arg5[%c0_51, %c0_52] : memref<32x64xbf16, #tpu.memory_space<vmem>>, vector<32x64xbf16>
    %cst_53 = arith.constant dense<0.000000e+00> : vector<8x64xf32>
    %135 = tpu.matmul %133, %134, %cst_53 {dimension_numbers = #tpu.dot_dimension_numbers<[1], [0], [0], [1], [0, 0, 1, 1], [], []>} : vector<8x32xbf16>, vector<32x64xbf16>, vector<8x64xf32> -> vector<8x64xf32>
    %136 = vector.broadcast %3 : vector<1x64xf32> to vector<8x64xf32>
    %137 = arith.addf %135, %136 : vector<8x64xf32>
    %138 = arith.negf %137 : vector<8x64xf32>
    %139 = math.exp %138 : vector<8x64xf32>
    %cst_54 = arith.constant 1.000000e+00 : f32
    %140 = vector.broadcast %cst_54 : f32 to vector<8x64xf32>
    %141 = arith.addf %140, %139 : vector<8x64xf32>
    %142 = arith.divf %140, %141 : vector<8x64xf32>
    %143 = arith.mulf %137, %142 : vector<8x64xf32>
    %144 = vector.extract_strided_slice %143 {offsets = [0, 0], sizes = [8, 32], strides = [1, 1]} : vector<8x64xf32> to vector<8x32xf32>
    %145 = vector.broadcast %131 : vector<1x32xf32> to vector<8x32xf32>
    %146 = arith.mulf %144, %145 : vector<8x32xf32>
    %cst_55 = arith.constant dense<0.000000e+00> : vector<8xf32>
    %147 = vector.multi_reduction <add>, %146, %cst_55 [1] : vector<8x32xf32> to vector<8xf32>
    %148 = vector.shape_cast %147 : vector<8xf32> to vector<8x1xf32>
    %149 = vector.broadcast %132 : vector<1x1xf32> to vector<8x1xf32>
    %150 = arith.addf %148, %149 : vector<8x1xf32>
    %151 = vector.extract_strided_slice %143 {offsets = [0, 32], sizes = [8, 32], strides = [1, 1]} : vector<8x64xf32> to vector<8x32xf32>
    %152 = vector.extract_strided_slice %0 {offsets = [2, 0], sizes = [1, 32], strides = [1, 1]} : vector<3x32xf32> to vector<1x32xf32>
    %153 = vector.broadcast %152 : vector<1x32xf32> to vector<8x32xf32>
    %154 = arith.mulf %151, %153 : vector<8x32xf32>
    %cst_56 = arith.constant dense<0.000000e+00> : vector<8xf32>
    %155 = vector.multi_reduction <add>, %154, %cst_56 [1] : vector<8x32xf32> to vector<8xf32>
    %156 = vector.shape_cast %155 : vector<8xf32> to vector<8x1xf32>
    %157 = vector.extract_strided_slice %1 {offsets = [2, 0], sizes = [1, 1], strides = [1, 1]} : vector<3x1xf32> to vector<1x1xf32>
    %158 = vector.broadcast %157 : vector<1x1xf32> to vector<8x1xf32>
    %159 = arith.addf %156, %158 : vector<8x1xf32>
    %160 = vector.broadcast %150 : vector<8x1xf32> to vector<8x32xf32>
    %161 = arith.mulf %160, %93 : vector<8x32xf32>
    %cst_57 = arith.constant dense<0.000000e+00> : vector<32xf32>
    %162 = vector.multi_reduction <add>, %161, %cst_57 [0] : vector<8x32xf32> to vector<32xf32>
    %163 = vector.shape_cast %162 : vector<32xf32> to vector<1x32xf32>
    %164 = vector.broadcast %159 : vector<8x1xf32> to vector<8x32xf32>
    %165 = arith.mulf %164, %93 : vector<8x32xf32>
    %cst_58 = arith.constant dense<0.000000e+00> : vector<32xf32>
    %166 = vector.multi_reduction <add>, %165, %cst_58 [0] : vector<8x32xf32> to vector<32xf32>
    %167 = vector.shape_cast %166 : vector<32xf32> to vector<1x32xf32>
    %c1_59 = arith.constant 1 : index
    %c0_60 = arith.constant 0 : index
    %168 = vector.load %arg26[%c1_59, %c0_60] : memref<8x32xf32, #tpu.memory_space<vmem>>, vector<1x32xf32>
    tpu.vector_store %arg26[%c1_59, %c0_60], %126 {strides = array<i32>} : memref<8x32xf32, #tpu.memory_space<vmem>>, vector<1x32xf32>,
    %c1_61 = arith.constant 1 : index
    %c0_62 = arith.constant 0 : index
    %169 = vector.load %arg27[%c1_61, %c0_62] : memref<8x32xf32, #tpu.memory_space<vmem>>, vector<1x32xf32>
    tpu.vector_store %arg27[%c1_61, %c0_62], %163 {strides = array<i32>} : memref<8x32xf32, #tpu.memory_space<vmem>>, vector<1x32xf32>,
    %170 = arith.addf %130, %167 : vector<1x32xf32>
    %c1_63 = arith.constant 1 : index
    %c0_64 = arith.constant 0 : index
    %171 = vector.load %arg28[%c1_63, %c0_64] : memref<8x32xf32, #tpu.memory_space<vmem>>, vector<1x32xf32>
    tpu.vector_store %arg28[%c1_63, %c0_64], %170 {strides = array<i32>} : memref<8x32xf32, #tpu.memory_space<vmem>>, vector<1x32xf32>,
    %172 = vector.extract_strided_slice %91 {offsets = [0, 0], sizes = [1, 32], strides = [1, 1]} : vector<8x32xf32> to vector<1x32xf32>
    %c1_65 = arith.constant 1 : index
    %c0_66 = arith.constant 0 : index
    %173 = vector.load %arg29[%c1_65, %c0_66] : memref<8x32xf32, #tpu.memory_space<vmem>>, vector<1x32xf32>
    tpu.vector_store %arg29[%c1_65, %c0_66], %172 {strides = array<i32>} : memref<8x32xf32, #tpu.memory_space<vmem>>, vector<1x32xf32>,
    %174 = vector.extract_strided_slice %93 {offsets = [0, 0], sizes = [1, 32], strides = [1, 1]} : vector<8x32xf32> to vector<1x32xf32>
    %c1_67 = arith.constant 1 : index
    %c0_68 = arith.constant 0 : index
    %175 = vector.load %arg30[%c1_67, %c0_68] : memref<8x32xf32, #tpu.memory_space<vmem>>, vector<1x32xf32>
    tpu.vector_store %arg30[%c1_67, %c0_68], %174 {strides = array<i32>} : memref<8x32xf32, #tpu.memory_space<vmem>>, vector<1x32xf32>,
    %c2 = arith.constant 2 : index
    %c0_69 = arith.constant 0 : index
    %c0_70 = arith.constant 0 : index
    %176 = vector.load %arg1[%c2, %c0_69, %c0_70] : memref<8x8x32xf32, #tpu.memory_space<vmem>>, vector<1x8x32xf32>
    %177 = vector.shape_cast %176 : vector<1x8x32xf32> to vector<8x32xf32>
    %c2_71 = arith.constant 2 : index
    %c0_72 = arith.constant 0 : index
    %c0_73 = arith.constant 0 : index
    %178 = vector.load %arg2[%c2_71, %c0_72, %c0_73] : memref<8x8x32xf32, #tpu.memory_space<vmem>>, vector<1x8x32xf32>
    %179 = vector.shape_cast %178 : vector<1x8x32xf32> to vector<8x32xf32>
    %180 = vector.extract_strided_slice %0 {offsets = [0, 0], sizes = [1, 32], strides = [1, 1]} : vector<3x32xf32> to vector<1x32xf32>
    %181 = vector.extract_strided_slice %1 {offsets = [0, 0], sizes = [1, 1], strides = [1, 1]} : vector<3x1xf32> to vector<1x1xf32>
    %182 = arith.truncf %177 : vector<8x32xf32> to vector<8x32xbf16>
    %c0_74 = arith.constant 0 : index
    %c0_75 = arith.constant 0 : index
    %183 = vector.load %arg3[%c0_74, %c0_75] : memref<32x64xbf16, #tpu.memory_space<vmem>>, vector<32x64xbf16>
    %cst_76 = arith.constant dense<0.000000e+00> : vector<8x64xf32>
    %184 = tpu.matmul %182, %183, %cst_76 {dimension_numbers = #tpu.dot_dimension_numbers<[1], [0], [0], [1], [0, 0, 1, 1], [], []>} : vector<8x32xbf16>, vector<32x64xbf16>, vector<8x64xf32> -> vector<8x64xf32>
    %185 = vector.broadcast %2 : vector<1x64xf32> to vector<8x64xf32>
    %186 = arith.addf %184, %185 : vector<8x64xf32>
    %187 = arith.negf %186 : vector<8x64xf32>
    %188 = math.exp %187 : vector<8x64xf32>
    %cst_77 = arith.constant 1.000000e+00 : f32
    %189 = vector.broadcast %cst_77 : f32 to vector<8x64xf32>
    %190 = arith.addf %189, %188 : vector<8x64xf32>
    %191 = arith.divf %189, %190 : vector<8x64xf32>
    %192 = arith.mulf %186, %191 : vector<8x64xf32>
    %193 = vector.extract_strided_slice %192 {offsets = [0, 0], sizes = [8, 32], strides = [1, 1]} : vector<8x64xf32> to vector<8x32xf32>
    %194 = vector.broadcast %180 : vector<1x32xf32> to vector<8x32xf32>
    %195 = arith.mulf %193, %194 : vector<8x32xf32>
    %cst_78 = arith.constant dense<0.000000e+00> : vector<8xf32>
    %196 = vector.multi_reduction <add>, %195, %cst_78 [1] : vector<8x32xf32> to vector<8xf32>
    %197 = vector.shape_cast %196 : vector<8xf32> to vector<8x1xf32>
    %198 = vector.broadcast %181 : vector<1x1xf32> to vector<8x1xf32>
    %199 = arith.addf %197, %198 : vector<8x1xf32>
    %200 = vector.extract_strided_slice %192 {offsets = [0, 32], sizes = [8, 32], strides = [1, 1]} : vector<8x64xf32> to vector<8x32xf32>
    %201 = vector.extract_strided_slice %0 {offsets = [2, 0], sizes = [1, 32], strides = [1, 1]} : vector<3x32xf32> to vector<1x32xf32>
    %202 = vector.broadcast %201 : vector<1x32xf32> to vector<8x32xf32>
    %203 = arith.mulf %200, %202 : vector<8x32xf32>
    %cst_79 = arith.constant dense<0.000000e+00> : vector<8xf32>
    %204 = vector.multi_reduction <add>, %203, %cst_79 [1] : vector<8x32xf32> to vector<8xf32>
    %205 = vector.shape_cast %204 : vector<8xf32> to vector<8x1xf32>
    %206 = vector.extract_strided_slice %1 {offsets = [2, 0], sizes = [1, 1], strides = [1, 1]} : vector<3x1xf32> to vector<1x1xf32>
    %207 = vector.broadcast %206 : vector<1x1xf32> to vector<8x1xf32>
    %208 = arith.addf %205, %207 : vector<8x1xf32>
    %209 = vector.broadcast %199 : vector<8x1xf32> to vector<8x32xf32>
    %210 = arith.mulf %209, %177 : vector<8x32xf32>
    %cst_80 = arith.constant dense<0.000000e+00> : vector<32xf32>
    %211 = vector.multi_reduction <add>, %210, %cst_80 [0] : vector<8x32xf32> to vector<32xf32>
    %212 = vector.shape_cast %211 : vector<32xf32> to vector<1x32xf32>
    %213 = vector.broadcast %208 : vector<8x1xf32> to vector<8x32xf32>
    %214 = arith.mulf %213, %177 : vector<8x32xf32>
    %cst_81 = arith.constant dense<0.000000e+00> : vector<32xf32>
    %215 = vector.multi_reduction <add>, %214, %cst_81 [0] : vector<8x32xf32> to vector<32xf32>
    %216 = vector.shape_cast %215 : vector<32xf32> to vector<1x32xf32>
    %217 = vector.extract_strided_slice %0 {offsets = [1, 0], sizes = [1, 32], strides = [1, 1]} : vector<3x32xf32> to vector<1x32xf32>
    %218 = vector.extract_strided_slice %1 {offsets = [1, 0], sizes = [1, 1], strides = [1, 1]} : vector<3x1xf32> to vector<1x1xf32>
    %219 = arith.truncf %179 : vector<8x32xf32> to vector<8x32xbf16>
    %c0_82 = arith.constant 0 : index
    %c0_83 = arith.constant 0 : index
    %220 = vector.load %arg5[%c0_82, %c0_83] : memref<32x64xbf16, #tpu.memory_space<vmem>>, vector<32x64xbf16>
    %cst_84 = arith.constant dense<0.000000e+00> : vector<8x64xf32>
    %221 = tpu.matmul %219, %220, %cst_84 {dimension_numbers = #tpu.dot_dimension_numbers<[1], [0], [0], [1], [0, 0, 1, 1], [], []>} : vector<8x32xbf16>, vector<32x64xbf16>, vector<8x64xf32> -> vector<8x64xf32>
    %222 = vector.broadcast %3 : vector<1x64xf32> to vector<8x64xf32>
    %223 = arith.addf %221, %222 : vector<8x64xf32>
    %224 = arith.negf %223 : vector<8x64xf32>
    %225 = math.exp %224 : vector<8x64xf32>
    %cst_85 = arith.constant 1.000000e+00 : f32
    %226 = vector.broadcast %cst_85 : f32 to vector<8x64xf32>
    %227 = arith.addf %226, %225 : vector<8x64xf32>
    %228 = arith.divf %226, %227 : vector<8x64xf32>
    %229 = arith.mulf %223, %228 : vector<8x64xf32>
    %230 = vector.extract_strided_slice %229 {offsets = [0, 0], sizes = [8, 32], strides = [1, 1]} : vector<8x64xf32> to vector<8x32xf32>
    %231 = vector.broadcast %217 : vector<1x32xf32> to vector<8x32xf32>
    %232 = arith.mulf %230, %231 : vector<8x32xf32>
    %cst_86 = arith.constant dense<0.000000e+00> : vector<8xf32>
    %233 = vector.multi_reduction <add>, %232, %cst_86 [1] : vector<8x32xf32> to vector<8xf32>
    %234 = vector.shape_cast %233 : vector<8xf32> to vector<8x1xf32>
    %235 = vector.broadcast %218 : vector<1x1xf32> to vector<8x1xf32>
    %236 = arith.addf %234, %235 : vector<8x1xf32>
    %237 = vector.extract_strided_slice %229 {offsets = [0, 32], sizes = [8, 32], strides = [1, 1]} : vector<8x64xf32> to vector<8x32xf32>
    %238 = vector.extract_strided_slice %0 {offsets = [2, 0], sizes = [1, 32], strides = [1, 1]} : vector<3x32xf32> to vector<1x32xf32>
    %239 = vector.broadcast %238 : vector<1x32xf32> to vector<8x32xf32>
    %240 = arith.mulf %237, %239 : vector<8x32xf32>
    %cst_87 = arith.constant dense<0.000000e+00> : vector<8xf32>
    %241 = vector.multi_reduction <add>, %240, %cst_87 [1] : vector<8x32xf32> to vector<8xf32>
    %242 = vector.shape_cast %241 : vector<8xf32> to vector<8x1xf32>
    %243 = vector.extract_strided_slice %1 {offsets = [2, 0], sizes = [1, 1], strides = [1, 1]} : vector<3x1xf32> to vector<1x1xf32>
    %244 = vector.broadcast %243 : vector<1x1xf32> to vector<8x1xf32>
    %245 = arith.addf %242, %244 : vector<8x1xf32>
    %246 = vector.broadcast %236 : vector<8x1xf32> to vector<8x32xf32>
    %247 = arith.mulf %246, %179 : vector<8x32xf32>
    %cst_88 = arith.constant dense<0.000000e+00> : vector<32xf32>
    %248 = vector.multi_reduction <add>, %247, %cst_88 [0] : vector<8x32xf32> to vector<32xf32>
    %249 = vector.shape_cast %248 : vector<32xf32> to vector<1x32xf32>
    %250 = vector.broadcast %245 : vector<8x1xf32> to vector<8x32xf32>
    %251 = arith.mulf %250, %179 : vector<8x32xf32>
    %cst_89 = arith.constant dense<0.000000e+00> : vector<32xf32>
    %252 = vector.multi_reduction <add>, %251, %cst_89 [0] : vector<8x32xf32> to vector<32xf32>
    %253 = vector.shape_cast %252 : vector<32xf32> to vector<1x32xf32>
    %c2_90 = arith.constant 2 : index
    %c0_91 = arith.constant 0 : index
    %254 = vector.load %arg26[%c2_90, %c0_91] : memref<8x32xf32, #tpu.memory_space<vmem>>, vector<1x32xf32>
    tpu.vector_store %arg26[%c2_90, %c0_91], %212 {strides = array<i32>} : memref<8x32xf32, #tpu.memory_space<vmem>>, vector<1x32xf32>,
    %c2_92 = arith.constant 2 : index
    %c0_93 = arith.constant 0 : index
    %255 = vector.load %arg27[%c2_92, %c0_93] : memref<8x32xf32, #tpu.memory_space<vmem>>, vector<1x32xf32>
    tpu.vector_store %arg27[%c2_92, %c0_93], %249 {strides = array<i32>} : memref<8x32xf32, #tpu.memory_space<vmem>>, vector<1x32xf32>,
    %256 = arith.addf %216, %253 : vector<1x32xf32>
    %c2_94 = arith.constant 2 : index
    %c0_95 = arith.constant 0 : index
    %257 = vector.load %arg28[%c2_94, %c0_95] : memref<8x32xf32, #tpu.memory_space<vmem>>, vector<1x32xf32>
    tpu.vector_store %arg28[%c2_94, %c0_95], %256 {strides = array<i32>} : memref<8x32xf32, #tpu.memory_space<vmem>>, vector<1x32xf32>,
    %258 = vector.extract_strided_slice %177 {offsets = [0, 0], sizes = [1, 32], strides = [1, 1]} : vector<8x32xf32> to vector<1x32xf32>
    %c2_96 = arith.constant 2 : index
    %c0_97 = arith.constant 0 : index
    %259 = vector.load %arg29[%c2_96, %c0_97] : memref<8x32xf32, #tpu.memory_space<vmem>>, vector<1x32xf32>
    tpu.vector_store %arg29[%c2_96, %c0_97], %258 {strides = array<i32>} : memref<8x32xf32, #tpu.memory_space<vmem>>, vector<1x32xf32>,
    %260 = vector.extract_strided_slice %179 {offsets = [0, 0], sizes = [1, 32], strides = [1, 1]} : vector<8x32xf32> to vector<1x32xf32>
    %c2_98 = arith.constant 2 : index
    %c0_99 = arith.constant 0 : index
    %261 = vector.load %arg30[%c2_98, %c0_99] : memref<8x32xf32, #tpu.memory_space<vmem>>, vector<1x32xf32>
    tpu.vector_store %arg30[%c2_98, %c0_99], %260 {strides = array<i32>} : memref<8x32xf32, #tpu.memory_space<vmem>>, vector<1x32xf32>,
    %c3 = arith.constant 3 : index
    %c0_100 = arith.constant 0 : index
    %c0_101 = arith.constant 0 : index
    %262 = vector.load %arg1[%c3, %c0_100, %c0_101] : memref<8x8x32xf32, #tpu.memory_space<vmem>>, vector<1x8x32xf32>
    %263 = vector.shape_cast %262 : vector<1x8x32xf32> to vector<8x32xf32>
    %c3_102 = arith.constant 3 : index
    %c0_103 = arith.constant 0 : index
    %c0_104 = arith.constant 0 : index
    %264 = vector.load %arg2[%c3_102, %c0_103, %c0_104] : memref<8x8x32xf32, #tpu.memory_space<vmem>>, vector<1x8x32xf32>
    %265 = vector.shape_cast %264 : vector<1x8x32xf32> to vector<8x32xf32>
    %266 = vector.extract_strided_slice %0 {offsets = [0, 0], sizes = [1, 32], strides = [1, 1]} : vector<3x32xf32> to vector<1x32xf32>
    %267 = vector.extract_strided_slice %1 {offsets = [0, 0], sizes = [1, 1], strides = [1, 1]} : vector<3x1xf32> to vector<1x1xf32>
    %268 = arith.truncf %263 : vector<8x32xf32> to vector<8x32xbf16>
    %c0_105 = arith.constant 0 : index
    %c0_106 = arith.constant 0 : index
    %269 = vector.load %arg3[%c0_105, %c0_106] : memref<32x64xbf16, #tpu.memory_space<vmem>>, vector<32x64xbf16>
    %cst_107 = arith.constant dense<0.000000e+00> : vector<8x64xf32>
    %270 = tpu.matmul %268, %269, %cst_107 {dimension_numbers = #tpu.dot_dimension_numbers<[1], [0], [0], [1], [0, 0, 1, 1], [], []>} : vector<8x32xbf16>, vector<32x64xbf16>, vector<8x64xf32> -> vector<8x64xf32>
    %271 = vector.broadcast %2 : vector<1x64xf32> to vector<8x64xf32>
    %272 = arith.addf %270, %271 : vector<8x64xf32>
    %273 = arith.negf %272 : vector<8x64xf32>
    %274 = math.exp %273 : vector<8x64xf32>
    %cst_108 = arith.constant 1.000000e+00 : f32
    %275 = vector.broadcast %cst_108 : f32 to vector<8x64xf32>
    %276 = arith.addf %275, %274 : vector<8x64xf32>
    %277 = arith.divf %275, %276 : vector<8x64xf32>
    %278 = arith.mulf %272, %277 : vector<8x64xf32>
    %279 = vector.extract_strided_slice %278 {offsets = [0, 0], sizes = [8, 32], strides = [1, 1]} : vector<8x64xf32> to vector<8x32xf32>
    %280 = vector.broadcast %266 : vector<1x32xf32> to vector<8x32xf32>
    %281 = arith.mulf %279, %280 : vector<8x32xf32>
    %cst_109 = arith.constant dense<0.000000e+00> : vector<8xf32>
    %282 = vector.multi_reduction <add>, %281, %cst_109 [1] : vector<8x32xf32> to vector<8xf32>
    %283 = vector.shape_cast %282 : vector<8xf32> to vector<8x1xf32>
    %284 = vector.broadcast %267 : vector<1x1xf32> to vector<8x1xf32>
    %285 = arith.addf %283, %284 : vector<8x1xf32>
    %286 = vector.extract_strided_slice %278 {offsets = [0, 32], sizes = [8, 32], strides = [1, 1]} : vector<8x64xf32> to vector<8x32xf32>
    %287 = vector.extract_strided_slice %0 {offsets = [2, 0], sizes = [1, 32], strides = [1, 1]} : vector<3x32xf32> to vector<1x32xf32>
    %288 = vector.broadcast %287 : vector<1x32xf32> to vector<8x32xf32>
    %289 = arith.mulf %286, %288 : vector<8x32xf32>
    %cst_110 = arith.constant dense<0.000000e+00> : vector<8xf32>
    %290 = vector.multi_reduction <add>, %289, %cst_110 [1] : vector<8x32xf32> to vector<8xf32>
    %291 = vector.shape_cast %290 : vector<8xf32> to vector<8x1xf32>
    %292 = vector.extract_strided_slice %1 {offsets = [2, 0], sizes = [1, 1], strides = [1, 1]} : vector<3x1xf32> to vector<1x1xf32>
    %293 = vector.broadcast %292 : vector<1x1xf32> to vector<8x1xf32>
    %294 = arith.addf %291, %293 : vector<8x1xf32>
    %295 = vector.broadcast %285 : vector<8x1xf32> to vector<8x32xf32>
    %296 = arith.mulf %295, %263 : vector<8x32xf32>
    %cst_111 = arith.constant dense<0.000000e+00> : vector<32xf32>
    %297 = vector.multi_reduction <add>, %296, %cst_111 [0] : vector<8x32xf32> to vector<32xf32>
    %298 = vector.shape_cast %297 : vector<32xf32> to vector<1x32xf32>
    %299 = vector.broadcast %294 : vector<8x1xf32> to vector<8x32xf32>
    %300 = arith.mulf %299, %263 : vector<8x32xf32>
    %cst_112 = arith.constant dense<0.000000e+00> : vector<32xf32>
    %301 = vector.multi_reduction <add>, %300, %cst_112 [0] : vector<8x32xf32> to vector<32xf32>
    %302 = vector.shape_cast %301 : vector<32xf32> to vector<1x32xf32>
    %303 = vector.extract_strided_slice %0 {offsets = [1, 0], sizes = [1, 32], strides = [1, 1]} : vector<3x32xf32> to vector<1x32xf32>
    %304 = vector.extract_strided_slice %1 {offsets = [1, 0], sizes = [1, 1], strides = [1, 1]} : vector<3x1xf32> to vector<1x1xf32>
    %305 = arith.truncf %265 : vector<8x32xf32> to vector<8x32xbf16>
    %c0_113 = arith.constant 0 : index
    %c0_114 = arith.constant 0 : index
    %306 = vector.load %arg5[%c0_113, %c0_114] : memref<32x64xbf16, #tpu.memory_space<vmem>>, vector<32x64xbf16>
    %cst_115 = arith.constant dense<0.000000e+00> : vector<8x64xf32>
    %307 = tpu.matmul %305, %306, %cst_115 {dimension_numbers = #tpu.dot_dimension_numbers<[1], [0], [0], [1], [0, 0, 1, 1], [], []>} : vector<8x32xbf16>, vector<32x64xbf16>, vector<8x64xf32> -> vector<8x64xf32>
    %308 = vector.broadcast %3 : vector<1x64xf32> to vector<8x64xf32>
    %309 = arith.addf %307, %308 : vector<8x64xf32>
    %310 = arith.negf %309 : vector<8x64xf32>
    %311 = math.exp %310 : vector<8x64xf32>
    %cst_116 = arith.constant 1.000000e+00 : f32
    %312 = vector.broadcast %cst_116 : f32 to vector<8x64xf32>
    %313 = arith.addf %312, %311 : vector<8x64xf32>
    %314 = arith.divf %312, %313 : vector<8x64xf32>
    %315 = arith.mulf %309, %314 : vector<8x64xf32>
    %316 = vector.extract_strided_slice %315 {offsets = [0, 0], sizes = [8, 32], strides = [1, 1]} : vector<8x64xf32> to vector<8x32xf32>
    %317 = vector.broadcast %303 : vector<1x32xf32> to vector<8x32xf32>
    %318 = arith.mulf %316, %317 : vector<8x32xf32>
    %cst_117 = arith.constant dense<0.000000e+00> : vector<8xf32>
    %319 = vector.multi_reduction <add>, %318, %cst_117 [1] : vector<8x32xf32> to vector<8xf32>
    %320 = vector.shape_cast %319 : vector<8xf32> to vector<8x1xf32>
    %321 = vector.broadcast %304 : vector<1x1xf32> to vector<8x1xf32>
    %322 = arith.addf %320, %321 : vector<8x1xf32>
    %323 = vector.extract_strided_slice %315 {offsets = [0, 32], sizes = [8, 32], strides = [1, 1]} : vector<8x64xf32> to vector<8x32xf32>
    %324 = vector.extract_strided_slice %0 {offsets = [2, 0], sizes = [1, 32], strides = [1, 1]} : vector<3x32xf32> to vector<1x32xf32>
    %325 = vector.broadcast %324 : vector<1x32xf32> to vector<8x32xf32>
    %326 = arith.mulf %323, %325 : vector<8x32xf32>
    %cst_118 = arith.constant dense<0.000000e+00> : vector<8xf32>
    %327 = vector.multi_reduction <add>, %326, %cst_118 [1] : vector<8x32xf32> to vector<8xf32>
    %328 = vector.shape_cast %327 : vector<8xf32> to vector<8x1xf32>
    %329 = vector.extract_strided_slice %1 {offsets = [2, 0], sizes = [1, 1], strides = [1, 1]} : vector<3x1xf32> to vector<1x1xf32>
    %330 = vector.broadcast %329 : vector<1x1xf32> to vector<8x1xf32>
    %331 = arith.addf %328, %330 : vector<8x1xf32>
    %332 = vector.broadcast %322 : vector<8x1xf32> to vector<8x32xf32>
    %333 = arith.mulf %332, %265 : vector<8x32xf32>
    %cst_119 = arith.constant dense<0.000000e+00> : vector<32xf32>
    %334 = vector.multi_reduction <add>, %333, %cst_119 [0] : vector<8x32xf32> to vector<32xf32>
    %335 = vector.shape_cast %334 : vector<32xf32> to vector<1x32xf32>
    %336 = vector.broadcast %331 : vector<8x1xf32> to vector<8x32xf32>
    %337 = arith.mulf %336, %265 : vector<8x32xf32>
    %cst_120 = arith.constant dense<0.000000e+00> : vector<32xf32>
    %338 = vector.multi_reduction <add>, %337, %cst_120 [0] : vector<8x32xf32> to vector<32xf32>
    %339 = vector.shape_cast %338 : vector<32xf32> to vector<1x32xf32>
    %c3_121 = arith.constant 3 : index
    %c0_122 = arith.constant 0 : index
    %340 = vector.load %arg26[%c3_121, %c0_122] : memref<8x32xf32, #tpu.memory_space<vmem>>, vector<1x32xf32>
    tpu.vector_store %arg26[%c3_121, %c0_122], %298 {strides = array<i32>} : memref<8x32xf32, #tpu.memory_space<vmem>>, vector<1x32xf32>,
    %c3_123 = arith.constant 3 : index
    %c0_124 = arith.constant 0 : index
    %341 = vector.load %arg27[%c3_123, %c0_124] : memref<8x32xf32, #tpu.memory_space<vmem>>, vector<1x32xf32>
    tpu.vector_store %arg27[%c3_123, %c0_124], %335 {strides = array<i32>} : memref<8x32xf32, #tpu.memory_space<vmem>>, vector<1x32xf32>,
    %342 = arith.addf %302, %339 : vector<1x32xf32>
    %c3_125 = arith.constant 3 : index
    %c0_126 = arith.constant 0 : index
    %343 = vector.load %arg28[%c3_125, %c0_126] : memref<8x32xf32, #tpu.memory_space<vmem>>, vector<1x32xf32>
    tpu.vector_store %arg28[%c3_125, %c0_126], %342 {strides = array<i32>} : memref<8x32xf32, #tpu.memory_space<vmem>>, vector<1x32xf32>,
    %344 = vector.extract_strided_slice %263 {offsets = [0, 0], sizes = [1, 32], strides = [1, 1]} : vector<8x32xf32> to vector<1x32xf32>
    %c3_127 = arith.constant 3 : index
    %c0_128 = arith.constant 0 : index
    %345 = vector.load %arg29[%c3_127, %c0_128] : memref<8x32xf32, #tpu.memory_space<vmem>>, vector<1x32xf32>
    tpu.vector_store %arg29[%c3_127, %c0_128], %344 {strides = array<i32>} : memref<8x32xf32, #tpu.memory_space<vmem>>, vector<1x32xf32>,
    %346 = vector.extract_strided_slice %265 {offsets = [0, 0], sizes = [1, 32], strides = [1, 1]} : vector<8x32xf32> to vector<1x32xf32>
    %c3_129 = arith.constant 3 : index
    %c0_130 = arith.constant 0 : index
    %347 = vector.load %arg30[%c3_129, %c0_130] : memref<8x32xf32, #tpu.memory_space<vmem>>, vector<1x32xf32>
    tpu.vector_store %arg30[%c3_129, %c0_130], %346 {strides = array<i32>} : memref<8x32xf32, #tpu.memory_space<vmem>>, vector<1x32xf32>,
    %c4 = arith.constant 4 : index
    %c0_131 = arith.constant 0 : index
    %c0_132 = arith.constant 0 : index
    %348 = vector.load %arg1[%c4, %c0_131, %c0_132] : memref<8x8x32xf32, #tpu.memory_space<vmem>>, vector<1x8x32xf32>
    %349 = vector.shape_cast %348 : vector<1x8x32xf32> to vector<8x32xf32>
    %c4_133 = arith.constant 4 : index
    %c0_134 = arith.constant 0 : index
    %c0_135 = arith.constant 0 : index
    %350 = vector.load %arg2[%c4_133, %c0_134, %c0_135] : memref<8x8x32xf32, #tpu.memory_space<vmem>>, vector<1x8x32xf32>
    %351 = vector.shape_cast %350 : vector<1x8x32xf32> to vector<8x32xf32>
    %352 = vector.extract_strided_slice %0 {offsets = [0, 0], sizes = [1, 32], strides = [1, 1]} : vector<3x32xf32> to vector<1x32xf32>
    %353 = vector.extract_strided_slice %1 {offsets = [0, 0], sizes = [1, 1], strides = [1, 1]} : vector<3x1xf32> to vector<1x1xf32>
    %354 = arith.truncf %349 : vector<8x32xf32> to vector<8x32xbf16>
    %c0_136 = arith.constant 0 : index
    %c0_137 = arith.constant 0 : index
    %355 = vector.load %arg3[%c0_136, %c0_137] : memref<32x64xbf16, #tpu.memory_space<vmem>>, vector<32x64xbf16>
    %cst_138 = arith.constant dense<0.000000e+00> : vector<8x64xf32>
    %356 = tpu.matmul %354, %355, %cst_138 {dimension_numbers = #tpu.dot_dimension_numbers<[1], [0], [0], [1], [0, 0, 1, 1], [], []>} : vector<8x32xbf16>, vector<32x64xbf16>, vector<8x64xf32> -> vector<8x64xf32>
    %357 = vector.broadcast %2 : vector<1x64xf32> to vector<8x64xf32>
    %358 = arith.addf %356, %357 : vector<8x64xf32>
    %359 = arith.negf %358 : vector<8x64xf32>
    %360 = math.exp %359 : vector<8x64xf32>
    %cst_139 = arith.constant 1.000000e+00 : f32
    %361 = vector.broadcast %cst_139 : f32 to vector<8x64xf32>
    %362 = arith.addf %361, %360 : vector<8x64xf32>
    %363 = arith.divf %361, %362 : vector<8x64xf32>
    %364 = arith.mulf %358, %363 : vector<8x64xf32>
    %365 = vector.extract_strided_slice %364 {offsets = [0, 0], sizes = [8, 32], strides = [1, 1]} : vector<8x64xf32> to vector<8x32xf32>
    %366 = vector.broadcast %352 : vector<1x32xf32> to vector<8x32xf32>
    %367 = arith.mulf %365, %366 : vector<8x32xf32>
    %cst_140 = arith.constant dense<0.000000e+00> : vector<8xf32>
    %368 = vector.multi_reduction <add>, %367, %cst_140 [1] : vector<8x32xf32> to vector<8xf32>
    %369 = vector.shape_cast %368 : vector<8xf32> to vector<8x1xf32>
    %370 = vector.broadcast %353 : vector<1x1xf32> to vector<8x1xf32>
    %371 = arith.addf %369, %370 : vector<8x1xf32>
    %372 = vector.extract_strided_slice %364 {offsets = [0, 32], sizes = [8, 32], strides = [1, 1]} : vector<8x64xf32> to vector<8x32xf32>
    %373 = vector.extract_strided_slice %0 {offsets = [2, 0], sizes = [1, 32], strides = [1, 1]} : vector<3x32xf32> to vector<1x32xf32>
    %374 = vector.broadcast %373 : vector<1x32xf32> to vector<8x32xf32>
    %375 = arith.mulf %372, %374 : vector<8x32xf32>
    %cst_141 = arith.constant dense<0.000000e+00> : vector<8xf32>
    %376 = vector.multi_reduction <add>, %375, %cst_141 [1] : vector<8x32xf32> to vector<8xf32>
    %377 = vector.shape_cast %376 : vector<8xf32> to vector<8x1xf32>
    %378 = vector.extract_strided_slice %1 {offsets = [2, 0], sizes = [1, 1], strides = [1, 1]} : vector<3x1xf32> to vector<1x1xf32>
    %379 = vector.broadcast %378 : vector<1x1xf32> to vector<8x1xf32>
    %380 = arith.addf %377, %379 : vector<8x1xf32>
    %381 = vector.broadcast %371 : vector<8x1xf32> to vector<8x32xf32>
    %382 = arith.mulf %381, %349 : vector<8x32xf32>
    %cst_142 = arith.constant dense<0.000000e+00> : vector<32xf32>
    %383 = vector.multi_reduction <add>, %382, %cst_142 [0] : vector<8x32xf32> to vector<32xf32>
    %384 = vector.shape_cast %383 : vector<32xf32> to vector<1x32xf32>
    %385 = vector.broadcast %380 : vector<8x1xf32> to vector<8x32xf32>
    %386 = arith.mulf %385, %349 : vector<8x32xf32>
    %cst_143 = arith.constant dense<0.000000e+00> : vector<32xf32>
    %387 = vector.multi_reduction <add>, %386, %cst_143 [0] : vector<8x32xf32> to vector<32xf32>
    %388 = vector.shape_cast %387 : vector<32xf32> to vector<1x32xf32>
    %389 = vector.extract_strided_slice %0 {offsets = [1, 0], sizes = [1, 32], strides = [1, 1]} : vector<3x32xf32> to vector<1x32xf32>
    %390 = vector.extract_strided_slice %1 {offsets = [1, 0], sizes = [1, 1], strides = [1, 1]} : vector<3x1xf32> to vector<1x1xf32>
    %391 = arith.truncf %351 : vector<8x32xf32> to vector<8x32xbf16>
    %c0_144 = arith.constant 0 : index
    %c0_145 = arith.constant 0 : index
    %392 = vector.load %arg5[%c0_144, %c0_145] : memref<32x64xbf16, #tpu.memory_space<vmem>>, vector<32x64xbf16>
    %cst_146 = arith.constant dense<0.000000e+00> : vector<8x64xf32>
    %393 = tpu.matmul %391, %392, %cst_146 {dimension_numbers = #tpu.dot_dimension_numbers<[1], [0], [0], [1], [0, 0, 1, 1], [], []>} : vector<8x32xbf16>, vector<32x64xbf16>, vector<8x64xf32> -> vector<8x64xf32>
    %394 = vector.broadcast %3 : vector<1x64xf32> to vector<8x64xf32>
    %395 = arith.addf %393, %394 : vector<8x64xf32>
    %396 = arith.negf %395 : vector<8x64xf32>
    %397 = math.exp %396 : vector<8x64xf32>
    %cst_147 = arith.constant 1.000000e+00 : f32
    %398 = vector.broadcast %cst_147 : f32 to vector<8x64xf32>
    %399 = arith.addf %398, %397 : vector<8x64xf32>
    %400 = arith.divf %398, %399 : vector<8x64xf32>
    %401 = arith.mulf %395, %400 : vector<8x64xf32>
    %402 = vector.extract_strided_slice %401 {offsets = [0, 0], sizes = [8, 32], strides = [1, 1]} : vector<8x64xf32> to vector<8x32xf32>
    %403 = vector.broadcast %389 : vector<1x32xf32> to vector<8x32xf32>
    %404 = arith.mulf %402, %403 : vector<8x32xf32>
    %cst_148 = arith.constant dense<0.000000e+00> : vector<8xf32>
    %405 = vector.multi_reduction <add>, %404, %cst_148 [1] : vector<8x32xf32> to vector<8xf32>
    %406 = vector.shape_cast %405 : vector<8xf32> to vector<8x1xf32>
    %407 = vector.broadcast %390 : vector<1x1xf32> to vector<8x1xf32>
    %408 = arith.addf %406, %407 : vector<8x1xf32>
    %409 = vector.extract_strided_slice %401 {offsets = [0, 32], sizes = [8, 32], strides = [1, 1]} : vector<8x64xf32> to vector<8x32xf32>
    %410 = vector.extract_strided_slice %0 {offsets = [2, 0], sizes = [1, 32], strides = [1, 1]} : vector<3x32xf32> to vector<1x32xf32>
    %411 = vector.broadcast %410 : vector<1x32xf32> to vector<8x32xf32>
    %412 = arith.mulf %409, %411 : vector<8x32xf32>
    %cst_149 = arith.constant dense<0.000000e+00> : vector<8xf32>
    %413 = vector.multi_reduction <add>, %412, %cst_149 [1] : vector<8x32xf32> to vector<8xf32>
    %414 = vector.shape_cast %413 : vector<8xf32> to vector<8x1xf32>
    %415 = vector.extract_strided_slice %1 {offsets = [2, 0], sizes = [1, 1], strides = [1, 1]} : vector<3x1xf32> to vector<1x1xf32>
    %416 = vector.broadcast %415 : vector<1x1xf32> to vector<8x1xf32>
    %417 = arith.addf %414, %416 : vector<8x1xf32>
    %418 = vector.broadcast %408 : vector<8x1xf32> to vector<8x32xf32>
    %419 = arith.mulf %418, %351 : vector<8x32xf32>
    %cst_150 = arith.constant dense<0.000000e+00> : vector<32xf32>
    %420 = vector.multi_reduction <add>, %419, %cst_150 [0] : vector<8x32xf32> to vector<32xf32>
    %421 = vector.shape_cast %420 : vector<32xf32> to vector<1x32xf32>
    %422 = vector.broadcast %417 : vector<8x1xf32> to vector<8x32xf32>
    %423 = arith.mulf %422, %351 : vector<8x32xf32>
    %cst_151 = arith.constant dense<0.000000e+00> : vector<32xf32>
    %424 = vector.multi_reduction <add>, %423, %cst_151 [0] : vector<8x32xf32> to vector<32xf32>
    %425 = vector.shape_cast %424 : vector<32xf32> to vector<1x32xf32>
    %c4_152 = arith.constant 4 : index
    %c0_153 = arith.constant 0 : index
    %426 = vector.load %arg26[%c4_152, %c0_153] : memref<8x32xf32, #tpu.memory_space<vmem>>, vector<1x32xf32>
    tpu.vector_store %arg26[%c4_152, %c0_153], %384 {strides = array<i32>} : memref<8x32xf32, #tpu.memory_space<vmem>>, vector<1x32xf32>,
    %c4_154 = arith.constant 4 : index
    %c0_155 = arith.constant 0 : index
    %427 = vector.load %arg27[%c4_154, %c0_155] : memref<8x32xf32, #tpu.memory_space<vmem>>, vector<1x32xf32>
    tpu.vector_store %arg27[%c4_154, %c0_155], %421 {strides = array<i32>} : memref<8x32xf32, #tpu.memory_space<vmem>>, vector<1x32xf32>,
    %428 = arith.addf %388, %425 : vector<1x32xf32>
    %c4_156 = arith.constant 4 : index
    %c0_157 = arith.constant 0 : index
    %429 = vector.load %arg28[%c4_156, %c0_157] : memref<8x32xf32, #tpu.memory_space<vmem>>, vector<1x32xf32>
    tpu.vector_store %arg28[%c4_156, %c0_157], %428 {strides = array<i32>} : memref<8x32xf32, #tpu.memory_space<vmem>>, vector<1x32xf32>,
    %430 = vector.extract_strided_slice %349 {offsets = [0, 0], sizes = [1, 32], strides = [1, 1]} : vector<8x32xf32> to vector<1x32xf32>
    %c4_158 = arith.constant 4 : index
    %c0_159 = arith.constant 0 : index
    %431 = vector.load %arg29[%c4_158, %c0_159] : memref<8x32xf32, #tpu.memory_space<vmem>>, vector<1x32xf32>
    tpu.vector_store %arg29[%c4_158, %c0_159], %430 {strides = array<i32>} : memref<8x32xf32, #tpu.memory_space<vmem>>, vector<1x32xf32>,
    %432 = vector.extract_strided_slice %351 {offsets = [0, 0], sizes = [1, 32], strides = [1, 1]} : vector<8x32xf32> to vector<1x32xf32>
    %c4_160 = arith.constant 4 : index
    %c0_161 = arith.constant 0 : index
    %433 = vector.load %arg30[%c4_160, %c0_161] : memref<8x32xf32, #tpu.memory_space<vmem>>, vector<1x32xf32>
    tpu.vector_store %arg30[%c4_160, %c0_161], %432 {strides = array<i32>} : memref<8x32xf32, #tpu.memory_space<vmem>>, vector<1x32xf32>,
    %c5 = arith.constant 5 : index
    %c0_162 = arith.constant 0 : index
    %c0_163 = arith.constant 0 : index
    %434 = vector.load %arg1[%c5, %c0_162, %c0_163] : memref<8x8x32xf32, #tpu.memory_space<vmem>>, vector<1x8x32xf32>
    %435 = vector.shape_cast %434 : vector<1x8x32xf32> to vector<8x32xf32>
    %c5_164 = arith.constant 5 : index
    %c0_165 = arith.constant 0 : index
    %c0_166 = arith.constant 0 : index
    %436 = vector.load %arg2[%c5_164, %c0_165, %c0_166] : memref<8x8x32xf32, #tpu.memory_space<vmem>>, vector<1x8x32xf32>
    %437 = vector.shape_cast %436 : vector<1x8x32xf32> to vector<8x32xf32>
    %438 = vector.extract_strided_slice %0 {offsets = [0, 0], sizes = [1, 32], strides = [1, 1]} : vector<3x32xf32> to vector<1x32xf32>
    %439 = vector.extract_strided_slice %1 {offsets = [0, 0], sizes = [1, 1], strides = [1, 1]} : vector<3x1xf32> to vector<1x1xf32>
    %440 = arith.truncf %435 : vector<8x32xf32> to vector<8x32xbf16>
    %c0_167 = arith.constant 0 : index
    %c0_168 = arith.constant 0 : index
    %441 = vector.load %arg3[%c0_167, %c0_168] : memref<32x64xbf16, #tpu.memory_space<vmem>>, vector<32x64xbf16>
    %cst_169 = arith.constant dense<0.000000e+00> : vector<8x64xf32>
    %442 = tpu.matmul %440, %441, %cst_169 {dimension_numbers = #tpu.dot_dimension_numbers<[1], [0], [0], [1], [0, 0, 1, 1], [], []>} : vector<8x32xbf16>, vector<32x64xbf16>, vector<8x64xf32> -> vector<8x64xf32>
    %443 = vector.broadcast %2 : vector<1x64xf32> to vector<8x64xf32>
    %444 = arith.addf %442, %443 : vector<8x64xf32>
    %445 = arith.negf %444 : vector<8x64xf32>
    %446 = math.exp %445 : vector<8x64xf32>
    %cst_170 = arith.constant 1.000000e+00 : f32
    %447 = vector.broadcast %cst_170 : f32 to vector<8x64xf32>
    %448 = arith.addf %447, %446 : vector<8x64xf32>
    %449 = arith.divf %447, %448 : vector<8x64xf32>
    %450 = arith.mulf %444, %449 : vector<8x64xf32>
    %451 = vector.extract_strided_slice %450 {offsets = [0, 0], sizes = [8, 32], strides = [1, 1]} : vector<8x64xf32> to vector<8x32xf32>
    %452 = vector.broadcast %438 : vector<1x32xf32> to vector<8x32xf32>
    %453 = arith.mulf %451, %452 : vector<8x32xf32>
    %cst_171 = arith.constant dense<0.000000e+00> : vector<8xf32>
    %454 = vector.multi_reduction <add>, %453, %cst_171 [1] : vector<8x32xf32> to vector<8xf32>
    %455 = vector.shape_cast %454 : vector<8xf32> to vector<8x1xf32>
    %456 = vector.broadcast %439 : vector<1x1xf32> to vector<8x1xf32>
    %457 = arith.addf %455, %456 : vector<8x1xf32>
    %458 = vector.extract_strided_slice %450 {offsets = [0, 32], sizes = [8, 32], strides = [1, 1]} : vector<8x64xf32> to vector<8x32xf32>
    %459 = vector.extract_strided_slice %0 {offsets = [2, 0], sizes = [1, 32], strides = [1, 1]} : vector<3x32xf32> to vector<1x32xf32>
    %460 = vector.broadcast %459 : vector<1x32xf32> to vector<8x32xf32>
    %461 = arith.mulf %458, %460 : vector<8x32xf32>
    %cst_172 = arith.constant dense<0.000000e+00> : vector<8xf32>
    %462 = vector.multi_reduction <add>, %461, %cst_172 [1] : vector<8x32xf32> to vector<8xf32>
    %463 = vector.shape_cast %462 : vector<8xf32> to vector<8x1xf32>
    %464 = vector.extract_strided_slice %1 {offsets = [2, 0], sizes = [1, 1], strides = [1, 1]} : vector<3x1xf32> to vector<1x1xf32>
    %465 = vector.broadcast %464 : vector<1x1xf32> to vector<8x1xf32>
    %466 = arith.addf %463, %465 : vector<8x1xf32>
    %467 = vector.broadcast %457 : vector<8x1xf32> to vector<8x32xf32>
    %468 = arith.mulf %467, %435 : vector<8x32xf32>
    %cst_173 = arith.constant dense<0.000000e+00> : vector<32xf32>
    %469 = vector.multi_reduction <add>, %468, %cst_173 [0] : vector<8x32xf32> to vector<32xf32>
    %470 = vector.shape_cast %469 : vector<32xf32> to vector<1x32xf32>
    %471 = vector.broadcast %466 : vector<8x1xf32> to vector<8x32xf32>
    %472 = arith.mulf %471, %435 : vector<8x32xf32>
    %cst_174 = arith.constant dense<0.000000e+00> : vector<32xf32>
    %473 = vector.multi_reduction <add>, %472, %cst_174 [0] : vector<8x32xf32> to vector<32xf32>
    %474 = vector.shape_cast %473 : vector<32xf32> to vector<1x32xf32>
    %475 = vector.extract_strided_slice %0 {offsets = [1, 0], sizes = [1, 32], strides = [1, 1]} : vector<3x32xf32> to vector<1x32xf32>
    %476 = vector.extract_strided_slice %1 {offsets = [1, 0], sizes = [1, 1], strides = [1, 1]} : vector<3x1xf32> to vector<1x1xf32>
    %477 = arith.truncf %437 : vector<8x32xf32> to vector<8x32xbf16>
    %c0_175 = arith.constant 0 : index
    %c0_176 = arith.constant 0 : index
    %478 = vector.load %arg5[%c0_175, %c0_176] : memref<32x64xbf16, #tpu.memory_space<vmem>>, vector<32x64xbf16>
    %cst_177 = arith.constant dense<0.000000e+00> : vector<8x64xf32>
    %479 = tpu.matmul %477, %478, %cst_177 {dimension_numbers = #tpu.dot_dimension_numbers<[1], [0], [0], [1], [0, 0, 1, 1], [], []>} : vector<8x32xbf16>, vector<32x64xbf16>, vector<8x64xf32> -> vector<8x64xf32>
    %480 = vector.broadcast %3 : vector<1x64xf32> to vector<8x64xf32>
    %481 = arith.addf %479, %480 : vector<8x64xf32>
    %482 = arith.negf %481 : vector<8x64xf32>
    %483 = math.exp %482 : vector<8x64xf32>
    %cst_178 = arith.constant 1.000000e+00 : f32
    %484 = vector.broadcast %cst_178 : f32 to vector<8x64xf32>
    %485 = arith.addf %484, %483 : vector<8x64xf32>
    %486 = arith.divf %484, %485 : vector<8x64xf32>
    %487 = arith.mulf %481, %486 : vector<8x64xf32>
    %488 = vector.extract_strided_slice %487 {offsets = [0, 0], sizes = [8, 32], strides = [1, 1]} : vector<8x64xf32> to vector<8x32xf32>
    %489 = vector.broadcast %475 : vector<1x32xf32> to vector<8x32xf32>
    %490 = arith.mulf %488, %489 : vector<8x32xf32>
    %cst_179 = arith.constant dense<0.000000e+00> : vector<8xf32>
    %491 = vector.multi_reduction <add>, %490, %cst_179 [1] : vector<8x32xf32> to vector<8xf32>
    %492 = vector.shape_cast %491 : vector<8xf32> to vector<8x1xf32>
    %493 = vector.broadcast %476 : vector<1x1xf32> to vector<8x1xf32>
    %494 = arith.addf %492, %493 : vector<8x1xf32>
    %495 = vector.extract_strided_slice %487 {offsets = [0, 32], sizes = [8, 32], strides = [1, 1]} : vector<8x64xf32> to vector<8x32xf32>
    %496 = vector.extract_strided_slice %0 {offsets = [2, 0], sizes = [1, 32], strides = [1, 1]} : vector<3x32xf32> to vector<1x32xf32>
    %497 = vector.broadcast %496 : vector<1x32xf32> to vector<8x32xf32>
    %498 = arith.mulf %495, %497 : vector<8x32xf32>
    %cst_180 = arith.constant dense<0.000000e+00> : vector<8xf32>
    %499 = vector.multi_reduction <add>, %498, %cst_180 [1] : vector<8x32xf32> to vector<8xf32>
    %500 = vector.shape_cast %499 : vector<8xf32> to vector<8x1xf32>
    %501 = vector.extract_strided_slice %1 {offsets = [2, 0], sizes = [1, 1], strides = [1, 1]} : vector<3x1xf32> to vector<1x1xf32>
    %502 = vector.broadcast %501 : vector<1x1xf32> to vector<8x1xf32>
    %503 = arith.addf %500, %502 : vector<8x1xf32>
    %504 = vector.broadcast %494 : vector<8x1xf32> to vector<8x32xf32>
    %505 = arith.mulf %504, %437 : vector<8x32xf32>
    %cst_181 = arith.constant dense<0.000000e+00> : vector<32xf32>
    %506 = vector.multi_reduction <add>, %505, %cst_181 [0] : vector<8x32xf32> to vector<32xf32>
    %507 = vector.shape_cast %506 : vector<32xf32> to vector<1x32xf32>
    %508 = vector.broadcast %503 : vector<8x1xf32> to vector<8x32xf32>
    %509 = arith.mulf %508, %437 : vector<8x32xf32>
    %cst_182 = arith.constant dense<0.000000e+00> : vector<32xf32>
    %510 = vector.multi_reduction <add>, %509, %cst_182 [0] : vector<8x32xf32> to vector<32xf32>
    %511 = vector.shape_cast %510 : vector<32xf32> to vector<1x32xf32>
    %c5_183 = arith.constant 5 : index
    %c0_184 = arith.constant 0 : index
    %512 = vector.load %arg26[%c5_183, %c0_184] : memref<8x32xf32, #tpu.memory_space<vmem>>, vector<1x32xf32>
    tpu.vector_store %arg26[%c5_183, %c0_184], %470 {strides = array<i32>} : memref<8x32xf32, #tpu.memory_space<vmem>>, vector<1x32xf32>,
    %c5_185 = arith.constant 5 : index
    %c0_186 = arith.constant 0 : index
    %513 = vector.load %arg27[%c5_185, %c0_186] : memref<8x32xf32, #tpu.memory_space<vmem>>, vector<1x32xf32>
    tpu.vector_store %arg27[%c5_185, %c0_186], %507 {strides = array<i32>} : memref<8x32xf32, #tpu.memory_space<vmem>>, vector<1x32xf32>,
    %514 = arith.addf %474, %511 : vector<1x32xf32>
    %c5_187 = arith.constant 5 : index
    %c0_188 = arith.constant 0 : index
    %515 = vector.load %arg28[%c5_187, %c0_188] : memref<8x32xf32, #tpu.memory_space<vmem>>, vector<1x32xf32>
    tpu.vector_store %arg28[%c5_187, %c0_188], %514 {strides = array<i32>} : memref<8x32xf32, #tpu.memory_space<vmem>>, vector<1x32xf32>,
    %516 = vector.extract_strided_slice %435 {offsets = [0, 0], sizes = [1, 32], strides = [1, 1]} : vector<8x32xf32> to vector<1x32xf32>
    %c5_189 = arith.constant 5 : index
    %c0_190 = arith.constant 0 : index
    %517 = vector.load %arg29[%c5_189, %c0_190] : memref<8x32xf32, #tpu.memory_space<vmem>>, vector<1x32xf32>
    tpu.vector_store %arg29[%c5_189, %c0_190], %516 {strides = array<i32>} : memref<8x32xf32, #tpu.memory_space<vmem>>, vector<1x32xf32>,
    %518 = vector.extract_strided_slice %437 {offsets = [0, 0], sizes = [1, 32], strides = [1, 1]} : vector<8x32xf32> to vector<1x32xf32>
    %c5_191 = arith.constant 5 : index
    %c0_192 = arith.constant 0 : index
    %519 = vector.load %arg30[%c5_191, %c0_192] : memref<8x32xf32, #tpu.memory_space<vmem>>, vector<1x32xf32>
    tpu.vector_store %arg30[%c5_191, %c0_192], %518 {strides = array<i32>} : memref<8x32xf32, #tpu.memory_space<vmem>>, vector<1x32xf32>,
    %c6 = arith.constant 6 : index
    %c0_193 = arith.constant 0 : index
    %c0_194 = arith.constant 0 : index
    %520 = vector.load %arg1[%c6, %c0_193, %c0_194] : memref<8x8x32xf32, #tpu.memory_space<vmem>>, vector<1x8x32xf32>
    %521 = vector.shape_cast %520 : vector<1x8x32xf32> to vector<8x32xf32>
    %c6_195 = arith.constant 6 : index
    %c0_196 = arith.constant 0 : index
    %c0_197 = arith.constant 0 : index
    %522 = vector.load %arg2[%c6_195, %c0_196, %c0_197] : memref<8x8x32xf32, #tpu.memory_space<vmem>>, vector<1x8x32xf32>
    %523 = vector.shape_cast %522 : vector<1x8x32xf32> to vector<8x32xf32>
    %524 = vector.extract_strided_slice %0 {offsets = [0, 0], sizes = [1, 32], strides = [1, 1]} : vector<3x32xf32> to vector<1x32xf32>
    %525 = vector.extract_strided_slice %1 {offsets = [0, 0], sizes = [1, 1], strides = [1, 1]} : vector<3x1xf32> to vector<1x1xf32>
    %526 = arith.truncf %521 : vector<8x32xf32> to vector<8x32xbf16>
    %c0_198 = arith.constant 0 : index
    %c0_199 = arith.constant 0 : index
    %527 = vector.load %arg3[%c0_198, %c0_199] : memref<32x64xbf16, #tpu.memory_space<vmem>>, vector<32x64xbf16>
    %cst_200 = arith.constant dense<0.000000e+00> : vector<8x64xf32>
    %528 = tpu.matmul %526, %527, %cst_200 {dimension_numbers = #tpu.dot_dimension_numbers<[1], [0], [0], [1], [0, 0, 1, 1], [], []>} : vector<8x32xbf16>, vector<32x64xbf16>, vector<8x64xf32> -> vector<8x64xf32>
    %529 = vector.broadcast %2 : vector<1x64xf32> to vector<8x64xf32>
    %530 = arith.addf %528, %529 : vector<8x64xf32>
    %531 = arith.negf %530 : vector<8x64xf32>
    %532 = math.exp %531 : vector<8x64xf32>
    %cst_201 = arith.constant 1.000000e+00 : f32
    %533 = vector.broadcast %cst_201 : f32 to vector<8x64xf32>
    %534 = arith.addf %533, %532 : vector<8x64xf32>
    %535 = arith.divf %533, %534 : vector<8x64xf32>
    %536 = arith.mulf %530, %535 : vector<8x64xf32>
    %537 = vector.extract_strided_slice %536 {offsets = [0, 0], sizes = [8, 32], strides = [1, 1]} : vector<8x64xf32> to vector<8x32xf32>
    %538 = vector.broadcast %524 : vector<1x32xf32> to vector<8x32xf32>
    %539 = arith.mulf %537, %538 : vector<8x32xf32>
    %cst_202 = arith.constant dense<0.000000e+00> : vector<8xf32>
    %540 = vector.multi_reduction <add>, %539, %cst_202 [1] : vector<8x32xf32> to vector<8xf32>
    %541 = vector.shape_cast %540 : vector<8xf32> to vector<8x1xf32>
    %542 = vector.broadcast %525 : vector<1x1xf32> to vector<8x1xf32>
    %543 = arith.addf %541, %542 : vector<8x1xf32>
    %544 = vector.extract_strided_slice %536 {offsets = [0, 32], sizes = [8, 32], strides = [1, 1]} : vector<8x64xf32> to vector<8x32xf32>
    %545 = vector.extract_strided_slice %0 {offsets = [2, 0], sizes = [1, 32], strides = [1, 1]} : vector<3x32xf32> to vector<1x32xf32>
    %546 = vector.broadcast %545 : vector<1x32xf32> to vector<8x32xf32>
    %547 = arith.mulf %544, %546 : vector<8x32xf32>
    %cst_203 = arith.constant dense<0.000000e+00> : vector<8xf32>
    %548 = vector.multi_reduction <add>, %547, %cst_203 [1] : vector<8x32xf32> to vector<8xf32>
    %549 = vector.shape_cast %548 : vector<8xf32> to vector<8x1xf32>
    %550 = vector.extract_strided_slice %1 {offsets = [2, 0], sizes = [1, 1], strides = [1, 1]} : vector<3x1xf32> to vector<1x1xf32>
    %551 = vector.broadcast %550 : vector<1x1xf32> to vector<8x1xf32>
    %552 = arith.addf %549, %551 : vector<8x1xf32>
    %553 = vector.broadcast %543 : vector<8x1xf32> to vector<8x32xf32>
    %554 = arith.mulf %553, %521 : vector<8x32xf32>
    %cst_204 = arith.constant dense<0.000000e+00> : vector<32xf32>
    %555 = vector.multi_reduction <add>, %554, %cst_204 [0] : vector<8x32xf32> to vector<32xf32>
    %556 = vector.shape_cast %555 : vector<32xf32> to vector<1x32xf32>
    %557 = vector.broadcast %552 : vector<8x1xf32> to vector<8x32xf32>
    %558 = arith.mulf %557, %521 : vector<8x32xf32>
    %cst_205 = arith.constant dense<0.000000e+00> : vector<32xf32>
    %559 = vector.multi_reduction <add>, %558, %cst_205 [0] : vector<8x32xf32> to vector<32xf32>
    %560 = vector.shape_cast %559 : vector<32xf32> to vector<1x32xf32>
    %561 = vector.extract_strided_slice %0 {offsets = [1, 0], sizes = [1, 32], strides = [1, 1]} : vector<3x32xf32> to vector<1x32xf32>
    %562 = vector.extract_strided_slice %1 {offsets = [1, 0], sizes = [1, 1], strides = [1, 1]} : vector<3x1xf32> to vector<1x1xf32>
    %563 = arith.truncf %523 : vector<8x32xf32> to vector<8x32xbf16>
    %c0_206 = arith.constant 0 : index
    %c0_207 = arith.constant 0 : index
    %564 = vector.load %arg5[%c0_206, %c0_207] : memref<32x64xbf16, #tpu.memory_space<vmem>>, vector<32x64xbf16>
    %cst_208 = arith.constant dense<0.000000e+00> : vector<8x64xf32>
    %565 = tpu.matmul %563, %564, %cst_208 {dimension_numbers = #tpu.dot_dimension_numbers<[1], [0], [0], [1], [0, 0, 1, 1], [], []>} : vector<8x32xbf16>, vector<32x64xbf16>, vector<8x64xf32> -> vector<8x64xf32>
    %566 = vector.broadcast %3 : vector<1x64xf32> to vector<8x64xf32>
    %567 = arith.addf %565, %566 : vector<8x64xf32>
    %568 = arith.negf %567 : vector<8x64xf32>
    %569 = math.exp %568 : vector<8x64xf32>
    %cst_209 = arith.constant 1.000000e+00 : f32
    %570 = vector.broadcast %cst_209 : f32 to vector<8x64xf32>
    %571 = arith.addf %570, %569 : vector<8x64xf32>
    %572 = arith.divf %570, %571 : vector<8x64xf32>
    %573 = arith.mulf %567, %572 : vector<8x64xf32>
    %574 = vector.extract_strided_slice %573 {offsets = [0, 0], sizes = [8, 32], strides = [1, 1]} : vector<8x64xf32> to vector<8x32xf32>
    %575 = vector.broadcast %561 : vector<1x32xf32> to vector<8x32xf32>
    %576 = arith.mulf %574, %575 : vector<8x32xf32>
    %cst_210 = arith.constant dense<0.000000e+00> : vector<8xf32>
    %577 = vector.multi_reduction <add>, %576, %cst_210 [1] : vector<8x32xf32> to vector<8xf32>
    %578 = vector.shape_cast %577 : vector<8xf32> to vector<8x1xf32>
    %579 = vector.broadcast %562 : vector<1x1xf32> to vector<8x1xf32>
    %580 = arith.addf %578, %579 : vector<8x1xf32>
    %581 = vector.extract_strided_slice %573 {offsets = [0, 32], sizes = [8, 32], strides = [1, 1]} : vector<8x64xf32> to vector<8x32xf32>
    %582 = vector.extract_strided_slice %0 {offsets = [2, 0], sizes = [1, 32], strides = [1, 1]} : vector<3x32xf32> to vector<1x32xf32>
    %583 = vector.broadcast %582 : vector<1x32xf32> to vector<8x32xf32>
    %584 = arith.mulf %581, %583 : vector<8x32xf32>
    %cst_211 = arith.constant dense<0.000000e+00> : vector<8xf32>
    %585 = vector.multi_reduction <add>, %584, %cst_211 [1] : vector<8x32xf32> to vector<8xf32>
    %586 = vector.shape_cast %585 : vector<8xf32> to vector<8x1xf32>
    %587 = vector.extract_strided_slice %1 {offsets = [2, 0], sizes = [1, 1], strides = [1, 1]} : vector<3x1xf32> to vector<1x1xf32>
    %588 = vector.broadcast %587 : vector<1x1xf32> to vector<8x1xf32>
    %589 = arith.addf %586, %588 : vector<8x1xf32>
    %590 = vector.broadcast %580 : vector<8x1xf32> to vector<8x32xf32>
    %591 = arith.mulf %590, %523 : vector<8x32xf32>
    %cst_212 = arith.constant dense<0.000000e+00> : vector<32xf32>
    %592 = vector.multi_reduction <add>, %591, %cst_212 [0] : vector<8x32xf32> to vector<32xf32>
    %593 = vector.shape_cast %592 : vector<32xf32> to vector<1x32xf32>
    %594 = vector.broadcast %589 : vector<8x1xf32> to vector<8x32xf32>
    %595 = arith.mulf %594, %523 : vector<8x32xf32>
    %cst_213 = arith.constant dense<0.000000e+00> : vector<32xf32>
    %596 = vector.multi_reduction <add>, %595, %cst_213 [0] : vector<8x32xf32> to vector<32xf32>
    %597 = vector.shape_cast %596 : vector<32xf32> to vector<1x32xf32>
    %c6_214 = arith.constant 6 : index
    %c0_215 = arith.constant 0 : index
    %598 = vector.load %arg26[%c6_214, %c0_215] : memref<8x32xf32, #tpu.memory_space<vmem>>, vector<1x32xf32>
    tpu.vector_store %arg26[%c6_214, %c0_215], %556 {strides = array<i32>} : memref<8x32xf32, #tpu.memory_space<vmem>>, vector<1x32xf32>,
    %c6_216 = arith.constant 6 : index
    %c0_217 = arith.constant 0 : index
    %599 = vector.load %arg27[%c6_216, %c0_217] : memref<8x32xf32, #tpu.memory_space<vmem>>, vector<1x32xf32>
    tpu.vector_store %arg27[%c6_216, %c0_217], %593 {strides = array<i32>} : memref<8x32xf32, #tpu.memory_space<vmem>>, vector<1x32xf32>,
    %600 = arith.addf %560, %597 : vector<1x32xf32>
    %c6_218 = arith.constant 6 : index
    %c0_219 = arith.constant 0 : index
    %601 = vector.load %arg28[%c6_218, %c0_219] : memref<8x32xf32, #tpu.memory_space<vmem>>, vector<1x32xf32>
    tpu.vector_store %arg28[%c6_218, %c0_219], %600 {strides = array<i32>} : memref<8x32xf32, #tpu.memory_space<vmem>>, vector<1x32xf32>,
    %602 = vector.extract_strided_slice %521 {offsets = [0, 0], sizes = [1, 32], strides = [1, 1]} : vector<8x32xf32> to vector<1x32xf32>
    %c6_220 = arith.constant 6 : index
    %c0_221 = arith.constant 0 : index
    %603 = vector.load %arg29[%c6_220, %c0_221] : memref<8x32xf32, #tpu.memory_space<vmem>>, vector<1x32xf32>
    tpu.vector_store %arg29[%c6_220, %c0_221], %602 {strides = array<i32>} : memref<8x32xf32, #tpu.memory_space<vmem>>, vector<1x32xf32>,
    %604 = vector.extract_strided_slice %523 {offsets = [0, 0], sizes = [1, 32], strides = [1, 1]} : vector<8x32xf32> to vector<1x32xf32>
    %c6_222 = arith.constant 6 : index
    %c0_223 = arith.constant 0 : index
    %605 = vector.load %arg30[%c6_222, %c0_223] : memref<8x32xf32, #tpu.memory_space<vmem>>, vector<1x32xf32>
    tpu.vector_store %arg30[%c6_222, %c0_223], %604 {strides = array<i32>} : memref<8x32xf32, #tpu.memory_space<vmem>>, vector<1x32xf32>,
    %c7 = arith.constant 7 : index
    %c0_224 = arith.constant 0 : index
    %c0_225 = arith.constant 0 : index
    %606 = vector.load %arg1[%c7, %c0_224, %c0_225] : memref<8x8x32xf32, #tpu.memory_space<vmem>>, vector<1x8x32xf32>
    %607 = vector.shape_cast %606 : vector<1x8x32xf32> to vector<8x32xf32>
    %c7_226 = arith.constant 7 : index
    %c0_227 = arith.constant 0 : index
    %c0_228 = arith.constant 0 : index
    %608 = vector.load %arg2[%c7_226, %c0_227, %c0_228] : memref<8x8x32xf32, #tpu.memory_space<vmem>>, vector<1x8x32xf32>
    %609 = vector.shape_cast %608 : vector<1x8x32xf32> to vector<8x32xf32>
    %610 = vector.extract_strided_slice %0 {offsets = [0, 0], sizes = [1, 32], strides = [1, 1]} : vector<3x32xf32> to vector<1x32xf32>
    %611 = vector.extract_strided_slice %1 {offsets = [0, 0], sizes = [1, 1], strides = [1, 1]} : vector<3x1xf32> to vector<1x1xf32>
    %612 = arith.truncf %607 : vector<8x32xf32> to vector<8x32xbf16>
    %c0_229 = arith.constant 0 : index
    %c0_230 = arith.constant 0 : index
    %613 = vector.load %arg3[%c0_229, %c0_230] : memref<32x64xbf16, #tpu.memory_space<vmem>>, vector<32x64xbf16>
    %cst_231 = arith.constant dense<0.000000e+00> : vector<8x64xf32>
    %614 = tpu.matmul %612, %613, %cst_231 {dimension_numbers = #tpu.dot_dimension_numbers<[1], [0], [0], [1], [0, 0, 1, 1], [], []>} : vector<8x32xbf16>, vector<32x64xbf16>, vector<8x64xf32> -> vector<8x64xf32>
    %615 = vector.broadcast %2 : vector<1x64xf32> to vector<8x64xf32>
    %616 = arith.addf %614, %615 : vector<8x64xf32>
    %617 = arith.negf %616 : vector<8x64xf32>
    %618 = math.exp %617 : vector<8x64xf32>
    %cst_232 = arith.constant 1.000000e+00 : f32
    %619 = vector.broadcast %cst_232 : f32 to vector<8x64xf32>
    %620 = arith.addf %619, %618 : vector<8x64xf32>
    %621 = arith.divf %619, %620 : vector<8x64xf32>
    %622 = arith.mulf %616, %621 : vector<8x64xf32>
    %623 = vector.extract_strided_slice %622 {offsets = [0, 0], sizes = [8, 32], strides = [1, 1]} : vector<8x64xf32> to vector<8x32xf32>
    %624 = vector.broadcast %610 : vector<1x32xf32> to vector<8x32xf32>
    %625 = arith.mulf %623, %624 : vector<8x32xf32>
    %cst_233 = arith.constant dense<0.000000e+00> : vector<8xf32>
    %626 = vector.multi_reduction <add>, %625, %cst_233 [1] : vector<8x32xf32> to vector<8xf32>
    %627 = vector.shape_cast %626 : vector<8xf32> to vector<8x1xf32>
    %628 = vector.broadcast %611 : vector<1x1xf32> to vector<8x1xf32>
    %629 = arith.addf %627, %628 : vector<8x1xf32>
    %630 = vector.extract_strided_slice %622 {offsets = [0, 32], sizes = [8, 32], strides = [1, 1]} : vector<8x64xf32> to vector<8x32xf32>
    %631 = vector.extract_strided_slice %0 {offsets = [2, 0], sizes = [1, 32], strides = [1, 1]} : vector<3x32xf32> to vector<1x32xf32>
    %632 = vector.broadcast %631 : vector<1x32xf32> to vector<8x32xf32>
    %633 = arith.mulf %630, %632 : vector<8x32xf32>
    %cst_234 = arith.constant dense<0.000000e+00> : vector<8xf32>
    %634 = vector.multi_reduction <add>, %633, %cst_234 [1] : vector<8x32xf32> to vector<8xf32>
    %635 = vector.shape_cast %634 : vector<8xf32> to vector<8x1xf32>
    %636 = vector.extract_strided_slice %1 {offsets = [2, 0], sizes = [1, 1], strides = [1, 1]} : vector<3x1xf32> to vector<1x1xf32>
    %637 = vector.broadcast %636 : vector<1x1xf32> to vector<8x1xf32>
    %638 = arith.addf %635, %637 : vector<8x1xf32>
    %639 = vector.broadcast %629 : vector<8x1xf32> to vector<8x32xf32>
    %640 = arith.mulf %639, %607 : vector<8x32xf32>
    %cst_235 = arith.constant dense<0.000000e+00> : vector<32xf32>
    %641 = vector.multi_reduction <add>, %640, %cst_235 [0] : vector<8x32xf32> to vector<32xf32>
    %642 = vector.shape_cast %641 : vector<32xf32> to vector<1x32xf32>
    %643 = vector.broadcast %638 : vector<8x1xf32> to vector<8x32xf32>
    %644 = arith.mulf %643, %607 : vector<8x32xf32>
    %cst_236 = arith.constant dense<0.000000e+00> : vector<32xf32>
    %645 = vector.multi_reduction <add>, %644, %cst_236 [0] : vector<8x32xf32> to vector<32xf32>
    %646 = vector.shape_cast %645 : vector<32xf32> to vector<1x32xf32>
    %647 = vector.extract_strided_slice %0 {offsets = [1, 0], sizes = [1, 32], strides = [1, 1]} : vector<3x32xf32> to vector<1x32xf32>
    %648 = vector.extract_strided_slice %1 {offsets = [1, 0], sizes = [1, 1], strides = [1, 1]} : vector<3x1xf32> to vector<1x1xf32>
    %649 = arith.truncf %609 : vector<8x32xf32> to vector<8x32xbf16>
    %c0_237 = arith.constant 0 : index
    %c0_238 = arith.constant 0 : index
    %650 = vector.load %arg5[%c0_237, %c0_238] : memref<32x64xbf16, #tpu.memory_space<vmem>>, vector<32x64xbf16>
    %cst_239 = arith.constant dense<0.000000e+00> : vector<8x64xf32>
    %651 = tpu.matmul %649, %650, %cst_239 {dimension_numbers = #tpu.dot_dimension_numbers<[1], [0], [0], [1], [0, 0, 1, 1], [], []>} : vector<8x32xbf16>, vector<32x64xbf16>, vector<8x64xf32> -> vector<8x64xf32>
    %652 = vector.broadcast %3 : vector<1x64xf32> to vector<8x64xf32>
    %653 = arith.addf %651, %652 : vector<8x64xf32>
    %654 = arith.negf %653 : vector<8x64xf32>
    %655 = math.exp %654 : vector<8x64xf32>
    %cst_240 = arith.constant 1.000000e+00 : f32
    %656 = vector.broadcast %cst_240 : f32 to vector<8x64xf32>
    %657 = arith.addf %656, %655 : vector<8x64xf32>
    %658 = arith.divf %656, %657 : vector<8x64xf32>
    %659 = arith.mulf %653, %658 : vector<8x64xf32>
    %660 = vector.extract_strided_slice %659 {offsets = [0, 0], sizes = [8, 32], strides = [1, 1]} : vector<8x64xf32> to vector<8x32xf32>
    %661 = vector.broadcast %647 : vector<1x32xf32> to vector<8x32xf32>
    %662 = arith.mulf %660, %661 : vector<8x32xf32>
    %cst_241 = arith.constant dense<0.000000e+00> : vector<8xf32>
    %663 = vector.multi_reduction <add>, %662, %cst_241 [1] : vector<8x32xf32> to vector<8xf32>
    %664 = vector.shape_cast %663 : vector<8xf32> to vector<8x1xf32>
    %665 = vector.broadcast %648 : vector<1x1xf32> to vector<8x1xf32>
    %666 = arith.addf %664, %665 : vector<8x1xf32>
    %667 = vector.extract_strided_slice %659 {offsets = [0, 32], sizes = [8, 32], strides = [1, 1]} : vector<8x64xf32> to vector<8x32xf32>
    %668 = vector.extract_strided_slice %0 {offsets = [2, 0], sizes = [1, 32], strides = [1, 1]} : vector<3x32xf32> to vector<1x32xf32>
    %669 = vector.broadcast %668 : vector<1x32xf32> to vector<8x32xf32>
    %670 = arith.mulf %667, %669 : vector<8x32xf32>
    %cst_242 = arith.constant dense<0.000000e+00> : vector<8xf32>
    %671 = vector.multi_reduction <add>, %670, %cst_242 [1] : vector<8x32xf32> to vector<8xf32>
    %672 = vector.shape_cast %671 : vector<8xf32> to vector<8x1xf32>
    %673 = vector.extract_strided_slice %1 {offsets = [2, 0], sizes = [1, 1], strides = [1, 1]} : vector<3x1xf32> to vector<1x1xf32>
    %674 = vector.broadcast %673 : vector<1x1xf32> to vector<8x1xf32>
    %675 = arith.addf %672, %674 : vector<8x1xf32>
    %676 = vector.broadcast %666 : vector<8x1xf32> to vector<8x32xf32>
    %677 = arith.mulf %676, %609 : vector<8x32xf32>
    %cst_243 = arith.constant dense<0.000000e+00> : vector<32xf32>
    %678 = vector.multi_reduction <add>, %677, %cst_243 [0] : vector<8x32xf32> to vector<32xf32>
    %679 = vector.shape_cast %678 : vector<32xf32> to vector<1x32xf32>
    %680 = vector.broadcast %675 : vector<8x1xf32> to vector<8x32xf32>
    %681 = arith.mulf %680, %609 : vector<8x32xf32>
    %cst_244 = arith.constant dense<0.000000e+00> : vector<32xf32>
    %682 = vector.multi_reduction <add>, %681, %cst_244 [0] : vector<8x32xf32> to vector<32xf32>
    %683 = vector.shape_cast %682 : vector<32xf32> to vector<1x32xf32>
    %c7_245 = arith.constant 7 : index
    %c0_246 = arith.constant 0 : index
    %684 = vector.load %arg26[%c7_245, %c0_246] : memref<8x32xf32, #tpu.memory_space<vmem>>, vector<1x32xf32>
    tpu.vector_store %arg26[%c7_245, %c0_246], %642 {strides = array<i32>} : memref<8x32xf32, #tpu.memory_space<vmem>>, vector<1x32xf32>,
    %c7_247 = arith.constant 7 : index
    %c0_248 = arith.constant 0 : index
    %685 = vector.load %arg27[%c7_247, %c0_248] : memref<8x32xf32, #tpu.memory_space<vmem>>, vector<1x32xf32>
    tpu.vector_store %arg27[%c7_247, %c0_248], %679 {strides = array<i32>} : memref<8x32xf32, #tpu.memory_space<vmem>>, vector<1x32xf32>,
    %686 = arith.addf %646, %683 : vector<1x32xf32>
    %c7_249 = arith.constant 7 : index
    %c0_250 = arith.constant 0 : index
    %687 = vector.load %arg28[%c7_249, %c0_250] : memref<8x32xf32, #tpu.memory_space<vmem>>, vector<1x32xf32>
    tpu.vector_store %arg28[%c7_249, %c0_250], %686 {strides = array<i32>} : memref<8x32xf32, #tpu.memory_space<vmem>>, vector<1x32xf32>,
    %688 = vector.extract_strided_slice %607 {offsets = [0, 0], sizes = [1, 32], strides = [1, 1]} : vector<8x32xf32> to vector<1x32xf32>
    %c7_251 = arith.constant 7 : index
    %c0_252 = arith.constant 0 : index
    %689 = vector.load %arg29[%c7_251, %c0_252] : memref<8x32xf32, #tpu.memory_space<vmem>>, vector<1x32xf32>
    tpu.vector_store %arg29[%c7_251, %c0_252], %688 {strides = array<i32>} : memref<8x32xf32, #tpu.memory_space<vmem>>, vector<1x32xf32>,
    %690 = vector.extract_strided_slice %609 {offsets = [0, 0], sizes = [1, 32], strides = [1, 1]} : vector<8x32xf32> to vector<1x32xf32>
    %c7_253 = arith.constant 7 : index
    %c0_254 = arith.constant 0 : index
    %691 = vector.load %arg30[%c7_253, %c0_254] : memref<8x32xf32, #tpu.memory_space<vmem>>, vector<1x32xf32>
    tpu.vector_store %arg30[%c7_253, %c0_254], %690 {strides = array<i32>} : memref<8x32xf32, #tpu.memory_space<vmem>>, vector<1x32xf32>,
    %c0_255 = arith.constant 0 : index
    %c0_256 = arith.constant 0 : index
    %692 = vector.load %arg26[%c0_255, %c0_256] : memref<8x32xf32, #tpu.memory_space<vmem>>, vector<8x32xf32>
    %c0_257 = arith.constant 0 : index
    %c0_258 = arith.constant 0 : index
    %693 = vector.load %arg27[%c0_257, %c0_258] : memref<8x32xf32, #tpu.memory_space<vmem>>, vector<8x32xf32>
    %c0_259 = arith.constant 0 : index
    %c0_260 = arith.constant 0 : index
    %694 = vector.load %arg28[%c0_259, %c0_260] : memref<8x32xf32, #tpu.memory_space<vmem>>, vector<8x32xf32>
    %c0_261 = arith.constant 0 : index
    %c0_262 = arith.constant 0 : index
    %695 = vector.load %arg29[%c0_261, %c0_262] : memref<8x32xf32, #tpu.memory_space<vmem>>, vector<8x32xf32>
    %c0_263 = arith.constant 0 : index
    %c0_264 = arith.constant 0 : index
    %696 = vector.load %arg30[%c0_263, %c0_264] : memref<8x32xf32, #tpu.memory_space<vmem>>, vector<8x32xf32>
    %c0_265 = arith.constant 0 : index
    %c0_266 = arith.constant 0 : index
    %697 = vector.load %arg12[%c0_265, %c0_266] : memref<4x32xf32, #tpu.memory_space<vmem>>, vector<4x32xf32>
    %c0_267 = arith.constant 0 : index
    %c0_268 = arith.constant 0 : index
    %698 = vector.load %arg13[%c0_267, %c0_268] : memref<4x32xf32, #tpu.memory_space<vmem>>, vector<4x32xf32>
    %c0_269 = arith.constant 0 : index
    %c0_270 = arith.constant 0 : index
    %699 = vector.load %arg14[%c0_269, %c0_270] : memref<4x1xf32, #tpu.memory_space<vmem>>, vector<4x1xf32>
    %700 = arith.truncf %692 : vector<8x32xf32> to vector<8x32xbf16>
    %c0_271 = arith.constant 0 : index
    %c0_272 = arith.constant 0 : index
    %701 = vector.load %arg9[%c0_271, %c0_272] : memref<32x32xbf16, #tpu.memory_space<vmem>>, vector<32x32xbf16>
    %cst_273 = arith.constant dense<0.000000e+00> : vector<8x32xf32>
    %702 = tpu.matmul %700, %701, %cst_273 {dimension_numbers = #tpu.dot_dimension_numbers<[1], [0], [0], [1], [0, 0, 1, 1], [], []>} : vector<8x32xbf16>, vector<32x32xbf16>, vector<8x32xf32> -> vector<8x32xf32>
    %703 = arith.truncf %693 : vector<8x32xf32> to vector<8x32xbf16>
    %c0_274 = arith.constant 0 : index
    %c0_275 = arith.constant 0 : index
    %704 = vector.load %arg10[%c0_274, %c0_275] : memref<32x32xbf16, #tpu.memory_space<vmem>>, vector<32x32xbf16>
    %cst_276 = arith.constant dense<0.000000e+00> : vector<8x32xf32>
    %705 = tpu.matmul %703, %704, %cst_276 {dimension_numbers = #tpu.dot_dimension_numbers<[1], [0], [0], [1], [0, 0, 1, 1], [], []>} : vector<8x32xbf16>, vector<32x32xbf16>, vector<8x32xf32> -> vector<8x32xf32>
    %706 = arith.truncf %694 : vector<8x32xf32> to vector<8x32xbf16>
    %c0_277 = arith.constant 0 : index
    %c0_278 = arith.constant 0 : index
    %707 = vector.load %arg11[%c0_277, %c0_278] : memref<32x64xbf16, #tpu.memory_space<vmem>>, vector<32x64xbf16>
    %cst_279 = arith.constant dense<0.000000e+00> : vector<8x64xf32>
    %708 = tpu.matmul %706, %707, %cst_279 {dimension_numbers = #tpu.dot_dimension_numbers<[1], [0], [0], [1], [0, 0, 1, 1], [], []>} : vector<8x32xbf16>, vector<32x64xbf16>, vector<8x64xf32> -> vector<8x64xf32>
    %709 = vector.extract_strided_slice %697 {offsets = [0, 0], sizes = [1, 32], strides = [1, 1]} : vector<4x32xf32> to vector<1x32xf32>
    %710 = vector.broadcast %709 : vector<1x32xf32> to vector<8x32xf32>
    %711 = arith.addf %702, %710 : vector<8x32xf32>
    %712 = arith.negf %711 : vector<8x32xf32>
    %713 = math.exp %712 : vector<8x32xf32>
    %cst_280 = arith.constant 1.000000e+00 : f32
    %714 = vector.broadcast %cst_280 : f32 to vector<8x32xf32>
    %715 = arith.addf %714, %713 : vector<8x32xf32>
    %716 = arith.divf %714, %715 : vector<8x32xf32>
    %717 = arith.mulf %711, %716 : vector<8x32xf32>
    %718 = vector.extract_strided_slice %698 {offsets = [0, 0], sizes = [1, 32], strides = [1, 1]} : vector<4x32xf32> to vector<1x32xf32>
    %719 = vector.broadcast %718 : vector<1x32xf32> to vector<8x32xf32>
    %720 = arith.mulf %717, %719 : vector<8x32xf32>
    %cst_281 = arith.constant dense<0.000000e+00> : vector<8xf32>
    %721 = vector.multi_reduction <add>, %720, %cst_281 [1] : vector<8x32xf32> to vector<8xf32>
    %722 = vector.shape_cast %721 : vector<8xf32> to vector<8x1xf32>
    %723 = vector.extract_strided_slice %699 {offsets = [0, 0], sizes = [1, 1], strides = [1, 1]} : vector<4x1xf32> to vector<1x1xf32>
    %724 = vector.broadcast %723 : vector<1x1xf32> to vector<8x1xf32>
    %725 = arith.addf %722, %724 : vector<8x1xf32>
    %726 = vector.extract_strided_slice %697 {offsets = [1, 0], sizes = [1, 32], strides = [1, 1]} : vector<4x32xf32> to vector<1x32xf32>
    %727 = vector.broadcast %726 : vector<1x32xf32> to vector<8x32xf32>
    %728 = arith.addf %705, %727 : vector<8x32xf32>
    %729 = arith.negf %728 : vector<8x32xf32>
    %730 = math.exp %729 : vector<8x32xf32>
    %cst_282 = arith.constant 1.000000e+00 : f32
    %731 = vector.broadcast %cst_282 : f32 to vector<8x32xf32>
    %732 = arith.addf %731, %730 : vector<8x32xf32>
    %733 = arith.divf %731, %732 : vector<8x32xf32>
    %734 = arith.mulf %728, %733 : vector<8x32xf32>
    %735 = vector.extract_strided_slice %698 {offsets = [1, 0], sizes = [1, 32], strides = [1, 1]} : vector<4x32xf32> to vector<1x32xf32>
    %736 = vector.broadcast %735 : vector<1x32xf32> to vector<8x32xf32>
    %737 = arith.mulf %734, %736 : vector<8x32xf32>
    %cst_283 = arith.constant dense<0.000000e+00> : vector<8xf32>
    %738 = vector.multi_reduction <add>, %737, %cst_283 [1] : vector<8x32xf32> to vector<8xf32>
    %739 = vector.shape_cast %738 : vector<8xf32> to vector<8x1xf32>
    %740 = vector.extract_strided_slice %699 {offsets = [1, 0], sizes = [1, 1], strides = [1, 1]} : vector<4x1xf32> to vector<1x1xf32>
    %741 = vector.broadcast %740 : vector<1x1xf32> to vector<8x1xf32>
    %742 = arith.addf %739, %741 : vector<8x1xf32>
    %743 = vector.extract_strided_slice %708 {offsets = [0, 0], sizes = [8, 32], strides = [1, 1]} : vector<8x64xf32> to vector<8x32xf32>
    %744 = vector.extract_strided_slice %697 {offsets = [2, 0], sizes = [1, 32], strides = [1, 1]} : vector<4x32xf32> to vector<1x32xf32>
    %745 = vector.broadcast %744 : vector<1x32xf32> to vector<8x32xf32>
    %746 = arith.addf %743, %745 : vector<8x32xf32>
    %747 = arith.negf %746 : vector<8x32xf32>
    %748 = math.exp %747 : vector<8x32xf32>
    %cst_284 = arith.constant 1.000000e+00 : f32
    %749 = vector.broadcast %cst_284 : f32 to vector<8x32xf32>
    %750 = arith.addf %749, %748 : vector<8x32xf32>
    %751 = arith.divf %749, %750 : vector<8x32xf32>
    %752 = arith.mulf %746, %751 : vector<8x32xf32>
    %753 = vector.extract_strided_slice %698 {offsets = [2, 0], sizes = [1, 32], strides = [1, 1]} : vector<4x32xf32> to vector<1x32xf32>
    %754 = vector.broadcast %753 : vector<1x32xf32> to vector<8x32xf32>
    %755 = arith.mulf %752, %754 : vector<8x32xf32>
    %cst_285 = arith.constant dense<0.000000e+00> : vector<8xf32>
    %756 = vector.multi_reduction <add>, %755, %cst_285 [1] : vector<8x32xf32> to vector<8xf32>
    %757 = vector.shape_cast %756 : vector<8xf32> to vector<8x1xf32>
    %758 = vector.extract_strided_slice %699 {offsets = [2, 0], sizes = [1, 1], strides = [1, 1]} : vector<4x1xf32> to vector<1x1xf32>
    %759 = vector.broadcast %758 : vector<1x1xf32> to vector<8x1xf32>
    %760 = arith.addf %757, %759 : vector<8x1xf32>
    %761 = vector.extract_strided_slice %708 {offsets = [0, 32], sizes = [8, 32], strides = [1, 1]} : vector<8x64xf32> to vector<8x32xf32>
    %762 = vector.extract_strided_slice %697 {offsets = [3, 0], sizes = [1, 32], strides = [1, 1]} : vector<4x32xf32> to vector<1x32xf32>
    %763 = vector.broadcast %762 : vector<1x32xf32> to vector<8x32xf32>
    %764 = arith.addf %761, %763 : vector<8x32xf32>
    %765 = arith.negf %764 : vector<8x32xf32>
    %766 = math.exp %765 : vector<8x32xf32>
    %cst_286 = arith.constant 1.000000e+00 : f32
    %767 = vector.broadcast %cst_286 : f32 to vector<8x32xf32>
    %768 = arith.addf %767, %766 : vector<8x32xf32>
    %769 = arith.divf %767, %768 : vector<8x32xf32>
    %770 = arith.mulf %764, %769 : vector<8x32xf32>
    %771 = vector.extract_strided_slice %698 {offsets = [3, 0], sizes = [1, 32], strides = [1, 1]} : vector<4x32xf32> to vector<1x32xf32>
    %772 = vector.broadcast %771 : vector<1x32xf32> to vector<8x32xf32>
    %773 = arith.mulf %770, %772 : vector<8x32xf32>
    %cst_287 = arith.constant dense<0.000000e+00> : vector<8xf32>
    %774 = vector.multi_reduction <add>, %773, %cst_287 [1] : vector<8x32xf32> to vector<8xf32>
    %775 = vector.shape_cast %774 : vector<8xf32> to vector<8x1xf32>
    %776 = vector.extract_strided_slice %699 {offsets = [3, 0], sizes = [1, 1], strides = [1, 1]} : vector<4x1xf32> to vector<1x1xf32>
    %777 = vector.broadcast %776 : vector<1x1xf32> to vector<8x1xf32>
    %778 = arith.addf %775, %777 : vector<8x1xf32>
    %779 = vector.broadcast %725 : vector<8x1xf32> to vector<8x32xf32>
    %780 = arith.mulf %695, %779 : vector<8x32xf32>
    %781 = vector.broadcast %742 : vector<8x1xf32> to vector<8x32xf32>
    %782 = arith.mulf %696, %781 : vector<8x32xf32>
    %783 = vector.broadcast %760 : vector<8x1xf32> to vector<8x32xf32>
    %784 = arith.mulf %695, %783 : vector<8x32xf32>
    %785 = vector.broadcast %778 : vector<8x1xf32> to vector<8x32xf32>
    %786 = arith.mulf %695, %785 : vector<8x32xf32>
    %c0_288 = arith.constant 0 : index
    %c0_289 = arith.constant 0 : index
    %787 = vector.load %arg16[%c0_288, %c0_289] : memref<3x16xf32, #tpu.memory_space<vmem>>, vector<3x16xf32>
    %c0_290 = arith.constant 0 : index
    %c0_291 = arith.constant 0 : index
    %788 = vector.load %arg17[%c0_290, %c0_291] : memref<3x16xf32, #tpu.memory_space<vmem>>, vector<3x16xf32>
    %c0_292 = arith.constant 0 : index
    %c0_293 = arith.constant 0 : index
    %789 = vector.load %arg18[%c0_292, %c0_293] : memref<3x1xf32, #tpu.memory_space<vmem>>, vector<3x1xf32>
    %790 = arith.truncf %780 : vector<8x32xf32> to vector<8x32xbf16>
    %c0_294 = arith.constant 0 : index
    %c0_295 = arith.constant 0 : index
    %c0_296 = arith.constant 0 : index
    %791 = vector.load %arg15[%c0_294, %c0_295, %c0_296] : memref<3x32x16xbf16, #tpu.memory_space<vmem>>, vector<1x32x16xbf16>
    %792 = vector.shape_cast %791 : vector<1x32x16xbf16> to vector<32x16xbf16>
    %cst_297 = arith.constant dense<0.000000e+00> : vector<8x16xf32>
    %793 = tpu.matmul %790, %792, %cst_297 {dimension_numbers = #tpu.dot_dimension_numbers<[1], [0], [0], [1], [0, 0, 1, 1], [], []>} : vector<8x32xbf16>, vector<32x16xbf16>, vector<8x16xf32> -> vector<8x16xf32>
    %794 = vector.extract_strided_slice %787 {offsets = [0, 0], sizes = [1, 16], strides = [1, 1]} : vector<3x16xf32> to vector<1x16xf32>
    %795 = vector.broadcast %794 : vector<1x16xf32> to vector<8x16xf32>
    %796 = arith.addf %793, %795 : vector<8x16xf32>
    %797 = arith.negf %796 : vector<8x16xf32>
    %798 = math.exp %797 : vector<8x16xf32>
    %cst_298 = arith.constant 1.000000e+00 : f32
    %799 = vector.broadcast %cst_298 : f32 to vector<8x16xf32>
    %800 = arith.addf %799, %798 : vector<8x16xf32>
    %801 = arith.divf %799, %800 : vector<8x16xf32>
    %802 = arith.mulf %796, %801 : vector<8x16xf32>
    %803 = vector.extract_strided_slice %788 {offsets = [0, 0], sizes = [1, 16], strides = [1, 1]} : vector<3x16xf32> to vector<1x16xf32>
    %804 = vector.broadcast %803 : vector<1x16xf32> to vector<8x16xf32>
    %805 = arith.mulf %802, %804 : vector<8x16xf32>
    %cst_299 = arith.constant dense<0.000000e+00> : vector<8xf32>
    %806 = vector.multi_reduction <add>, %805, %cst_299 [1] : vector<8x16xf32> to vector<8xf32>
    %807 = vector.shape_cast %806 : vector<8xf32> to vector<8x1xf32>
    %808 = vector.extract_strided_slice %789 {offsets = [0, 0], sizes = [1, 1], strides = [1, 1]} : vector<3x1xf32> to vector<1x1xf32>
    %809 = vector.broadcast %808 : vector<1x1xf32> to vector<8x1xf32>
    %810 = arith.addf %807, %809 : vector<8x1xf32>
    %811 = arith.truncf %782 : vector<8x32xf32> to vector<8x32xbf16>
    %c1_300 = arith.constant 1 : index
    %c0_301 = arith.constant 0 : index
    %c0_302 = arith.constant 0 : index
    %812 = vector.load %arg15[%c1_300, %c0_301, %c0_302] : memref<3x32x16xbf16, #tpu.memory_space<vmem>>, vector<1x32x16xbf16>
    %813 = vector.shape_cast %812 : vector<1x32x16xbf16> to vector<32x16xbf16>
    %cst_303 = arith.constant dense<0.000000e+00> : vector<8x16xf32>
    %814 = tpu.matmul %811, %813, %cst_303 {dimension_numbers = #tpu.dot_dimension_numbers<[1], [0], [0], [1], [0, 0, 1, 1], [], []>} : vector<8x32xbf16>, vector<32x16xbf16>, vector<8x16xf32> -> vector<8x16xf32>
    %815 = vector.extract_strided_slice %787 {offsets = [1, 0], sizes = [1, 16], strides = [1, 1]} : vector<3x16xf32> to vector<1x16xf32>
    %816 = vector.broadcast %815 : vector<1x16xf32> to vector<8x16xf32>
    %817 = arith.addf %814, %816 : vector<8x16xf32>
    %818 = arith.negf %817 : vector<8x16xf32>
    %819 = math.exp %818 : vector<8x16xf32>
    %cst_304 = arith.constant 1.000000e+00 : f32
    %820 = vector.broadcast %cst_304 : f32 to vector<8x16xf32>
    %821 = arith.addf %820, %819 : vector<8x16xf32>
    %822 = arith.divf %820, %821 : vector<8x16xf32>
    %823 = arith.mulf %817, %822 : vector<8x16xf32>
    %824 = vector.extract_strided_slice %788 {offsets = [1, 0], sizes = [1, 16], strides = [1, 1]} : vector<3x16xf32> to vector<1x16xf32>
    %825 = vector.broadcast %824 : vector<1x16xf32> to vector<8x16xf32>
    %826 = arith.mulf %823, %825 : vector<8x16xf32>
    %cst_305 = arith.constant dense<0.000000e+00> : vector<8xf32>
    %827 = vector.multi_reduction <add>, %826, %cst_305 [1] : vector<8x16xf32> to vector<8xf32>
    %828 = vector.shape_cast %827 : vector<8xf32> to vector<8x1xf32>
    %829 = vector.extract_strided_slice %789 {offsets = [1, 0], sizes = [1, 1], strides = [1, 1]} : vector<3x1xf32> to vector<1x1xf32>
    %830 = vector.broadcast %829 : vector<1x1xf32> to vector<8x1xf32>
    %831 = arith.addf %828, %830 : vector<8x1xf32>
    %832 = arith.truncf %786 : vector<8x32xf32> to vector<8x32xbf16>
    %c2_306 = arith.constant 2 : index
    %c0_307 = arith.constant 0 : index
    %c0_308 = arith.constant 0 : index
    %833 = vector.load %arg15[%c2_306, %c0_307, %c0_308] : memref<3x32x16xbf16, #tpu.memory_space<vmem>>, vector<1x32x16xbf16>
    %834 = vector.shape_cast %833 : vector<1x32x16xbf16> to vector<32x16xbf16>
    %cst_309 = arith.constant dense<0.000000e+00> : vector<8x16xf32>
    %835 = tpu.matmul %832, %834, %cst_309 {dimension_numbers = #tpu.dot_dimension_numbers<[1], [0], [0], [1], [0, 0, 1, 1], [], []>} : vector<8x32xbf16>, vector<32x16xbf16>, vector<8x16xf32> -> vector<8x16xf32>
    %836 = vector.extract_strided_slice %787 {offsets = [2, 0], sizes = [1, 16], strides = [1, 1]} : vector<3x16xf32> to vector<1x16xf32>
    %837 = vector.broadcast %836 : vector<1x16xf32> to vector<8x16xf32>
    %838 = arith.addf %835, %837 : vector<8x16xf32>
    %839 = arith.negf %838 : vector<8x16xf32>
    %840 = math.exp %839 : vector<8x16xf32>
    %cst_310 = arith.constant 1.000000e+00 : f32
    %841 = vector.broadcast %cst_310 : f32 to vector<8x16xf32>
    %842 = arith.addf %841, %840 : vector<8x16xf32>
    %843 = arith.divf %841, %842 : vector<8x16xf32>
    %844 = arith.mulf %838, %843 : vector<8x16xf32>
    %845 = vector.extract_strided_slice %788 {offsets = [2, 0], sizes = [1, 16], strides = [1, 1]} : vector<3x16xf32> to vector<1x16xf32>
    %846 = vector.broadcast %845 : vector<1x16xf32> to vector<8x16xf32>
    %847 = arith.mulf %844, %846 : vector<8x16xf32>
    %cst_311 = arith.constant dense<0.000000e+00> : vector<8xf32>
    %848 = vector.multi_reduction <add>, %847, %cst_311 [1] : vector<8x16xf32> to vector<8xf32>
    %849 = vector.shape_cast %848 : vector<8xf32> to vector<8x1xf32>
    %850 = vector.extract_strided_slice %789 {offsets = [2, 0], sizes = [1, 1], strides = [1, 1]} : vector<3x1xf32> to vector<1x1xf32>
    %851 = vector.broadcast %850 : vector<1x1xf32> to vector<8x1xf32>
    %852 = arith.addf %849, %851 : vector<8x1xf32>
    %853 = arith.negf %810 : vector<8x1xf32>
    %854 = math.exp %853 : vector<8x1xf32>
    %cst_312 = arith.constant 1.000000e+00 : f32
    %855 = vector.broadcast %cst_312 : f32 to vector<8x1xf32>
    %856 = arith.addf %855, %854 : vector<8x1xf32>
    %857 = arith.divf %855, %856 : vector<8x1xf32>
    %858 = arith.negf %831 : vector<8x1xf32>
    %859 = math.exp %858 : vector<8x1xf32>
    %cst_313 = arith.constant 1.000000e+00 : f32
    %860 = vector.broadcast %cst_313 : f32 to vector<8x1xf32>
    %861 = arith.addf %860, %859 : vector<8x1xf32>
    %862 = arith.divf %860, %861 : vector<8x1xf32>
    %863 = arith.negf %852 : vector<8x1xf32>
    %864 = math.exp %863 : vector<8x1xf32>
    %cst_314 = arith.constant 1.000000e+00 : f32
    %865 = vector.broadcast %cst_314 : f32 to vector<8x1xf32>
    %866 = arith.addf %865, %864 : vector<8x1xf32>
    %867 = arith.divf %865, %866 : vector<8x1xf32>
    %cst_315 = arith.constant 1.000000e+00 : f32
    %868 = vector.broadcast %cst_315 : f32 to vector<8x1xf32>
    %869 = arith.subf %868, %867 : vector<8x1xf32>
    %c0_316 = arith.constant 0 : index
    %c0_317 = arith.constant 0 : index
    %870 = vector.load %arg19[%c0_316, %c0_317] : memref<6x32xf32, #tpu.memory_space<vmem>>, vector<6x32xf32>
    %c0_318 = arith.constant 0 : index
    %c0_319 = arith.constant 0 : index
    %871 = vector.load %arg20[%c0_318, %c0_319] : memref<6x32xf32, #tpu.memory_space<vmem>>, vector<6x32xf32>
    %c0_320 = arith.constant 0 : index
    %c0_321 = arith.constant 0 : index
    %872 = vector.load %arg21[%c0_320, %c0_321] : memref<6x32xf32, #tpu.memory_space<vmem>>, vector<6x32xf32>
    %c0_322 = arith.constant 0 : index
    %c0_323 = arith.constant 0 : index
    %873 = vector.load %arg22[%c0_322, %c0_323] : memref<6x1xf32, #tpu.memory_space<vmem>>, vector<6x1xf32>
    %874 = vector.extract_strided_slice %870 {offsets = [0, 0], sizes = [1, 32], strides = [1, 1]} : vector<6x32xf32> to vector<1x32xf32>
    %875 = vector.broadcast %857 : vector<8x1xf32> to vector<8x32xf32>
    %876 = vector.broadcast %874 : vector<1x32xf32> to vector<8x32xf32>
    %877 = arith.mulf %875, %876 : vector<8x32xf32>
    %878 = vector.extract_strided_slice %871 {offsets = [0, 0], sizes = [1, 32], strides = [1, 1]} : vector<6x32xf32> to vector<1x32xf32>
    %879 = vector.broadcast %878 : vector<1x32xf32> to vector<8x32xf32>
    %880 = arith.addf %877, %879 : vector<8x32xf32>
    %881 = arith.negf %880 : vector<8x32xf32>
    %882 = math.exp %881 : vector<8x32xf32>
    %cst_324 = arith.constant 1.000000e+00 : f32
    %883 = vector.broadcast %cst_324 : f32 to vector<8x32xf32>
    %884 = arith.addf %883, %882 : vector<8x32xf32>
    %885 = arith.divf %883, %884 : vector<8x32xf32>
    %886 = arith.mulf %880, %885 : vector<8x32xf32>
    %887 = vector.extract_strided_slice %872 {offsets = [0, 0], sizes = [1, 32], strides = [1, 1]} : vector<6x32xf32> to vector<1x32xf32>
    %888 = vector.broadcast %887 : vector<1x32xf32> to vector<8x32xf32>
    %889 = arith.mulf %886, %888 : vector<8x32xf32>
    %cst_325 = arith.constant dense<0.000000e+00> : vector<8xf32>
    %890 = vector.multi_reduction <add>, %889, %cst_325 [1] : vector<8x32xf32> to vector<8xf32>
    %891 = vector.shape_cast %890 : vector<8xf32> to vector<8x1xf32>
    %892 = vector.extract_strided_slice %873 {offsets = [0, 0], sizes = [1, 1], strides = [1, 1]} : vector<6x1xf32> to vector<1x1xf32>
    %893 = vector.broadcast %892 : vector<1x1xf32> to vector<8x1xf32>
    %894 = arith.addf %891, %893 : vector<8x1xf32>
    %895 = vector.extract_strided_slice %870 {offsets = [1, 0], sizes = [1, 32], strides = [1, 1]} : vector<6x32xf32> to vector<1x32xf32>
    %896 = vector.broadcast %857 : vector<8x1xf32> to vector<8x32xf32>
    %897 = vector.broadcast %895 : vector<1x32xf32> to vector<8x32xf32>
    %898 = arith.mulf %896, %897 : vector<8x32xf32>
    %899 = vector.extract_strided_slice %871 {offsets = [1, 0], sizes = [1, 32], strides = [1, 1]} : vector<6x32xf32> to vector<1x32xf32>
    %900 = vector.broadcast %899 : vector<1x32xf32> to vector<8x32xf32>
    %901 = arith.addf %898, %900 : vector<8x32xf32>
    %902 = arith.negf %901 : vector<8x32xf32>
    %903 = math.exp %902 : vector<8x32xf32>
    %cst_326 = arith.constant 1.000000e+00 : f32
    %904 = vector.broadcast %cst_326 : f32 to vector<8x32xf32>
    %905 = arith.addf %904, %903 : vector<8x32xf32>
    %906 = arith.divf %904, %905 : vector<8x32xf32>
    %907 = arith.mulf %901, %906 : vector<8x32xf32>
    %908 = vector.extract_strided_slice %872 {offsets = [1, 0], sizes = [1, 32], strides = [1, 1]} : vector<6x32xf32> to vector<1x32xf32>
    %909 = vector.broadcast %908 : vector<1x32xf32> to vector<8x32xf32>
    %910 = arith.mulf %907, %909 : vector<8x32xf32>
    %cst_327 = arith.constant dense<0.000000e+00> : vector<8xf32>
    %911 = vector.multi_reduction <add>, %910, %cst_327 [1] : vector<8x32xf32> to vector<8xf32>
    %912 = vector.shape_cast %911 : vector<8xf32> to vector<8x1xf32>
    %913 = vector.extract_strided_slice %873 {offsets = [1, 0], sizes = [1, 1], strides = [1, 1]} : vector<6x1xf32> to vector<1x1xf32>
    %914 = vector.broadcast %913 : vector<1x1xf32> to vector<8x1xf32>
    %915 = arith.addf %912, %914 : vector<8x1xf32>
    %916 = vector.extract_strided_slice %870 {offsets = [2, 0], sizes = [1, 32], strides = [1, 1]} : vector<6x32xf32> to vector<1x32xf32>
    %917 = vector.broadcast %862 : vector<8x1xf32> to vector<8x32xf32>
    %918 = vector.broadcast %916 : vector<1x32xf32> to vector<8x32xf32>
    %919 = arith.mulf %917, %918 : vector<8x32xf32>
    %920 = vector.extract_strided_slice %871 {offsets = [2, 0], sizes = [1, 32], strides = [1, 1]} : vector<6x32xf32> to vector<1x32xf32>
    %921 = vector.broadcast %920 : vector<1x32xf32> to vector<8x32xf32>
    %922 = arith.addf %919, %921 : vector<8x32xf32>
    %923 = arith.negf %922 : vector<8x32xf32>
    %924 = math.exp %923 : vector<8x32xf32>
    %cst_328 = arith.constant 1.000000e+00 : f32
    %925 = vector.broadcast %cst_328 : f32 to vector<8x32xf32>
    %926 = arith.addf %925, %924 : vector<8x32xf32>
    %927 = arith.divf %925, %926 : vector<8x32xf32>
    %928 = arith.mulf %922, %927 : vector<8x32xf32>
    %929 = vector.extract_strided_slice %872 {offsets = [2, 0], sizes = [1, 32], strides = [1, 1]} : vector<6x32xf32> to vector<1x32xf32>
    %930 = vector.broadcast %929 : vector<1x32xf32> to vector<8x32xf32>
    %931 = arith.mulf %928, %930 : vector<8x32xf32>
    %cst_329 = arith.constant dense<0.000000e+00> : vector<8xf32>
    %932 = vector.multi_reduction <add>, %931, %cst_329 [1] : vector<8x32xf32> to vector<8xf32>
    %933 = vector.shape_cast %932 : vector<8xf32> to vector<8x1xf32>
    %934 = vector.extract_strided_slice %873 {offsets = [2, 0], sizes = [1, 1], strides = [1, 1]} : vector<6x1xf32> to vector<1x1xf32>
    %935 = vector.broadcast %934 : vector<1x1xf32> to vector<8x1xf32>
    %936 = arith.addf %933, %935 : vector<8x1xf32>
    %937 = vector.extract_strided_slice %870 {offsets = [3, 0], sizes = [1, 32], strides = [1, 1]} : vector<6x32xf32> to vector<1x32xf32>
    %938 = vector.broadcast %862 : vector<8x1xf32> to vector<8x32xf32>
    %939 = vector.broadcast %937 : vector<1x32xf32> to vector<8x32xf32>
    %940 = arith.mulf %938, %939 : vector<8x32xf32>
    %941 = vector.extract_strided_slice %871 {offsets = [3, 0], sizes = [1, 32], strides = [1, 1]} : vector<6x32xf32> to vector<1x32xf32>
    %942 = vector.broadcast %941 : vector<1x32xf32> to vector<8x32xf32>
    %943 = arith.addf %940, %942 : vector<8x32xf32>
    %944 = arith.negf %943 : vector<8x32xf32>
    %945 = math.exp %944 : vector<8x32xf32>
    %cst_330 = arith.constant 1.000000e+00 : f32
    %946 = vector.broadcast %cst_330 : f32 to vector<8x32xf32>
    %947 = arith.addf %946, %945 : vector<8x32xf32>
    %948 = arith.divf %946, %947 : vector<8x32xf32>
    %949 = arith.mulf %943, %948 : vector<8x32xf32>
    %950 = vector.extract_strided_slice %872 {offsets = [3, 0], sizes = [1, 32], strides = [1, 1]} : vector<6x32xf32> to vector<1x32xf32>
    %951 = vector.broadcast %950 : vector<1x32xf32> to vector<8x32xf32>
    %952 = arith.mulf %949, %951 : vector<8x32xf32>
    %cst_331 = arith.constant dense<0.000000e+00> : vector<8xf32>
    %953 = vector.multi_reduction <add>, %952, %cst_331 [1] : vector<8x32xf32> to vector<8xf32>
    %954 = vector.shape_cast %953 : vector<8xf32> to vector<8x1xf32>
    %955 = vector.extract_strided_slice %873 {offsets = [3, 0], sizes = [1, 1], strides = [1, 1]} : vector<6x1xf32> to vector<1x1xf32>
    %956 = vector.broadcast %955 : vector<1x1xf32> to vector<8x1xf32>
    %957 = arith.addf %954, %956 : vector<8x1xf32>
    %958 = vector.extract_strided_slice %870 {offsets = [4, 0], sizes = [1, 32], strides = [1, 1]} : vector<6x32xf32> to vector<1x32xf32>
    %959 = vector.broadcast %869 : vector<8x1xf32> to vector<8x32xf32>
    %960 = vector.broadcast %958 : vector<1x32xf32> to vector<8x32xf32>
    %961 = arith.mulf %959, %960 : vector<8x32xf32>
    %962 = vector.extract_strided_slice %871 {offsets = [4, 0], sizes = [1, 32], strides = [1, 1]} : vector<6x32xf32> to vector<1x32xf32>
    %963 = vector.broadcast %962 : vector<1x32xf32> to vector<8x32xf32>
    %964 = arith.addf %961, %963 : vector<8x32xf32>
    %965 = arith.negf %964 : vector<8x32xf32>
    %966 = math.exp %965 : vector<8x32xf32>
    %cst_332 = arith.constant 1.000000e+00 : f32
    %967 = vector.broadcast %cst_332 : f32 to vector<8x32xf32>
    %968 = arith.addf %967, %966 : vector<8x32xf32>
    %969 = arith.divf %967, %968 : vector<8x32xf32>
    %970 = arith.mulf %964, %969 : vector<8x32xf32>
    %971 = vector.extract_strided_slice %872 {offsets = [4, 0], sizes = [1, 32], strides = [1, 1]} : vector<6x32xf32> to vector<1x32xf32>
    %972 = vector.broadcast %971 : vector<1x32xf32> to vector<8x32xf32>
    %973 = arith.mulf %970, %972 : vector<8x32xf32>
    %cst_333 = arith.constant dense<0.000000e+00> : vector<8xf32>
    %974 = vector.multi_reduction <add>, %973, %cst_333 [1] : vector<8x32xf32> to vector<8xf32>
    %975 = vector.shape_cast %974 : vector<8xf32> to vector<8x1xf32>
    %976 = vector.extract_strided_slice %873 {offsets = [4, 0], sizes = [1, 1], strides = [1, 1]} : vector<6x1xf32> to vector<1x1xf32>
    %977 = vector.broadcast %976 : vector<1x1xf32> to vector<8x1xf32>
    %978 = arith.addf %975, %977 : vector<8x1xf32>
    %979 = vector.extract_strided_slice %870 {offsets = [5, 0], sizes = [1, 32], strides = [1, 1]} : vector<6x32xf32> to vector<1x32xf32>
    %980 = vector.broadcast %869 : vector<8x1xf32> to vector<8x32xf32>
    %981 = vector.broadcast %979 : vector<1x32xf32> to vector<8x32xf32>
    %982 = arith.mulf %980, %981 : vector<8x32xf32>
    %983 = vector.extract_strided_slice %871 {offsets = [5, 0], sizes = [1, 32], strides = [1, 1]} : vector<6x32xf32> to vector<1x32xf32>
    %984 = vector.broadcast %983 : vector<1x32xf32> to vector<8x32xf32>
    %985 = arith.addf %982, %984 : vector<8x32xf32>
    %986 = arith.negf %985 : vector<8x32xf32>
    %987 = math.exp %986 : vector<8x32xf32>
    %cst_334 = arith.constant 1.000000e+00 : f32
    %988 = vector.broadcast %cst_334 : f32 to vector<8x32xf32>
    %989 = arith.addf %988, %987 : vector<8x32xf32>
    %990 = arith.divf %988, %989 : vector<8x32xf32>
    %991 = arith.mulf %985, %990 : vector<8x32xf32>
    %992 = vector.extract_strided_slice %872 {offsets = [5, 0], sizes = [1, 32], strides = [1, 1]} : vector<6x32xf32> to vector<1x32xf32>
    %993 = vector.broadcast %992 : vector<1x32xf32> to vector<8x32xf32>
    %994 = arith.mulf %991, %993 : vector<8x32xf32>
    %cst_335 = arith.constant dense<0.000000e+00> : vector<8xf32>
    %995 = vector.multi_reduction <add>, %994, %cst_335 [1] : vector<8x32xf32> to vector<8xf32>
    %996 = vector.shape_cast %995 : vector<8xf32> to vector<8x1xf32>
    %997 = vector.extract_strided_slice %873 {offsets = [5, 0], sizes = [1, 1], strides = [1, 1]} : vector<6x1xf32> to vector<1x1xf32>
    %998 = vector.broadcast %997 : vector<1x1xf32> to vector<8x1xf32>
    %999 = arith.addf %996, %998 : vector<8x1xf32>
    %c0_336 = arith.constant 0 : index
    %c0_337 = arith.constant 0 : index
    %1000 = vector.load %arg23[%c0_336, %c0_337] : memref<1x32xf32, #tpu.memory_space<vmem>>, vector<1x32xf32>
    %cst_338 = arith.constant dense<0.000000e+00> : vector<1xf32>
    %1001 = vector.multi_reduction <add>, %1000, %cst_338 [1] : vector<1x32xf32> to vector<1xf32>
    %1002 = vector.shape_cast %1001 : vector<1xf32> to vector<1x1xf32>
    %cst_339 = arith.constant 3.125000e-02 : f32
    %1003 = vector.broadcast %cst_339 : f32 to vector<1x1xf32>
    %1004 = arith.mulf %1002, %1003 : vector<1x1xf32>
    %1005 = vector.broadcast %1004 : vector<1x1xf32> to vector<1x32xf32>
    %1006 = arith.subf %1000, %1005 : vector<1x32xf32>
    %1007 = arith.mulf %1006, %1006 : vector<1x32xf32>
    %cst_340 = arith.constant dense<0.000000e+00> : vector<1xf32>
    %1008 = vector.multi_reduction <add>, %1007, %cst_340 [1] : vector<1x32xf32> to vector<1xf32>
    %1009 = vector.shape_cast %1008 : vector<1xf32> to vector<1x1xf32>
    %cst_341 = arith.constant 2.300000e-08 : f32
    %1010 = vector.broadcast %cst_341 : f32 to vector<1x1xf32>
    %1011 = arith.addf %1009, %1010 : vector<1x1xf32>
    %cst_342 = arith.constant 3.125000e-02 : f32
    %1012 = vector.broadcast %cst_342 : f32 to vector<1x1xf32>
    %1013 = arith.mulf %1011, %1012 : vector<1x1xf32>
    %1014 = math.rsqrt %1013 : vector<1x1xf32>
    %1015 = vector.broadcast %1014 : vector<1x1xf32> to vector<1x32xf32>
    %1016 = arith.mulf %1006, %1015 : vector<1x32xf32>
    %1017 = vector.broadcast %1016 : vector<1x32xf32> to vector<8x32xf32>
    %1018 = vector.broadcast %978 : vector<8x1xf32> to vector<8x32xf32>
    %1019 = arith.addf %1017, %1018 : vector<8x32xf32>
    %1020 = vector.broadcast %999 : vector<8x1xf32> to vector<8x32xf32>
    %1021 = arith.mulf %1020, %1019 : vector<8x32xf32>
    %cst_343 = arith.constant dense<0.000000e+00> : vector<8xf32>
    %1022 = vector.multi_reduction <add>, %780, %cst_343 [1] : vector<8x32xf32> to vector<8xf32>
    %1023 = vector.shape_cast %1022 : vector<8xf32> to vector<8x1xf32>
    %cst_344 = arith.constant 3.125000e-02 : f32
    %1024 = vector.broadcast %cst_344 : f32 to vector<8x1xf32>
    %1025 = arith.mulf %1023, %1024 : vector<8x1xf32>
    %1026 = vector.broadcast %1025 : vector<8x1xf32> to vector<8x32xf32>
    %1027 = arith.subf %780, %1026 : vector<8x32xf32>
    %1028 = arith.mulf %1027, %1027 : vector<8x32xf32>
    %cst_345 = arith.constant dense<0.000000e+00> : vector<8xf32>
    %1029 = vector.multi_reduction <add>, %1028, %cst_345 [1] : vector<8x32xf32> to vector<8xf32>
    %1030 = vector.shape_cast %1029 : vector<8xf32> to vector<8x1xf32>
    %cst_346 = arith.constant 2.300000e-08 : f32
    %1031 = vector.broadcast %cst_346 : f32 to vector<8x1xf32>
    %1032 = arith.addf %1030, %1031 : vector<8x1xf32>
    %cst_347 = arith.constant 3.125000e-02 : f32
    %1033 = vector.broadcast %cst_347 : f32 to vector<8x1xf32>
    %1034 = arith.mulf %1032, %1033 : vector<8x1xf32>
    %1035 = math.rsqrt %1034 : vector<8x1xf32>
    %1036 = vector.broadcast %1035 : vector<8x1xf32> to vector<8x32xf32>
    %1037 = arith.mulf %1027, %1036 : vector<8x32xf32>
    %1038 = vector.broadcast %894 : vector<8x1xf32> to vector<8x32xf32>
    %1039 = arith.addf %1037, %1038 : vector<8x32xf32>
    %1040 = vector.broadcast %915 : vector<8x1xf32> to vector<8x32xf32>
    %1041 = arith.mulf %1040, %1039 : vector<8x32xf32>
    %cst_348 = arith.constant dense<0.000000e+00> : vector<8xf32>
    %1042 = vector.multi_reduction <add>, %782, %cst_348 [1] : vector<8x32xf32> to vector<8xf32>
    %1043 = vector.shape_cast %1042 : vector<8xf32> to vector<8x1xf32>
    %cst_349 = arith.constant 3.125000e-02 : f32
    %1044 = vector.broadcast %cst_349 : f32 to vector<8x1xf32>
    %1045 = arith.mulf %1043, %1044 : vector<8x1xf32>
    %1046 = vector.broadcast %1045 : vector<8x1xf32> to vector<8x32xf32>
    %1047 = arith.subf %782, %1046 : vector<8x32xf32>
    %1048 = arith.mulf %1047, %1047 : vector<8x32xf32>
    %cst_350 = arith.constant dense<0.000000e+00> : vector<8xf32>
    %1049 = vector.multi_reduction <add>, %1048, %cst_350 [1] : vector<8x32xf32> to vector<8xf32>
    %1050 = vector.shape_cast %1049 : vector<8xf32> to vector<8x1xf32>
    %cst_351 = arith.constant 2.300000e-08 : f32
    %1051 = vector.broadcast %cst_351 : f32 to vector<8x1xf32>
    %1052 = arith.addf %1050, %1051 : vector<8x1xf32>
    %cst_352 = arith.constant 3.125000e-02 : f32
    %1053 = vector.broadcast %cst_352 : f32 to vector<8x1xf32>
    %1054 = arith.mulf %1052, %1053 : vector<8x1xf32>
    %1055 = math.rsqrt %1054 : vector<8x1xf32>
    %1056 = vector.broadcast %1055 : vector<8x1xf32> to vector<8x32xf32>
    %1057 = arith.mulf %1047, %1056 : vector<8x32xf32>
    %1058 = vector.broadcast %936 : vector<8x1xf32> to vector<8x32xf32>
    %1059 = arith.addf %1057, %1058 : vector<8x32xf32>
    %1060 = vector.broadcast %957 : vector<8x1xf32> to vector<8x32xf32>
    %1061 = arith.mulf %1060, %1059 : vector<8x32xf32>
    %1062 = tpu.concatenate %1041, %1061, %784, %1021 in 1 : vector<8x32xf32>, vector<8x32xf32>, vector<8x32xf32>, vector<8x32xf32> -> vector<8x128xf32>
    %c0_353 = arith.constant 0 : index
    %c0_354 = arith.constant 0 : index
    %1063 = vector.load %arg24[%c0_353, %c0_354] : memref<8x128xf32, #tpu.memory_space<vmem>>, vector<8x128xf32>
    tpu.vector_store %arg24[%c0_353, %c0_354], %1062 {strides = array<i32>} : memref<8x128xf32, #tpu.memory_space<vmem>>, vector<8x128xf32>,
    %1064 = tpu.iota {dimensions = array<i32: 1>} : vector<8x128xi32>
    %c0_i32 = arith.constant 0 : i32
    %1065 = vector.broadcast %c0_i32 : i32 to vector<8x128xi32>
    %1066 = arith.cmpi eq, %1064, %1065 : vector<8x128xi32>
    %cst_355 = arith.constant 0.000000e+00 : f32
    %1067 = vector.shape_cast %810 : vector<8x1xf32> to vector<8x1xf32>
    %1068 = vector.broadcast %1067 : vector<8x1xf32> to vector<8x128xf32>
    %1069 = vector.broadcast %cst_355 : f32 to vector<8x128xf32>
    %1070 = arith.select %1066, %1068, %1069 : vector<8x128xi1>, vector<8x128xf32>
    %c1_i32 = arith.constant 1 : i32
    %1071 = vector.broadcast %c1_i32 : i32 to vector<8x128xi32>
    %1072 = arith.cmpi eq, %1064, %1071 : vector<8x128xi32>
    %cst_356 = arith.constant 0.000000e+00 : f32
    %1073 = vector.shape_cast %831 : vector<8x1xf32> to vector<8x1xf32>
    %1074 = vector.broadcast %1073 : vector<8x1xf32> to vector<8x128xf32>
    %1075 = vector.broadcast %cst_356 : f32 to vector<8x128xf32>
    %1076 = arith.select %1072, %1074, %1075 : vector<8x128xi1>, vector<8x128xf32>
    %1077 = arith.addf %1070, %1076 : vector<8x128xf32>
    %c2_i32 = arith.constant 2 : i32
    %1078 = vector.broadcast %c2_i32 : i32 to vector<8x128xi32>
    %1079 = arith.cmpi eq, %1064, %1078 : vector<8x128xi32>
    %cst_357 = arith.constant 0.000000e+00 : f32
    %1080 = vector.shape_cast %852 : vector<8x1xf32> to vector<8x1xf32>
    %1081 = vector.broadcast %1080 : vector<8x1xf32> to vector<8x128xf32>
    %1082 = vector.broadcast %cst_357 : f32 to vector<8x128xf32>
    %1083 = arith.select %1079, %1081, %1082 : vector<8x128xi1>, vector<8x128xf32>
    %1084 = arith.addf %1077, %1083 : vector<8x128xf32>
    %c0_358 = arith.constant 0 : index
    %c0_359 = arith.constant 0 : index
    %1085 = vector.load %arg25[%c0_358, %c0_359] : memref<8x128xf32, #tpu.memory_space<vmem>>, vector<8x128xf32>
    tpu.vector_store %arg25[%c0_358, %c0_359], %1084 {strides = array<i32>} : memref<8x128xf32, #tpu.memory_space<vmem>>, vector<8x128xf32>,
    return
  }
  func.func @transform_0(%arg0: i32) -> (i32, i32, i32) {
    %c0_i32 = arith.constant 0 : i32
    %c0_i32_0 = arith.constant 0 : i32
    %c0_i32_1 = arith.constant 0 : i32
    return %arg0, %c0_i32, %c0_i32_0 : i32, i32, i32
  }
  func.func @transform_1(%arg0: i32) -> (i32, i32, i32) {
    %c0_i32 = arith.constant 0 : i32
    %c0_i32_0 = arith.constant 0 : i32
    %c0_i32_1 = arith.constant 0 : i32
    return %arg0, %c0_i32, %c0_i32_0 : i32, i32, i32
  }
  func.func @transform_2(%arg0: i32) -> (i32, i32) {
    %c0_i32 = arith.constant 0 : i32
    %c0_i32_0 = arith.constant 0 : i32
    %c0_i32_1 = arith.constant 0 : i32
    return %c0_i32, %c0_i32_0 : i32, i32
  }
  func.func @transform_3(%arg0: i32) -> (i32, i32) {
    %c0_i32 = arith.constant 0 : i32
    %c0_i32_0 = arith.constant 0 : i32
    %c0_i32_1 = arith.constant 0 : i32
    return %c0_i32, %c0_i32_0 : i32, i32
  }
  func.func @transform_4(%arg0: i32) -> (i32, i32) {
    %c0_i32 = arith.constant 0 : i32
    %c0_i32_0 = arith.constant 0 : i32
    %c0_i32_1 = arith.constant 0 : i32
    return %c0_i32, %c0_i32_0 : i32, i32
  }
  func.func @transform_5(%arg0: i32) -> (i32, i32) {
    %c0_i32 = arith.constant 0 : i32
    %c0_i32_0 = arith.constant 0 : i32
    %c0_i32_1 = arith.constant 0 : i32
    return %c0_i32, %c0_i32_0 : i32, i32
  }
  func.func @transform_6(%arg0: i32) -> (i32, i32) {
    %c0_i32 = arith.constant 0 : i32
    %c0_i32_0 = arith.constant 0 : i32
    %c0_i32_1 = arith.constant 0 : i32
    return %c0_i32, %c0_i32_0 : i32, i32
  }
  func.func @transform_7(%arg0: i32) -> (i32, i32) {
    %c0_i32 = arith.constant 0 : i32
    %c0_i32_0 = arith.constant 0 : i32
    %c0_i32_1 = arith.constant 0 : i32
    return %c0_i32, %c0_i32_0 : i32, i32
  }
  func.func @transform_8(%arg0: i32) -> (i32, i32) {
    %c0_i32 = arith.constant 0 : i32
    %c0_i32_0 = arith.constant 0 : i32
    %c0_i32_1 = arith.constant 0 : i32
    return %c0_i32, %c0_i32_0 : i32, i32
  }
  func.func @transform_9(%arg0: i32) -> (i32, i32) {
    %c0_i32 = arith.constant 0 : i32
    %c0_i32_0 = arith.constant 0 : i32
    %c0_i32_1 = arith.constant 0 : i32
    return %c0_i32, %c0_i32_0 : i32, i32
  }
  func.func @transform_10(%arg0: i32) -> (i32, i32) {
    %c0_i32 = arith.constant 0 : i32
    %c0_i32_0 = arith.constant 0 : i32
    %c0_i32_1 = arith.constant 0 : i32
    return %c0_i32, %c0_i32_0 : i32, i32
  }
  func.func @transform_11(%arg0: i32) -> (i32, i32) {
    %c0_i32 = arith.constant 0 : i32
    %c0_i32_0 = arith.constant 0 : i32
    %c0_i32_1 = arith.constant 0 : i32
    return %c0_i32, %c0_i32_0 : i32, i32
  }
  func.func @transform_12(%arg0: i32) -> (i32, i32) {
    %c0_i32 = arith.constant 0 : i32
    %c0_i32_0 = arith.constant 0 : i32
    %c0_i32_1 = arith.constant 0 : i32
    return %c0_i32, %c0_i32_0 : i32, i32
  }
  func.func @transform_13(%arg0: i32) -> (i32, i32) {
    %c0_i32 = arith.constant 0 : i32
    %c0_i32_0 = arith.constant 0 : i32
    %c0_i32_1 = arith.constant 0 : i32
    return %c0_i32, %c0_i32_0 : i32, i32
  }
  func.func @transform_14(%arg0: i32) -> (i32, i32, i32) {
    %c0_i32 = arith.constant 0 : i32
    %c0_i32_0 = arith.constant 0 : i32
    %c0_i32_1 = arith.constant 0 : i32
    %c0_i32_2 = arith.constant 0 : i32
    return %c0_i32, %c0_i32_0, %c0_i32_1 : i32, i32, i32
  }
  func.func @transform_15(%arg0: i32) -> (i32, i32) {
    %c0_i32 = arith.constant 0 : i32
    %c0_i32_0 = arith.constant 0 : i32
    %c0_i32_1 = arith.constant 0 : i32
    return %c0_i32, %c0_i32_0 : i32, i32
  }
  func.func @transform_16(%arg0: i32) -> (i32, i32) {
    %c0_i32 = arith.constant 0 : i32
    %c0_i32_0 = arith.constant 0 : i32
    %c0_i32_1 = arith.constant 0 : i32
    return %c0_i32, %c0_i32_0 : i32, i32
  }
  func.func @transform_17(%arg0: i32) -> (i32, i32) {
    %c0_i32 = arith.constant 0 : i32
    %c0_i32_0 = arith.constant 0 : i32
    %c0_i32_1 = arith.constant 0 : i32
    return %c0_i32, %c0_i32_0 : i32, i32
  }
  func.func @transform_18(%arg0: i32) -> (i32, i32) {
    %c0_i32 = arith.constant 0 : i32
    %c0_i32_0 = arith.constant 0 : i32
    %c0_i32_1 = arith.constant 0 : i32
    return %c0_i32, %c0_i32_0 : i32, i32
  }
  func.func @transform_19(%arg0: i32) -> (i32, i32) {
    %c0_i32 = arith.constant 0 : i32
    %c0_i32_0 = arith.constant 0 : i32
    %c0_i32_1 = arith.constant 0 : i32
    return %c0_i32, %c0_i32_0 : i32, i32
  }
  func.func @transform_20(%arg0: i32) -> (i32, i32) {
    %c0_i32 = arith.constant 0 : i32
    %c0_i32_0 = arith.constant 0 : i32
    %c0_i32_1 = arith.constant 0 : i32
    return %c0_i32, %c0_i32_0 : i32, i32
  }
  func.func @transform_21(%arg0: i32) -> (i32, i32) {
    %c0_i32 = arith.constant 0 : i32
    %c0_i32_0 = arith.constant 0 : i32
    %c0_i32_1 = arith.constant 0 : i32
    return %c0_i32, %c0_i32_0 : i32, i32
  }
  func.func @transform_22(%arg0: i32) -> (i32, i32) {
    %c0_i32 = arith.constant 0 : i32
    %c0_i32_0 = arith.constant 0 : i32
    %c0_i32_1 = arith.constant 0 : i32
    return %c0_i32, %c0_i32_0 : i32, i32
  }
  func.func @transform_23(%arg0: i32) -> (i32, i32) {
    %c0_i32 = arith.constant 0 : i32
    %c0_i32_0 = arith.constant 0 : i32
    return %arg0, %c0_i32 : i32, i32
  }
  func.func @transform_24(%arg0: i32) -> (i32, i32) {
    %c0_i32 = arith.constant 0 : i32
    %c0_i32_0 = arith.constant 0 : i32
    return %arg0, %c0_i32 : i32, i32
  }
}

</mosaic_0001>

<bundles_post_ra>
// kernel: multiview_forward.1
= control target key start
LH: loop header
LB: loop body
LE: loop exit
PB: predicated region body
PF: predicated region fallthrough
CT: control target
= control target key end

     0   :  { %s5287_s0 = inlined_call_operand.vmem [shape: f32[16,8,32], index: 0, kind: input, shape index: {}]   ;;  %s5288_s1 = inlined_call_operand.vmem [shape: f32[16,8,32], index: 1, kind: input, shape index: {}]   ;;  %s5289_s2 = inlined_call_operand.vmem [shape: bf16[32,64], index: 2, kind: input, shape index: {}]   ;;  %s5290_s3 = inlined_call_operand.vmem [shape: f32[1,64], index: 3, kind: input, shape index: {}]   ;;  %s5291_s4 = inlined_call_operand.vmem [shape: bf16[32,64], index: 4, kind: input, shape index: {}]   ;;  %s5292_s5 = inlined_call_operand.vmem [shape: f32[1,64], index: 5, kind: input, shape index: {}]   ;;  %s5293_s6 = inlined_call_operand.vmem [shape: f32[3,32], index: 6, kind: input, shape index: {}]   ;;  %s5294_s7 = inlined_call_operand.vmem [shape: f32[3,1], index: 7, kind: input, shape index: {}]   ;;  %s5295_s8 = inlined_call_operand.vmem [shape: bf16[32,32], index: 8, kind: input, shape index: {}]   ;;  %s5296_s9 = inlined_call_operand.vmem [shape: bf16[32,32], index: 9, kind: input, shape index: {}]   ;;  %s5297_s10 = inlined_call_operand.vmem [shape: bf16[32,64], index: 10, kind: input, shape index: {}]   ;;  %s5298_s11 = inlined_call_operand.vmem [shape: f32[4,32], index: 11, kind: input, shape index: {}]   ;;  %s5299_s12 = inlined_call_operand.vmem [shape: f32[4,32], index: 12, kind: input, shape index: {}]   ;;  %s5300_s13 = inlined_call_operand.vmem [shape: f32[4,1], index: 13, kind: input, shape index: {}]   ;;  %s5301_s14 = inlined_call_operand.vmem [shape: bf16[3,32,16], index: 14, kind: input, shape index: {}]   ;;  %s5302_s15 = inlined_call_operand.vmem [shape: f32[3,16], index: 15, kind: input, shape index: {}]   ;;  %s5303_s16 = inlined_call_operand.vmem [shape: f32[3,16], index: 16, kind: input, shape index: {}]   ;;  %s5304_s17 = inlined_call_operand.vmem [shape: f32[3,1], index: 17, kind: input, shape index: {}]   ;;  %s5305_s18 = inlined_call_operand.vmem [shape: f32[6,32], index: 18, kind: input, shape index: {}]   ;;  %s5306_s19 = inlined_call_operand.vmem [shape: f32[6,32], index: 19, kind: input, shape index: {}]   ;;  %s5307_s20 = inlined_call_operand.vmem [shape: f32[6,32], index: 20, kind: input, shape index: {}]   ;;  %s5308_s21 = inlined_call_operand.vmem [shape: f32[6,1], index: 21, kind: input, shape index: {}]   ;;  %s5309_s22 = inlined_call_operand.vmem [shape: f32[1,32], index: 22, kind: input, shape index: {}]   ;;  %s5310_s23 = inlined_call_operand.vmem [shape: f32[16,128], index: 23, kind: output, shape index: {0}]   ;;  %s5311_s24 = inlined_call_operand.vmem [shape: f32[16,128], index: 24, kind: output, shape index: {1}]  }
   0x1   :  { %5316 = sst [smem:[#allocation8_spill]] %s5287_s0 }
   0x2   :  { %5317 = sst [smem:[#allocation9_spill]] %s5288_s1 }
   0x3   :  { %5318 = sst [smem:[#allocation10_spill]] %s5289_s2 }
   0x4   :  { %5319 = sst [smem:[#allocation11_spill]] %s5290_s3 }
   0x5   :  { %5320 = sst [smem:[#allocation12_spill]] %s5291_s4 }
   0x6   :  { %5321 = sst [smem:[#allocation13_spill]] %s5292_s5  ;;  %s4338_s5 = smov 0  }
   0x7   :  { %5322 = sst [smem:[#allocation14_spill]] %s5293_s6 }
   0x8   :  { %5323 = sst [smem:[#allocation15_spill]] %s5294_s7 }
   0x9   :  { %5324 = sst [smem:[#allocation16_spill]] %s5295_s8 }
   0xa   :  { %5325 = sst [smem:[#allocation17_spill]] %s5311_s24 }
   0xb LB: > { %5326 = sst [smem:[#allocation7_spill]] %s4205_s5  ;;  %s4344_s26 = sadd.s32 4294967295, %s4205_s5   ;;  %s4205_s5 = sphi %s4338_s5, %s35_s5  }
   0xc   : > { %p3632_p0 = scmp.ge.s32.totalorder %s4205_s5, 1  ;;  %p677_p1 = scmp.lt.s32.totalorder %s4205_s5, 3 }
   0xe   : > { %p678_p2 = pnand %p3632_p0, %p677_p1 }
   0xf   : > { %s5327_s6 = sld [smem:[#allocation10_spill]] (!%p678_p2)  ;;  %s3633_s3 = sshll.u32 (!%p678_p2), %s4344_s26, 3 }
  0x10   : > { %681 = sbr.rel (%p678_p2) target bundleno = 2838 (0xb16), region = 112  ;;  %s5328_s0 = sld [smem:[#allocation12_spill]] (!%p678_p2) }
  0x11   : > { %p752_p3 = scmp.lt.s32.totalorder (!%p678_p2), %s3633_s3, 15  ;;  %s5329_s29 = sld [smem:[#allocation8_spill]] (!%p678_p2) }
  0x12   : > { %s5330_s8 = sld [smem:[#allocation9_spill]] (!%p678_p2)  ;;  %s4209_s24 = smov (!%p678_p2), 32  }
  0x13   : > { %s5331_s25 = sld [smem:[#allocation14_spill]] (!%p678_p2)  ;;  %s4210_s27 = smov (!%p678_p2), 96  }
  0x14   : > { %s5333_s1 = sld [smem:[#allocation13_spill]] (!%p678_p2)  ;;  %p763_p4 = scmp.lt.s32.totalorder (!%p678_p2), %s4344_s26, 1 }
  0x15   : > { %v4021_v0 = vld [vmem:[%s5327_s6 + $0x8] sm:$0xff]   ;;  %v4207_v1 = vmov 0.0   ;;  %v4023_v3 = vld [vmem:[%s5327_s6] sm:$0xff]   ;;  %vm4208_vm0 = vmmov 0   ;;  %s5339_s3 = smov (!%p752_p3, %s3633_s3), 15  ;;  %vm801_vm1 = vcmask 261120   ;;  %v852_v31 = vlaneseq }
  0x16   : > { %3829 = vmatprep.subr.bf16.mxu0 %v4207_v1  ;;  %3837 = vmatprep.subr.bf16.mxu1 %v4207_v1  ;;  %v4022_v2 = vld [vmem:[%s5328_s0 + $0x8] sm:$0xff]   ;;  %v4024_v4 = vld [vmem:[%s5328_s0] sm:$0xff]   ;;  %s3634_s4 = sshll.u32 %s5339_s3, 3  ;;  %vm1033_vm2 = vcmask 253952   ;;  %vm3009_vm3 = vcmask 130048   ;;  %s5341_s26 = smov (!%p763_p4, %s4344_s26), 1 }
  0x17   : > { %3830 = vmatpush3.bf16.msra.mxu0 %v4021_v0  ;;  %3833 = vmatprep.mubr.msk.bf16.mxu0 %vm4208_vm0, %v4207_v1  ;;  %v4025_v5 = vld [vmem:[%s5327_s6 + $0x8] sm:$0xff]   ;;  %s4376_s7 = scalar_lea.vmem %s5329_s29, %s3634_s4  ;;  %v4027_v13 = vld [vmem:[%s5327_s6] sm:$0xff]   ;;  %v4514_v36 = vshrl.u32 %v852_v31, 7  ;;  %s5334_s29 = sld [smem:[#allocation15_spill]]  ;;  %vm3501_vm4 = vcmask 523264   ;;  %vm3503_vm5 = vcmask 785408  }
  0x18   : > { %3838 = vmatpush3.bf16.msra.mxu1 %v4022_v2  ;;  %3831 = vmatprep.subr.bf16.mxu0 %v4207_v1  ;;  %s4381_s5 = scalar_lea.vmem %s5330_s8, %s3634_s4  ;;  %v4026_v6 = vld [vmem:[%s5328_s0 + $0x8] sm:$0xff]   ;;  %v4388_v7 = vld [vmem:[%s4376_s7] sm:$0xff]  ;;  %v4420_v15 = vld [vmem:[%s4376_s7 + $0x10] sm:$0xff]  ;;  %s5332_s8 = sld [smem:[#allocation11_spill]] }
  0x19   : > { %3839 = vmatprep.subr.bf16.mxu1 %v4207_v1  ;;  %3841 = vmatprep.mubr.msk.bf16.mxu1 %vm4208_vm0, %v4207_v1  ;;  %v4391_v8 = vld [vmem:[%s4381_s5] sm:$0xff]  ;;  %v4394_v9 = vld [vmem:[%s4376_s7 + $0x8] sm:$0xff]  ;;  %v778_v10 = vpack.c.bf16 %v4388_v7, %v4388_v7  ;;  %1038 = vst.msk [vmem:[#allocation5] sm:$0x1] %vm1033_vm2, %v4388_v7  ;;  %1486 = vst.msk [vmem:[#allocation5 + $0x2] sm:$0x1] %vm1033_vm2, %v4420_v15  ;;  %v1268_v27 = vpack.c.bf16 %v4420_v15, %v4420_v15 }
  0x1a   : > { %v912_v11 = vpack.c.bf16 %v4391_v8, %v4391_v8  ;;  %1039 = vst.msk [vmem:[#allocation6] sm:$0x1] %vm1033_vm2, %v4391_v8  ;;  %1262 = vst.msk [vmem:[#allocation5 + $0x1] sm:$0x1] %vm1033_vm2, %v4394_v9  ;;  %v4407_v12 = vld [vmem:[%s4381_s5 + $0x8] sm:$0xff]  ;;  %v4028_v14 = vld [vmem:[%s5328_s0] sm:$0xff]   ;;  %v1044_v17 = vpack.c.bf16 %v4394_v9, %v4394_v9 }
  0x1b   : > { %3832 = vmatpush3.bf16.msra.mxu0 %v4023_v3  ;;  %1263 = vst.msk [vmem:[#allocation6 + $0x1] sm:$0x1] %vm1033_vm2, %v4407_v12  ;;  %v4427_v16 = vld [vmem:[%s4381_s5 + $0x10] sm:$0xff]  ;;  %v1151_v18 = vpack.c.bf16 %v4407_v12, %v4407_v12  ;;  %v4029_v19 = vld [vmem:[%s5327_s6 + $0x8] sm:$0xff]   ;;  %v4448_v21 = vld [vmem:[%s4376_s7 + $0x18] sm:$0xff]  ;;  %v4543_v43 = vsub.s32 2, %v4514_v36 }
  0x1c   : > { %3840 = vmatpush3.bf16.msra.mxu1 %v4024_v4  ;;  %3845 = vmatprep.subr.bf16.mxu0 %v4207_v1  ;;  %1487 = vst.msk [vmem:[#allocation6 + $0x2] sm:$0x1] %vm1033_vm2, %v4427_v16  ;;  %v4030_v20 = vld [vmem:[%s5328_s0 + $0x8] sm:$0xff]   ;;  %v4451_v22 = vld [vmem:[%s4381_s5 + $0x18] sm:$0xff]  ;;  %1710 = vst.msk [vmem:[#allocation5 + $0x3] sm:$0x1] %vm1033_vm2, %v4448_v21  ;;  %v1375_v28 = vpack.c.bf16 %v4427_v16, %v4427_v16  ;;  %v1492_v37 = vpack.c.bf16 %v4448_v21, %v4448_v21 }
  0x1d   : > { %3853 = vmatprep.subr.bf16.mxu1 %v4207_v1  ;;  %1711 = vst.msk [vmem:[#allocation6 + $0x3] sm:$0x1] %vm1033_vm2, %v4451_v22  ;;  %v4031_v23 = vld [vmem:[%s5327_s6] sm:$0xff]   ;;  %v4033_v29 = vld [vmem:[%s5327_s6 + $0x8] sm:$0xff]   ;;  %v1599_v38 = vpack.c.bf16 %v4451_v22, %v4451_v22  ;;  %v4528_v40 = vld [vmem:[%s4376_s7 + $0x30] sm:$0xff]  ;;  %s5335_s4 = sld [smem:[#allocation16_spill]] }
  0x1e   : > { %3834 = vmatmul.mubr.msk.bf16.vlgmr.msra.gmra.mxu0 %vm801_vm1, %v778_v10  ;;  %v4032_v24 = vld [vmem:[%s5328_s0] sm:$0xff]   ;;  %v4034_v30 = vld [vmem:[%s5328_s0 + $0x8] sm:$0xff]   ;;  %v4531_v41 = vld [vmem:[%s4381_s5 + $0x30] sm:$0xff]  ;;  %2382 = vst.msk [vmem:[#allocation5 + $0x6] sm:$0x1] %vm1033_vm2, %v4528_v40  ;;  %v2164_v62 = vpack.c.bf16 %v4528_v40, %v4528_v40  ;;  %s3637_s28 = sshll.u32 %s5341_s26, 3 }
  0x1f   : > { %3842 = vmatmul.mubr.msk.bf16.vlgmr.msra.gmra.mxu1 %vm801_vm1, %v912_v11  ;;  %3846 = vmatpush3.bf16.msra.mxu0 %v4025_v5  ;;  %v4472_v25 = vld [vmem:[%s4376_s7 + $0x20] sm:$0xff]  ;;  %v4497_v33 = vld [vmem:[%s4376_s7 + $0x28] sm:$0xff]  ;;  %2383 = vst.msk [vmem:[#allocation6 + $0x6] sm:$0x1] %vm1033_vm2, %v4531_v41  ;;  %v4554_v46 = vld [vmem:[%s4376_s7 + $0x38] sm:$0xff]  ;;  %v2271_v63 = vpack.c.bf16 %v4531_v41, %v4531_v41  ;;  %s5336_s30 = sld [smem:[#allocation17_spill]] }
  0x20   : > { %3854 = vmatpush3.bf16.msra.mxu1 %v4026_v6  ;;  %3847 = vmatprep.subr.bf16.mxu0 %v4207_v1  ;;  %v4475_v26 = vld [vmem:[%s4381_s5 + $0x20] sm:$0xff]  ;;  %1934 = vst.msk [vmem:[#allocation5 + $0x4] sm:$0x1] %vm1033_vm2, %v4472_v25  ;;  %2158 = vst.msk [vmem:[#allocation5 + $0x5] sm:$0x1] %vm1033_vm2, %v4497_v33  ;;  %v4504_v34 = vld [vmem:[%s4381_s5 + $0x28] sm:$0xff]  ;;  %v1716_v52 = vpack.c.bf16 %v4472_v25, %v4472_v25  ;;  %v1940_v56 = vpack.c.bf16 %v4497_v33, %v4497_v33 }
  0x21   : > { %3855 = vmatprep.subr.bf16.mxu1 %v4207_v1  ;;  %3849 = vmatprep.mubr.msk.bf16.mxu0 %vm4208_vm0, %v4207_v1  ;;  %1935 = vst.msk [vmem:[#allocation6 + $0x4] sm:$0x1] %vm1033_vm2, %v4475_v26  ;;  %v4035_v32 = vld [vmem:[%s5327_s6] sm:$0xff]   ;;  %2159 = vst.msk [vmem:[#allocation6 + $0x5] sm:$0x1] %vm1033_vm2, %v4504_v34  ;;  %v4037_v39 = vld [vmem:[%s5327_s6 + $0x8] sm:$0xff]   ;;  %v1823_v53 = vpack.c.bf16 %v4475_v26, %v4475_v26  ;;  %v2047_v57 = vpack.c.bf16 %v4504_v34, %v4504_v34 }
  0x22   : > { %3857 = vmatprep.mubr.msk.bf16.mxu1 %vm4208_vm0, %v4207_v1  ;;  %v4036_v35 = vld [vmem:[%s5328_s0] sm:$0xff]   ;;  %v4038_v42 = vld [vmem:[%s5328_s0 + $0x8] sm:$0xff]   ;;  %v4557_v47 = vld [vmem:[%s4381_s5 + $0x38] sm:$0xff]  ;;  %2606 = vst.msk [vmem:[#allocation5 + $0x7] sm:$0x1] %vm1033_vm2, %v4554_v46  ;;  %v2388_v5 = vpack.c.bf16 %v4554_v46, %v4554_v46 }
  0x23   : > { %3848 = vmatpush3.bf16.msra.mxu0 %v4027_v13  ;;  %v4039_v44 = vld [vmem:[%s5327_s6] sm:$0xff]   ;;  %2607 = vst.msk [vmem:[#allocation6 + $0x7] sm:$0x1] %vm1033_vm2, %v4557_v47  ;;  %v4041_v50 = vld [vmem:[%s5327_s6 + $0x8] sm:$0xff]   ;;  %v2495_v6 = vpack.c.bf16 %v4557_v47, %v4557_v47 }
  0x24   : > { %3856 = vmatpush3.bf16.msra.mxu1 %v4028_v14  ;;  %3861 = vmatprep.subr.bf16.mxu0 %v4207_v1  ;;  %v4040_v45 = vld [vmem:[%s5328_s0] sm:$0xff]   ;;  %v4042_v51 = vld [vmem:[%s5328_s0 + $0x8] sm:$0xff]  }
  0x25   : > { %3869 = vmatprep.subr.bf16.mxu1 %v4207_v1  ;;  %v4562_v48 = vld [vmem:[%s5331_s25] sm:$0x7]  ;;  %v4045_v58 = vld [vmem:[%s5327_s6 + $0x8] sm:$0xff]   ;;  %s770_s25 = scalar_lea.vmem %s5336_s30, %s3637_s28 }
  0x26   : > { %3850 = vmatmul.mubr.msk.bf16.vlgmr.msra.gmra.mxu0 %vm801_vm1, %v1044_v17  ;;  %v868_v49 = vrot.slane %v4562_v48, %v4543_v43  ;;  %v4043_v54 = vld [vmem:[%s5327_s6] sm:$0xff]   ;;  %v4046_v59 = vld [vmem:[%s5328_s0 + $0x8] sm:$0xff]  }
  0x27   : > { %3858 = vmatmul.mubr.msk.bf16.vlgmr.msra.gmra.mxu1 %vm801_vm1, %v1151_v18  ;;  %3862 = vmatpush3.bf16.msra.mxu0 %v4029_v19  ;;  %v4044_v55 = vld [vmem:[%s5328_s0] sm:$0xff]   ;;  %v4049_v0 = vld [vmem:[%s5327_s6 + $0x8] sm:$0xff]  }
  0x28   : > { %3870 = vmatpush3.bf16.msra.mxu1 %v4030_v20  ;;  %3863 = vmatprep.subr.bf16.mxu0 %v4207_v1  ;;  %v4047_v60 = vld [vmem:[%s5327_s6] sm:$0xff]   ;;  %v4050_v2 = vld [vmem:[%s5328_s0 + $0x8] sm:$0xff]  }
  0x29   : > { %3871 = vmatprep.subr.bf16.mxu1 %v4207_v1  ;;  %3865 = vmatprep.mubr.msk.bf16.mxu0 %vm4208_vm0, %v4207_v1  ;;  %v4048_v61 = vld [vmem:[%s5328_s0] sm:$0xff]  }
  0x2a   : > { %3873 = vmatprep.mubr.msk.bf16.mxu1 %vm4208_vm0, %v4207_v1  ;;  %870 = vrot.lane.b32.xlu0 %v868_v49, %s4209_s24  ;;  %v4051_v3 = vld [vmem:[%s5327_s6] sm:$0xff]  }
  0x2b   : > { %3864 = vmatpush3.bf16.msra.mxu0 %v4031_v23  ;;  %v4052_v4 = vld [vmem:[%s5328_s0] sm:$0xff]  }
  0x2c   : > { %3872 = vmatpush3.bf16.msra.mxu1 %v4032_v24  ;;  %3877 = vmatprep.subr.bf16.mxu0 %v4207_v1  ;;  %v4670_v10 = vld [vmem:[%s5332_s8] ss:$0 sm:$0xff] }
  0x2d   : > { %3885 = vmatprep.subr.bf16.mxu1 %v4207_v1  ;;  %v4675_v11 = vld [vmem:[%s5333_s1] ss:$0 sm:$0xff]  ;;  %s4212_s1 = smov 64  }
  0x2e   : > { %3866 = vmatmul.mubr.msk.bf16.vlgmr.msra.gmra.mxu0 %vm801_vm1, %v1268_v27 }
  0x2f   : > { %3874 = vmatmul.mubr.msk.bf16.vlgmr.msra.gmra.mxu1 %vm801_vm1, %v1375_v28  ;;  %3878 = vmatpush3.bf16.msra.mxu0 %v4033_v29 }
  0x30   : > { %3886 = vmatpush3.bf16.msra.mxu1 %v4034_v30  ;;  %3879 = vmatprep.subr.bf16.mxu0 %v4207_v1 }
  0x31   : > { %3887 = vmatprep.subr.bf16.mxu1 %v4207_v1  ;;  %3881 = vmatprep.mubr.msk.bf16.mxu0 %vm4208_vm0, %v4207_v1 }
  0x32   : > { %3889 = vmatprep.mubr.msk.bf16.mxu1 %vm4208_vm0, %v4207_v1 }
  0x33   : > { %3880 = vmatpush3.bf16.msra.mxu0 %v4035_v32 }
  0x34   : > { %3888 = vmatpush3.bf16.msra.mxu1 %v4036_v35  ;;  %3893 = vmatprep.subr.bf16.mxu0 %v4207_v1 }
  0x35   : > { %3901 = vmatprep.subr.bf16.mxu1 %v4207_v1 }
  0x36   : > { %3882 = vmatmul.mubr.msk.bf16.vlgmr.msra.gmra.mxu0 %vm801_vm1, %v1492_v37 }
  0x37   : > { %3890 = vmatmul.mubr.msk.bf16.vlgmr.msra.gmra.mxu1 %vm801_vm1, %v1599_v38  ;;  %3894 = vmatpush3.bf16.msra.mxu0 %v4037_v39 }
  0x38   : > { %3902 = vmatpush3.bf16.msra.mxu1 %v4038_v42  ;;  %3895 = vmatprep.subr.bf16.mxu0 %v4207_v1 }
  0x39   : > { %3903 = vmatprep.subr.bf16.mxu1 %v4207_v1  ;;  %3897 = vmatprep.mubr.msk.bf16.mxu0 %vm4208_vm0, %v4207_v1 }
  0x3a   : > { %3905 = vmatprep.mubr.msk.bf16.mxu1 %vm4208_vm0, %v4207_v1 }
  0x3b   : > { %3896 = vmatpush3.bf16.msra.mxu0 %v4039_v44 }
  0x3c   : > { %3904 = vmatpush3.bf16.msra.mxu1 %v4040_v45  ;;  %3909 = vmatprep.subr.bf16.mxu0 %v4207_v1 }
  0x3d   : > { %3917 = vmatprep.subr.bf16.mxu1 %v4207_v1 }
  0x3e   : > { %3898 = vmatmul.mubr.msk.bf16.vlgmr.msra.gmra.mxu0 %vm801_vm1, %v1716_v52 }
  0x3f   : > { %3906 = vmatmul.mubr.msk.bf16.vlgmr.msra.gmra.mxu1 %vm801_vm1, %v1823_v53  ;;  %3910 = vmatpush3.bf16.msra.mxu0 %v4041_v50 }
  0x40   : > { %3918 = vmatpush3.bf16.msra.mxu1 %v4042_v51  ;;  %3911 = vmatprep.subr.bf16.mxu0 %v4207_v1 }
  0x41   : > { %3919 = vmatprep.subr.bf16.mxu1 %v4207_v1  ;;  %3913 = vmatprep.mubr.msk.bf16.mxu0 %vm4208_vm0, %v4207_v1 }
  0x42   : > { %3921 = vmatprep.mubr.msk.bf16.mxu1 %vm4208_vm0, %v4207_v1 }
  0x43   : > { %3912 = vmatpush3.bf16.msra.mxu0 %v4043_v54 }
  0x44   : > { %3920 = vmatpush3.bf16.msra.mxu1 %v4044_v55  ;;  %3925 = vmatprep.subr.bf16.mxu0 %v4207_v1 }
  0x45   : > { %3933 = vmatprep.subr.bf16.mxu1 %v4207_v1 }
  0x46   : > { %3914 = vmatmul.mubr.msk.bf16.vlgmr.msra.gmra.mxu0 %vm801_vm1, %v1940_v56 }
  0x47   : > { %3922 = vmatmul.mubr.msk.bf16.vlgmr.msra.gmra.mxu1 %vm801_vm1, %v2047_v57  ;;  %3926 = vmatpush3.bf16.msra.mxu0 %v4045_v58 }
  0x48   : > { %3934 = vmatpush3.bf16.msra.mxu1 %v4046_v59  ;;  %3927 = vmatprep.subr.bf16.mxu0 %v4207_v1 }
  0x49   : > { %3935 = vmatprep.subr.bf16.mxu1 %v4207_v1  ;;  %3929 = vmatprep.mubr.msk.bf16.mxu0 %vm4208_vm0, %v4207_v1 }
  0x4a   : > { %3937 = vmatprep.mubr.msk.bf16.mxu1 %vm4208_vm0, %v4207_v1 }
  0x4b   : > { %3928 = vmatpush3.bf16.msra.mxu0 %v4047_v60 }
  0x4c   : > { %3936 = vmatpush3.bf16.msra.mxu1 %v4048_v61  ;;  %3941 = vmatprep.subr.bf16.mxu0 %v4207_v1 }
  0x4d   : > { %3949 = vmatprep.subr.bf16.mxu1 %v4207_v1 }
  0x4e   : > { %3930 = vmatmul.mubr.msk.bf16.vlgmr.msra.gmra.mxu0 %vm801_vm1, %v2164_v62 }
  0x4f   : > { %3938 = vmatmul.mubr.msk.bf16.vlgmr.msra.gmra.mxu1 %vm801_vm1, %v2271_v63  ;;  %3942 = vmatpush3.bf16.msra.mxu0 %v4049_v0 }
  0x50   : > { %3950 = vmatpush3.bf16.msra.mxu1 %v4050_v2  ;;  %3943 = vmatprep.subr.bf16.mxu0 %v4207_v1 }
  0x51   : > { %3951 = vmatprep.subr.bf16.mxu1 %v4207_v1  ;;  %3945 = vmatprep.mubr.msk.bf16.mxu0 %vm4208_vm0, %v4207_v1 }
  0x52   : > { %3953 = vmatprep.mubr.msk.bf16.mxu1 %vm4208_vm0, %v4207_v1 }
  0x53   : > { %3944 = vmatpush3.bf16.msra.mxu0 %v4051_v3 }
  0x54   : > { %3952 = vmatpush3.bf16.msra.mxu1 %v4052_v4  ;;  %3957 = vmatprep.subr.bf16.mxu0 %v4207_v1 }
  0x55   : > { %3965 = vmatprep.subr.bf16.mxu1 %v4207_v1 }
  0x56   : > { %3946 = vmatmul.mubr.msk.bf16.vlgmr.msra.gmra.mxu0 %vm801_vm1, %v2388_v5 }
  0x57   : > { %3954 = vmatmul.mubr.msk.bf16.vlgmr.msra.gmra.mxu1 %vm801_vm1, %v2495_v6  ;;  %3961 = vmatprep.mubr.msk.bf16.mxu0 %vm4208_vm0, %v4207_v1 }
  0x58   : > { %3969 = vmatprep.mubr.msk.bf16.mxu1 %vm4208_vm0, %v4207_v1 }
  0xde   : > { %v839_v13 = vpop.f32.mrf.mxu0 }
  0xdf   : > { %v972_v14 = vpop.f32.mrf.mxu1  ;;  %v4678_v17 = vadd.f32 %v4670_v10, %v839_v13 }
  0xe0   : > { %v4681_v18 = vadd.f32 %v4675_v11, %v972_v14  ;;  %v3835_v19 = vpop.f32.mrf.mxu0 }
  0xe1   : > { %v3843_v20 = vpop.f32.mrf.mxu1  ;;  %v3643_v23 = vmul.f32 -1.442695, %v4678_v17 }
  0xe2   : > { %v3648_v24 = vmul.f32 -1.442695, %v4681_v18  ;;  %v842_v27 = vpop.f32.mrf.mxu0 }
  0xe3   : > { %v975_v28 = vpop.f32.mrf.mxu1  ;;  %4065 = vpow2.f32 %v3643_v23 }
  0xe4   : > { %4067 = vpow2.f32 %v3648_v24  ;;  %v3836_v29 = vpop.f32.mrf.mxu0  ;;  %v4708_v28 = vsub.s32 0, %v4514_v36 }
  0xe5   : > { %v3844_v30 = vpop.f32.mrf.mxu1 }
  0xe6   : > { %v1098_v32 = vpop.f32.mrf.mxu0 }
  0xe7   : > { %v1205_v35 = vpop.f32.mrf.mxu1  ;;  %v4686_v39 = vadd.f32 %v4670_v10, %v1098_v32  ;;  %v4711_v32 = vsub.s32 1, %v4514_v36 }
  0xe8   : > { %v3851_v37 = vpop.f32.mrf.mxu0  ;;  %v4689_v50 = vadd.f32 %v4675_v11, %v1205_v35 }
  0xe9   : > { %v3859_v38 = vpop.f32.mrf.mxu1  ;;  %v3654_v51 = vmul.f32 -1.442695, %v4686_v39 }
  0xea   : > { %v1101_v42 = vpop.f32.mrf.mxu0  ;;  %v3658_v60 = vmul.f32 -1.442695, %v4689_v50 }
  0xeb   : > { %v1208_v44 = vpop.f32.mrf.mxu1  ;;  %4069 = vpow2.f32 %v3654_v51  ;;  %v4715_v42 = vrot.slane %v4562_v48, %v4708_v28 }
  0xec   : > { %v3852_v45 = vpop.f32.mrf.mxu0 }
  0xed   : > { %v3860_v49 = vpop.f32.mrf.mxu1 }
  0xee   : > { %v4692_v52 = vpop.f32.mrf.mxu0  ;;  %v4723_v49 = vpop.permute.xlu0 %870 }
  0xef   : > { %v1429_v53 = vpop.f32.mrf.mxu1 }
  0xf0   : > { %v4695_v54 = vadd.f32 %v4675_v11, %v1429_v53  ;;  %v4066_v55 = vpop.eup %4065  ;;  %v3867_v56 = vpop.f32.mrf.mxu0 }
  0xf1   : > { %v3875_v57 = vpop.f32.mrf.mxu1  ;;  %v4068_v58 = vpop.eup %4067  ;;  %v848_v59 = vadd.f32 1.0, %v4066_v55 }
  0xf2   : > { %v981_v61 = vadd.f32 1.0, %v4068_v58  ;;  %v3668_v62 = vmul.f32 -1.442695, %v4695_v54  ;;  %v1325_v63 = vpop.f32.mrf.mxu0  ;;  %v4727_v57 = vrot.slane %v4562_v48, %v4711_v32 }
  0xf3   : > { %v1432_v0 = vpop.f32.mrf.mxu1  ;;  %4071 = vrcp.f32 %v848_v59 }
  0xf4   : > { %4073 = vrcp.f32 %v981_v61  ;;  %v3868_v2 = vpop.f32.mrf.mxu0 }
  0xf5   : > { %v3876_v3 = vpop.f32.mrf.mxu1  ;;  %4075 = vpow2.f32 %v3658_v60 }
  0xf6   : > { %4077 = vpow2.f32 %v3668_v62  ;;  %v1546_v4 = vpop.f32.mrf.mxu0 }
  0xf7   : > { %v1653_v5 = vpop.f32.mrf.mxu1  ;;  %v4700_v6 = vadd.f32 %v4670_v10, %v1546_v4 }
  0xf8   : > { %v4703_v13 = vadd.f32 %v4675_v11, %v1653_v5  ;;  %v3883_v14 = vpop.f32.mrf.mxu0  ;;  %v4070_v38 = vpop.eup %4069 }
  0xf9   : > { %v3891_v19 = vpop.f32.mrf.mxu1  ;;  %v3674_v20 = vmul.f32 -1.442695, %v4700_v6 }
  0xfa   : > { %v3678_v23 = vmul.f32 -1.442695, %v4703_v13  ;;  %v1549_v24 = vpop.f32.mrf.mxu0 }
  0xfb   : > { %v1656_v27 = vpop.f32.mrf.mxu1  ;;  %4079 = vpow2.f32 %v3674_v20 }
  0xfc   : > { %v3884_v29 = vpop.f32.mrf.mxu0  ;;  %4081 = vpow2.f32 %v3678_v23 }
  0xfd   : > { %v3892_v30 = vpop.f32.mrf.mxu1 }
  0xfe   : > { %v1770_v35 = vpop.f32.mrf.mxu0 }
  0xff   : > { %v1877_v37 = vpop.f32.mrf.mxu1  ;;  %v4718_v44 = vadd.f32 %v4670_v10, %v1770_v35 }
 0x100   : > { %v4721_v45 = vadd.f32 %v4675_v11, %v1877_v37  ;;  %v4072_v51 = vpop.eup %4071  ;;  %v3899_v53 = vpop.f32.mrf.mxu0 }
 0x101   : > { %v3907_v55 = vpop.f32.mrf.mxu1  ;;  %v4074_v56 = vpop.eup %4073  ;;  %v851_v58 = vmul.f32 %v4072_v51, %v4678_v17  ;;  %v3684_v59 = vmul.f32 -1.442695, %v4718_v44  ;;  %v1107_v17 = vadd.f32 1.0, %v4070_v38 }
 0x102   : > { %v3688_v60 = vmul.f32 -1.442695, %v4721_v45  ;;  %v4076_v61 = vpop.eup %4075  ;;  %v984_v62 = vmul.f32 %v4074_v56, %v4681_v18  ;;  %v1773_v63 = vpop.f32.mrf.mxu0  ;;  %v4751_v56 = vadd.f32 %v4670_v10, %v4692_v52 }
 0x103   : > { %v1880_v0 = vpop.f32.mrf.mxu1  ;;  %v4078_v2 = vpop.eup %4077  ;;  %4083 = vpow2.f32 %v3684_v59  ;;  %v873_v3 = vmul.f32 %v4723_v49, %v851_v58  ;;  %v856_v4 = vmul.f32 %v4715_v42, %v851_v58  ;;  %v1214_v20 = vadd.f32 1.0, %v4076_v61 }
 0x104   : > { %v1438_v5 = vadd.f32 1.0, %v4078_v2  ;;  %4085 = vpow2.f32 %v3688_v60  ;;  %v3900_v48 = vpop.f32.mrf.mxu0  ;;  %v989_v18 = vmul.f32 %v4727_v57, %v984_v62  ;;  %v998_v30 = vmul.f32 %v984_v62, %v4723_v49 }
 0x105   : > { %v3908_v14 = vpop.f32.mrf.mxu1  ;;  %875 = vrot.lane.b32.xlu1 %v873_v3, %s4210_s27  ;;  %v857_v19 = vsel %vm801_vm1, %v856_v4, 0.0  ;;  %v3664_v2 = vmul.f32 -1.442695, %v4751_v56 }
 0x106   : > { %4087 = vrcp.f32 %v1438_v5  ;;  %858 = vadd.xlane.f32.xlu0 %v857_v19  ;;  %v1994_v24 = vpop.f32.mrf.mxu0  ;;  %v990_v53 = vsel %vm801_vm1, %v989_v18, 0.0 }
 0x107   : > { %v2101_v23 = vpop.f32.mrf.mxu1  ;;  %v4742_v29 = vadd.f32 %v4670_v10, %v1994_v24  ;;  %4089 = vrcp.f32 %v1107_v17 }
 0x108   : > { %v4739_v27 = vadd.f32 %v4675_v11, %v2101_v23  ;;  %v3915_v35 = vpop.f32.mrf.mxu0  ;;  %v4080_v55 = vpop.eup %4079  ;;  %4091 = vrcp.f32 %v1214_v20 }
 0x109   : > { %v3923_v37 = vpop.f32.mrf.mxu1  ;;  %v3694_v51 = vmul.f32 -1.442695, %v4742_v29  ;;  %1000 = vrot.lane.b32.xlu1 %v998_v30, %s4210_s27  ;;  %v4082_v60 = vpop.eup %4081  ;;  %v1555_v61 = vadd.f32 1.0, %v4080_v55 }
 0x10a   : > { %v3698_v38 = vmul.f32 -1.442695, %v4739_v27  ;;  %991 = vadd.xlane.f32.xlu0 %v990_v53  ;;  %v1997_v59 = vpop.f32.mrf.mxu0  ;;  %v1662_v62 = vadd.f32 1.0, %v4082_v60 }
 0x10b   : > { %v2104_v58 = vpop.f32.mrf.mxu1 }
 0x10c   : > { %4093 = vpow2.f32 %v3698_v38  ;;  %v3916_v63 = vpop.f32.mrf.mxu0 }
 0x10d   : > { %4095 = vpow2.f32 %v3694_v51  ;;  %v3924_v0 = vpop.f32.mrf.mxu1 }
 0x10e   : > { %4097 = vrcp.f32 %v1555_v61  ;;  %v2218_v3 = vpop.f32.mrf.mxu0 }
 0x10f   : > { %4099 = vrcp.f32 %v1662_v62  ;;  %v2325_v4 = vpop.f32.mrf.mxu1  ;;  %v4755_v5 = vadd.f32 %v4670_v10, %v2218_v3 }
 0x110   : > { %v4758_v52 = vadd.f32 %v4675_v11, %v2325_v4  ;;  %v4084_v48 = vpop.eup %4083  ;;  %v3931_v14 = vpop.f32.mrf.mxu0  ;;  %4101 = vpow2.f32 %v3664_v2 }
 0x111   : > { %v3939_v17 = vpop.f32.mrf.mxu1  ;;  %v4086_v19 = vpop.eup %4085  ;;  %v1779_v18 = vadd.f32 1.0, %v4084_v48  ;;  %v3704_v20 = vmul.f32 -1.442695, %v4755_v5 }
 0x112   : > { %v1886_v23 = vadd.f32 1.0, %v4086_v19  ;;  %v3708_v24 = vmul.f32 -1.442695, %v4758_v52  ;;  %v2221_v30 = vpop.f32.mrf.mxu0 }
 0x113   : > { %v2328_v35 = vpop.f32.mrf.mxu1  ;;  %v4088_v37 = vpop.eup %4087  ;;  %4103 = vrcp.f32 %v1779_v18 }
 0x114   : > { %v1441_v38 = vmul.f32 %v4088_v37, %v4695_v54  ;;  %4105 = vrcp.f32 %v1886_v23  ;;  %v3932_v51 = vpop.f32.mrf.mxu0  ;;  %v4090_v55 = vpop.eup %4089 }
 0x115   : > { %v3940_v53 = vpop.f32.mrf.mxu1  ;;  %4107 = vpow2.f32 %v3704_v20  ;;  %v4092_v61 = vpop.eup %4091  ;;  %v1110_v17 = vmul.f32 %v4090_v55, %v4686_v39 }
 0x116   : > { %4109 = vpow2.f32 %v3708_v24  ;;  %v2442_v58 = vpop.f32.mrf.mxu0  ;;  %v4764_v60 = vmul.f32 %v1441_v38, %v4727_v57  ;;  %v4781_v39 = vmul.f32 %v4092_v61, %v4689_v50 }
 0x117   : > { %v2549_v59 = vpop.f32.mrf.mxu1  ;;  %v4767_v62 = vadd.f32 %v4670_v10, %v2442_v58  ;;  %v1116_v51 = vmul.f32 %v1110_v17, %v4723_v49 }
 0x118   : > { %v4770_v63 = vadd.f32 %v4675_v11, %v2549_v59  ;;  %v3947_v2 = vpop.f32.mrf.mxu0  ;;  %v1223_v50 = vmul.f32 %v4781_v39, %v4723_v49 }
 0x119   : > { %v4094_v0 = vpop.eup %4093  ;;  %v3955_v54 = vpop.f32.mrf.mxu1  ;;  %v3714_v48 = vmul.f32 -1.442695, %v4767_v62 }
 0x11a   : > { %v4096_v3 = vpop.eup %4095  ;;  %v2110_v4 = vadd.f32 1.0, %v4094_v0  ;;  %v3718_v18 = vmul.f32 -1.442695, %v4770_v63  ;;  %v2445_v20 = vpop.f32.mrf.mxu0 }
 0x11b   : > { %v4098_v14 = vpop.eup %4097  ;;  %v2003_v19 = vadd.f32 1.0, %v4096_v3  ;;  %v2552_v23 = vpop.f32.mrf.mxu1 }
 0x11c   : > { %v4100_v10 = vpop.eup %4099  ;;  %v1558_v24 = vmul.f32 %v4098_v14, %v4700_v6  ;;  %4111 = vrcp.f32 %v2110_v4  ;;  %v3948_v35 = vpop.f32.mrf.mxu0  ;;  %v1111_v14 = vmul.f32 %v1110_v17, %v4715_v42 }
 0x11d   : > { %v1665_v11 = vmul.f32 %v4100_v10, %v4703_v13  ;;  %4113 = vrcp.f32 %v2003_v19  ;;  %v3956_v30 = vpop.f32.mrf.mxu1  ;;  %v4102_v6 = vpop.eup %4101 }
 0x11e   : > { %4115 = vpow2.f32 %v3714_v48  ;;  %v4778_v37 = vmul.f32 %v1558_v24, %v4715_v42  ;;  %v1331_v3 = vadd.f32 1.0, %v4102_v6  ;;  %v1564_v10 = vmul.f32 %v1558_v24, %v4723_v49 }
 0x11f   : > { %4117 = vpow2.f32 %v3718_v18  ;;  %v4785_v53 = vmul.f32 %v1665_v11, %v4727_v57  ;;  %v1112_v6 = vsel %vm801_vm1, %v1111_v14, 0.0 }
 0x120   : > { %v4104_v55 = vpop.eup %4103  ;;  %1118 = vrot.lane.b32.xlu0 %v1116_v51, %s4210_s27 }
 0x121   : > { %v4106_v13 = vpop.eup %4105  ;;  %v1782_v58 = vmul.f32 %v4104_v55, %v4718_v44  ;;  %v1447_v44 = vmul.f32 %v1441_v38, %v4723_v49 }
 0x122   : > { %v4108_v59 = vpop.eup %4107  ;;  %v1889_v0 = vmul.f32 %v4106_v13, %v4721_v45 }
 0x123   : > { %v4110_v61 = vpop.eup %4109  ;;  %v2227_v54 = vadd.f32 1.0, %v4108_v59  ;;  %v4793_v2 = vmul.f32 %v1782_v58, %v4715_v42  ;;  %v1788_v24 = vmul.f32 %v1782_v58, %v4723_v49 }
 0x124   : > { %v2334_v4 = vadd.f32 1.0, %v4110_v61  ;;  %1225 = vrot.lane.b32.xlu0 %v1223_v50, %s4210_s27  ;;  %v4797_v48 = vmul.f32 %v1889_v0, %v4727_v57 }
 0x125   : > { %4119 = vrcp.f32 %v2227_v54 }
 0x126   : > { %4121 = vrcp.f32 %v2334_v4 }
 0x127   : > { %4123 = vrcp.f32 %v1331_v3 }
 0x128   : > { %1449 = vrot.lane.b32.xlu0 %v1447_v44, %s4210_s27 }
 0x129   : > { %v4112_v45 = vpop.eup %4111 }
 0x12a   : > { %v4114_v19 = vpop.eup %4113  ;;  %v2113_v18 = vmul.f32 %v4112_v45, %v4739_v27  ;;  %v1671_v27 = vmul.f32 %v1665_v11, %v4723_v49 }
 0x12b   : > { %v4116_v20 = vpop.eup %4115  ;;  %v2006_v23 = vmul.f32 %v4114_v19, %v4742_v29 }
 0x12c   : > { %v4118_v30 = vpop.eup %4117  ;;  %v2451_v35 = vadd.f32 1.0, %v4116_v20  ;;  %v4806_v51 = vmul.f32 %v2113_v18, %v4727_v57  ;;  %1566 = vrot.lane.b32.xlu0 %v1564_v10, %s4210_s27  ;;  %v1895_v20 = vmul.f32 %v1889_v0, %v4723_v49 }
 0x12d   : > { %v2558_v38 = vadd.f32 1.0, %v4118_v30  ;;  %v2007_v17 = vmul.f32 %v2006_v23, %v4715_v42  ;;  %1113 = vadd.xlane.f32.xlu1 %v1112_v6  ;;  %v2012_v54 = vmul.f32 %v2006_v23, %v4723_v49  ;;  %v1218_v23 = vmul.f32 %v4781_v39, %v4727_v57 }
 0x12e   : > { %4125 = vrcp.f32 %v2451_v35  ;;  %v4211_v35 = vmov 0  }
 0x12f   : > { %4127 = vrcp.f32 %v2558_v38  ;;  %v1219_v10 = vsel %vm801_vm1, %v1218_v23, 0.0  ;;  %4019 = vset.pattern.permute.xlu0 %v4211_v35  ;;  %4020 = vset.pattern.permute.xlu1 %v4211_v35  ;;  %v1784_v38 = vsel %vm801_vm1, %v4793_v2, 0.0 }
 0x130   : > { %1673 = vrot.lane.b32.xlu0 %v1671_v27, %s4210_s27 }
 0x132   : > { %v4120_v29 = vpop.eup %4119 }
 0x133   : > { %v4122_v55 = vpop.eup %4121  ;;  %v2230_v13 = vmul.f32 %v4120_v29, %v4755_v5 }
 0x134   : > { %v2337_v59 = vmul.f32 %v4122_v55, %v4758_v52  ;;  %1790 = vrot.lane.b32.xlu0 %v1788_v24, %s4210_s27  ;;  %v4124_v50 = vpop.eup %4123 }
 0x135   : > { %v2231_v61 = vmul.f32 %v2230_v13, %v4715_v42  ;;  %v1334_v11 = vmul.f32 %v4124_v50, %v4751_v56  ;;  %v2236_v4 = vmul.f32 %v2230_v13, %v4723_v49 }
 0x136   : > { %v4820_v3 = vmul.f32 %v2337_v59, %v4727_v57 }
 0x137   : > { %v1340_v45 = vmul.f32 %v1334_v11, %v4723_v49  ;;  %v1335_v30 = vmul.f32 %v1334_v11, %v4715_v42  ;;  %v2232_v39 = vsel %vm801_vm1, %v2231_v61, 0.0 }
 0x138   : > { %2014 = vrot.lane.b32.xlu0 %v2012_v54, %s4210_s27 }
 0x139   : > { %v1336_v0 = vsel %vm801_vm1, %v1335_v30, 0.0 }
 0x13b   : > { %v4126_v58 = vpop.eup %4125 }
 0x13c   : > { %v4128_v5 = vpop.eup %4127  ;;  %v2454_v52 = vmul.f32 %v4126_v58, %v4767_v62  ;;  %2238 = vrot.lane.b32.xlu0 %v2236_v4, %s4210_s27  ;;  %v2119_v62 = vmul.f32 %v2113_v18, %v4723_v49  ;;  %v1560_v18 = vsel %vm801_vm1, %v4778_v37, 0.0 }
 0x13d   : > { %v2561_v44 = vmul.f32 %v4128_v5, %v4770_v63  ;;  %v2343_v63 = vmul.f32 %v2337_v59, %v4723_v49 }
 0x13e   : > { %v2455_v14 = vmul.f32 %v2454_v52, %v4715_v42  ;;  %1342 = vrot.lane.b32.xlu1 %v1340_v45, %s4210_s27  ;;  %v2460_v56 = vmul.f32 %v2454_v52, %v4723_v49 }
 0x13f   : > { %v4833_v19 = vmul.f32 %v2561_v44, %v4727_v57  ;;  %v2008_v57 = vsel %vm801_vm1, %v2007_v17, 0.0  ;;  %v2567_v42 = vmul.f32 %v2561_v44, %v4723_v49 }
 0x140   : > { %2462 = vrot.lane.b32.xlu0 %v2460_v56, %s4210_s27  ;;  %v2456_v59 = vsel %vm801_vm1, %v2455_v14, 0.0 }
 0x142   : > { %1897 = vrot.lane.b32.xlu1 %v1895_v20, %s4210_s27 }
 0x146   : > { %2121 = vrot.lane.b32.xlu1 %v2119_v62, %s4210_s27 }
 0x14a   : > { %2345 = vrot.lane.b32.xlu1 %v2343_v63, %s4210_s27 }
 0x15f   : > { %1220 = vadd.xlane.f32.xlu0 %v1219_v10 }
 0x16e   : > { %1337 = vadd.xlane.f32.xlu1 %v1336_v0 }
 0x172   : > { %1561 = vadd.xlane.f32.xlu1 %v1560_v18 }
 0x176   : > { %1785 = vadd.xlane.f32.xlu1 %v1784_v38 }
 0x177   : > { %v876_v24 = vpop.permute.xlu1 %875 }
 0x178   : > { %v878_v50 = vsel %vm801_vm1, %v876_v24, 0.0  ;;  %v2339_v24 = vsel %vm801_vm1, %v4820_v3, 0.0 }
 0x17a   : > { %2009 = vadd.xlane.f32.xlu1 %v2008_v57 }
 0x17b   : > { %v1001_v13 = vpop.permute.xlu1 %1000 }
 0x17c   : > { %v1003_v54 = vsel %vm801_vm1, %v1001_v13, 0.0 }
 0x17e   : > { %2233 = vadd.xlane.f32.xlu1 %v2232_v39  ;;  %v1667_v39 = vsel %vm801_vm1, %v4785_v53, 0.0  ;;  %v773_v53 = vld [vmem:[%s5334_s29] sm:$0x7] }
 0x18f   : > { %2569 = vrot.lane.b32.xlu1 %v2567_v42, %s4210_s27  ;;  %v859_v6 = vpop.xlane.xlu0 %858  ;;  %v1443_v42 = vsel %vm801_vm1, %v4764_v60, 0.0 }
 0x193   : > { %v4855_v27 = vpop.xlane.xlu0 %991 }
 0x197   : > { %v1119_v29 = vpop.permute.xlu0 %1118 }
 0x198   : > { %v1121_v4 = vsel %vm801_vm1, %v1119_v29, 0.0  ;;  %v1891_v29 = vsel %vm801_vm1, %v4797_v48, 0.0  ;;  %v4891_v48 = vrot.slane %v773_v53, %v4711_v32 }
 0x19b   : > { %v1226_v37 = vpop.permute.xlu0 %1225 }
 0x19c   : > { %v1228_v52 = vsel %vm801_vm1, %v1226_v37, 0.0  ;;  %v2115_v37 = vsel %vm801_vm1, %v4806_v51, 0.0  ;;  %v997_v51 = vadd.f32 %v4891_v48, %v4855_v27 }
 0x19f   : > { %v1450_v55 = vpop.permute.xlu0 %1449 }
 0x1a0   : > { %v1452_v5 = vsel %vm801_vm1, %v1450_v55, 0.0  ;;  %v4887_v55 = vrot.slane %v773_v53, %v4708_v28 }
 0x1a2   : > { %v864_v60 = vadd.f32 %v4887_v55, %v859_v6 }
 0x1a3   : > { %v1567_v2 = vpop.permute.xlu0 %1566 }
 0x1a4   : > { %v1569_v45 = vsel %vm801_vm1, %v1567_v2, 0.0 }
 0x1a7   : > { %v1674_v61 = vpop.permute.xlu0 %1673 }
 0x1a8   : > { %v1676_v56 = vsel %vm801_vm1, %v1674_v61, 0.0 }
 0x1ab   : > { %v1791_v58 = vpop.permute.xlu0 %1790 }
 0x1ac   : > { %v1793_v20 = vsel %vm801_vm1, %v1791_v58, 0.0  ;;  %v4913_v58 = vrot.slane %v773_v53, %v4543_v43 }
 0x1af   : > { %v2015_v14 = vpop.permute.xlu0 %2014 }
 0x1b0   : > { %v2017_v10 = vsel %vm801_vm1, %v2015_v14, 0.0 }
 0x1b3   : > { %2457 = vadd.xlane.f32.xlu1 %v2456_v59  ;;  %v2239_v63 = vpop.permute.xlu0 %2238 }
 0x1b4   : > { %v2241_v0 = vsel %vm801_vm1, %v2239_v63, 0.0 }
 0x1b6   : > { %v1114_v17 = vpop.xlane.xlu1 %1113 }
 0x1b7   : > { %879 = vadd.xlane.f32.xlu1 %v878_v50  ;;  %v2463_v18 = vpop.permute.xlu0 %2462  ;;  %v1115_v3 = vadd.f32 %v1114_v17, %v4887_v55  ;;  %v2563_v17 = vsel %vm801_vm1, %v4833_v19, 0.0 }
 0x1b8   : > { %v2465_v57 = vsel %vm801_vm1, %v2463_v18, 0.0 }
 0x1ba   : > { %v1343_v49 = vpop.permute.xlu1 %1342 }
 0x1bb   : > { %1004 = vadd.xlane.f32.xlu1 %v1003_v54  ;;  %v1345_v11 = vsel %vm801_vm1, %v1343_v49, 0.0 }
 0x1bc   : > { %1346 = vadd.xlane.f32.xlu0 %v1345_v11 }
 0x1be   : > { %v1898_v44 = vpop.permute.xlu1 %1897 }
 0x1bf   : > { %1122 = vadd.xlane.f32.xlu1 %v1121_v4  ;;  %v1900_v23 = vsel %vm801_vm1, %v1898_v44, 0.0 }
 0x1c0   : > { %1453 = vadd.xlane.f32.xlu0 %v1452_v5 }
 0x1c2   : > { %v2122_v62 = vpop.permute.xlu1 %2121 }
 0x1c3   : > { %1229 = vadd.xlane.f32.xlu1 %v1228_v52  ;;  %v2124_v30 = vsel %vm801_vm1, %v2122_v62, 0.0 }
 0x1c4   : > { %1570 = vadd.xlane.f32.xlu0 %v1569_v45 }
 0x1c6   : > { %v2346_v35 = vpop.permute.xlu1 %2345 }
 0x1c7   : > { %1677 = vadd.xlane.f32.xlu1 %v1676_v56  ;;  %v2348_v38 = vsel %vm801_vm1, %v2346_v35, 0.0 }
 0x1c8   : > { %1794 = vadd.xlane.f32.xlu0 %v1793_v20 }
 0x1cb   : > { %1901 = vadd.xlane.f32.xlu1 %v1900_v23 }
 0x1cc   : > { %2018 = vadd.xlane.f32.xlu0 %v2017_v10 }
 0x1cf   : > { %2125 = vadd.xlane.f32.xlu1 %v2124_v30 }
 0x1d0   : > { %2242 = vadd.xlane.f32.xlu0 %v2241_v0 }
 0x1d3   : > { %2349 = vadd.xlane.f32.xlu1 %v2348_v38 }
 0x1d4   : > { %2466 = vadd.xlane.f32.xlu0 %v2465_v57 }
 0x1d7   : > { %1668 = vadd.xlane.f32.xlu1 %v1667_v39 }
 0x1d8   : > { %1444 = vadd.xlane.f32.xlu0 %v1443_v42 }
 0x1db   : > { %1892 = vadd.xlane.f32.xlu1 %v1891_v29 }
 0x1df   : > { %2116 = vadd.xlane.f32.xlu1 %v2115_v37 }
 0x1e3   : > { %2340 = vadd.xlane.f32.xlu1 %v2339_v24 }
 0x1e8   : > { %v1221_v13 = vpop.xlane.xlu0 %1220 }
 0x1e9   : > { %v1222_v59 = vadd.f32 %v1221_v13, %v4891_v48 }
 0x1ee   : > { %888 = vperm.xlu0 %4019, %v864_v60  }
 0x1f2   : > { %1009 = vperm.xlu0 %4019, %v997_v51  }
 0x1f6   : > { %1127 = vperm.xlu0 %4019, %v1115_v3  }
 0x1f7   : > { %v4896_v2 = vpop.xlane.xlu1 %1337 }
 0x1fa   : > { %1234 = vperm.xlu0 %4019, %v1222_v59  }
 0x1fb   : > { %v4899_v50 = vpop.xlane.xlu1 %1561 }
 0x1ff   : > { %v4901_v6 = vpop.xlane.xlu1 %1785 }
 0x203   : > { %v4903_v61 = vpop.xlane.xlu1 %2009 }
 0x207   : > { %v4905_v49 = vpop.xlane.xlu1 %2233 }
 0x20b   : > { %v2570_v54 = vpop.permute.xlu1 %2569 }
 0x20c   : > { %v2572_v27 = vsel %vm801_vm1, %v2570_v54, 0.0 }
 0x20d   : > { %2573 = vadd.xlane.f32.xlu1 %v2572_v27 }
 0x211   : > { %2564 = vadd.xlane.f32.xlu1 %v2563_v17 }
 0x23c   : > { %v4910_v11 = vpop.xlane.xlu1 %2457 }
 0x240   : > { %v880_v4 = vpop.xlane.xlu1 %879 }
 0x241   : > { %v885_v5 = vadd.f32 %v4913_v58, %v880_v4 }
 0x243   : > { %901 = vperm.xlu0 %4019, %v885_v5  }
 0x244   : > { %v1005_v52 = vpop.xlane.xlu1 %1004 }
 0x245   : > { %v1006_v44 = vadd.f32 %v1005_v52, %v4913_v58  ;;  %v1347_v45 = vpop.xlane.xlu0 %1346  ;;  %v1339_v52 = vadd.f32 %v4896_v2, %v4887_v55 }
 0x246   : > { %v1348_v56 = vadd.f32 %v1347_v45, %v4913_v58 }
 0x247   : > { %1022 = vperm.xlu0 %4019, %v1006_v44  }
 0x248   : > { %v1123_v14 = vpop.xlane.xlu1 %1122 }
 0x249   : > { %v1124_v19 = vadd.f32 %v1123_v14, %v4913_v58  ;;  %v1454_v20 = vpop.xlane.xlu0 %1453 }
 0x24a   : > { %v1455_v30 = vadd.f32 %v1454_v20, %v4913_v58  ;;  %v1787_v20 = vadd.f32 %v4901_v6, %v4887_v55 }
 0x24b   : > { %1364 = vperm.xlu0 %4019, %v1348_v56   ;;  %1140 = vperm.xlu1 %4020, %v1124_v19  }
 0x24c   : > { %v1230_v62 = vpop.xlane.xlu1 %1229 }
 0x24d   : > { %v1231_v63 = vadd.f32 %v1230_v62, %v4913_v58  ;;  %v1571_v23 = vpop.xlane.xlu0 %1570 }
 0x24e   : > { %v1572_v18 = vadd.f32 %v1571_v23, %v4913_v58 }
 0x24f   : > { %1247 = vperm.xlu1 %4020, %v1231_v63  }
 0x250   : > { %v1678_v10 = vpop.xlane.xlu1 %1677 }
 0x251   : > { %v1795_v35 = vpop.xlane.xlu0 %1794  ;;  %v1679_v42 = vadd.f32 %v1678_v10, %v4913_v58 }
 0x252   : > { %v1796_v53 = vadd.f32 %v1795_v35, %v4913_v58 }
 0x253   : > { %1471 = vperm.xlu1 %4020, %v1455_v30  }
 0x254   : > { %v1902_v0 = vpop.xlane.xlu1 %1901 }
 0x255   : > { %v1903_v38 = vadd.f32 %v1902_v0, %v4913_v58  ;;  %v2019_v57 = vpop.xlane.xlu0 %2018 }
 0x256   : > { %v2020_v3 = vadd.f32 %v2019_v57, %v4913_v58 }
 0x257   : > { %1588 = vperm.xlu1 %4020, %v1572_v18   ;;  %1919 = vperm.xlu0 %4019, %v1903_v38   ;;  %v2235_v18 = vadd.f32 %v4905_v49, %v4887_v55 }
 0x258   : > { %v2126_v39 = vpop.xlane.xlu1 %2125 }
 0x259   : > { %v2127_v29 = vadd.f32 %v2126_v39, %v4913_v58  ;;  %v2243_v37 = vpop.xlane.xlu0 %2242 }
 0x25a   : > { %v2244_v13 = vadd.f32 %v2243_v37, %v4913_v58 }
 0x25b   : > { %1695 = vperm.xlu1 %4020, %v1679_v42   ;;  %2143 = vperm.xlu0 %4019, %v2127_v29  }
 0x25c   : > { %v2350_v24 = vpop.xlane.xlu1 %2349 }
 0x25d   : > { %v2351_v60 = vadd.f32 %v2350_v24, %v4913_v58  ;;  %v2467_v51 = vpop.xlane.xlu0 %2466 }
 0x25e   : > { %v2468_v54 = vadd.f32 %v2467_v51, %v4913_v58 }
 0x25f   : > { %1812 = vperm.xlu1 %4020, %v1796_v53   ;;  %2367 = vperm.xlu0 %4019, %v2351_v60  }
 0x260   : > { %v4931_v4 = vpop.xlane.xlu1 %1668 }
 0x261   : > { %v1445_v59 = vpop.xlane.xlu0 %1444 }
 0x262   : > { %v1446_v51 = vadd.f32 %v1445_v59, %v4891_v48 }
 0x263   : > { %2036 = vperm.xlu1 %4020, %v2020_v3  }
 0x264   : > { %v1893_v10 = vpop.xlane.xlu1 %1892 }
 0x267   : > { %2260 = vperm.xlu1 %4020, %v2244_v13  }
 0x268   : > { %v2117_v53 = vpop.xlane.xlu1 %2116 }
 0x269   : > { %v889_v27 = vpop.permute.xlu0 %888 }
 0x26a   : > { %v891_v17 = vmul.f32 %v889_v27, %v4388_v7 }
 0x26b   : > { %2484 = vperm.xlu1 %4020, %v2468_v54  }
 0x26c   : > { %v892_v5 = vsel %vm801_vm1, %v891_v17, 0.0 }
 0x26d   : > { %v893_v44 = vrot.slane %v892_v5, 4  ;;  %v1010_v45 = vpop.permute.xlu0 %1009 }
 0x26e   : > { %v1012_v14 = vmul.f32 %v1010_v45, %v4391_v8  ;;  %v2341_v45 = vpop.xlane.xlu1 %2340 }
 0x26f   : > { %v894_v56 = vadd.f32 %v893_v44, %v892_v5  ;;  %1351 = vperm.xlu1 %4020, %v1339_v52   ;;  %v1894_v5 = vadd.f32 %v1893_v10, %v4891_v48  ;;  %v2342_v59 = vadd.f32 %v2341_v45, %v4891_v48  ;;  %v2011_v10 = vadd.f32 %v4903_v61, %v4887_v55 }
 0x270   : > { %v1013_v19 = vsel %vm801_vm1, %v1012_v14, 0.0 }
 0x271   : > { %v895_v62 = vrot.slane %v894_v56, 2  ;;  %v1014_v63 = vrot.slane %v1013_v19, 4  ;;  %v1128_v23 = vpop.permute.xlu0 %1127 }
 0x272   : > { %v1130_v30 = vmul.f32 %v4394_v9, %v1128_v23  ;;  %v1563_v23 = vadd.f32 %v4899_v50, %v4887_v55 }
 0x273   : > { %v896_v35 = vadd.f32 %v895_v62, %v894_v56  ;;  %v1015_v0 = vadd.f32 %v1014_v63, %v1013_v19  ;;  %1799 = vperm.xlu1 %4020, %v1787_v20  }
 0x274   : > { %v1131_v2 = vsel %vm801_vm1, %v1130_v30, 0.0  ;;  %v2459_v30 = vadd.f32 %v4910_v11, %v4887_v55  ;;  %v4054_v55 = vld [vmem:[%s5297_s10] sm:$0xff]   ;;  %v4055_v11 = vld [vmem:[%s5335_s4 + $0x8] sm:$0xff]  }
 0x275   : > { %v897_v38 = vrot.slane %v896_v35, 1  ;;  %v1016_v57 = vrot.slane %v1015_v0, 2  ;;  %v1132_v39 = vrot.slane %v1131_v2, 4  ;;  %v1235_v42 = vpop.permute.xlu0 %1234  ;;  %3966 = vmatpush3.bf16.msra.mxu1 %v4055_v11 }
 0x276   : > { %v1237_v6 = vmul.f32 %v4407_v12, %v1235_v42  ;;  %3967 = vmatprep.subr.bf16.mxu1 %v4207_v1 }
 0x277   : > { %v898_v29 = vadd.f32 %v897_v38, %v896_v35  ;;  %v1017_v37 = vadd.f32 %v1016_v57, %v1015_v0  ;;  %v1133_v24 = vadd.f32 %v1132_v39, %v1131_v2  ;;  %2247 = vperm.xlu1 %4020, %v2235_v18   ;;  %v1670_v35 = vadd.f32 %v4931_v4, %v4891_v48  ;;  %v4056_v4 = vld [vmem:[%s5335_s4] sm:$0xff]  }
 0x278   : > { %v1238_v60 = vsel %vm801_vm1, %v1237_v6, 0.0  ;;  %v2118_v0 = vadd.f32 %v2117_v53, %v4891_v48 }
 0x279   : > { %1034 = vst.msk [vmem:[#allocation2] sm:$0x1] %vm1033_vm2, %v898_v29  ;;  %v1018_v3 = vrot.slane %v1017_v37, 1  ;;  %v1134_v13 = vrot.slane %v1133_v24, 2  ;;  %v1239_v49 = vrot.slane %v1238_v60, 4  ;;  %3968 = vmatpush3.bf16.msra.mxu1 %v4056_v4 }
 0x27a   : > { %3981 = vmatprep.subr.bf16.mxu1 %v4207_v1 }
 0x27b   : > { %v1019_v54 = vadd.f32 %v1018_v3, %v1017_v37  ;;  %v1135_v27 = vadd.f32 %v1134_v13, %v1133_v24  ;;  %v1240_v17 = vadd.f32 %v1239_v49, %v1238_v60  ;;  %1458 = vperm.xlu1 %4020, %v1446_v51   ;;  %v4987_v60 = vld [vmem:[%s5298_s11] sm:$0xf] }
 0x27d   : > { %1035 = vst.msk [vmem:[#allocation3] sm:$0x1] %vm1033_vm2, %v1019_v54  ;;  %v1136_v52 = vrot.slane %v1135_v27, 1  ;;  %v1241_v44 = vrot.slane %v1240_v17, 2 }
 0x27f   : > { %v1137_v14 = vadd.f32 %v1136_v52, %v1135_v27  ;;  %v1242_v56 = vadd.f32 %v1241_v44, %v1240_v17  ;;  %1906 = vperm.xlu1 %4020, %v1894_v5  }
 0x281   : > { %1258 = vst.msk [vmem:[#allocation2 + $0x1] sm:$0x1] %vm1033_vm2, %v1137_v14  ;;  %v1243_v19 = vrot.slane %v1242_v56, 1 }
 0x283   : > { %v1244_v20 = vadd.f32 %v1243_v19, %v1242_v56  ;;  %2354 = vperm.xlu1 %4020, %v2342_v59  }
 0x285   : > { %1259 = vst.msk [vmem:[#allocation3 + $0x1] sm:$0x1] %vm1033_vm2, %v1244_v20 }
 0x296   : > { %v2574_v62 = vpop.xlane.xlu1 %2573 }
 0x297   : > { %v2575_v63 = vadd.f32 %v2574_v62, %v4913_v58  ;;  %v4053_v58 = vld [vmem:[%s5297_s10 + $0x8] sm:$0xff]  }
 0x298   : > { %3958 = vmatpush3.bf16.msra.mxu0 %v4053_v58 }
 0x299   : > { %2591 = vperm.xlu0 %4019, %v2575_v63   ;;  %3959 = vmatprep.subr.bf16.mxu0 %v4207_v1 }
 0x29a   : > { %v2565_v50 = vpop.xlane.xlu1 %2564 }
 0x29b   : > { %v2566_v61 = vadd.f32 %v2565_v50, %v4891_v48 }
 0x29c   : > { %3960 = vmatpush3.bf16.msra.mxu0 %v4054_v55 }
 0x29d   : > { %1575 = vperm.xlu0 %4019, %v1563_v23   ;;  %3973 = vmatprep.subr.bf16.mxu0 %v4207_v1 }
 0x2a1   : > { %2023 = vperm.xlu0 %4019, %v2011_v10  }
 0x2a5   : > { %2471 = vperm.xlu0 %4019, %v2459_v30  }
 0x2a9   : > { %1682 = vperm.xlu0 %4019, %v1670_v35  }
 0x2ad   : > { %2130 = vperm.xlu0 %4019, %v2118_v0  }
 0x2b1   : > { %2578 = vperm.xlu0 %4019, %v2566_v61  }
 0x2be   : > { %v902_v2 = vpop.permute.xlu0 %901 }
 0x2bf   : > { %v904_v48 = vmul.f32 %v902_v2, %v4388_v7  ;;  %v4990_v7 = vsub.s32 3, %v4514_v36 }
 0x2c1   : > { %v905_v18 = vsel %vm801_vm1, %v904_v48, 0.0  ;;  %v2872_v49 = vrot.slane %v4987_v60, %v4990_v7 }
 0x2c2   : > { %v906_v38 = vrot.slane %v905_v18, 4  ;;  %v1023_v57 = vpop.permute.xlu0 %1022 }
 0x2c3   : > { %v1025_v39 = vmul.f32 %v1023_v57, %v4391_v8  ;;  %2874 = vrot.lane.b32.xlu1 %v2872_v49, %s4209_s24 }
 0x2c4   : > { %v907_v42 = vadd.f32 %v906_v38, %v905_v18 }
 0x2c5   : > { %v1026_v6 = vsel %vm801_vm1, %v1025_v39, 0.0 }
 0x2c6   : > { %v908_v29 = vrot.slane %v907_v42, 2  ;;  %v1027_v37 = vrot.slane %v1026_v6, 4  ;;  %v1365_v24 = vpop.permute.xlu0 %1364  ;;  %v1141_v53 = vpop.permute.xlu1 %1140 }
 0x2c7   : > { %v1367_v51 = vmul.f32 %v4420_v15, %v1365_v24  ;;  %v1143_v3 = vmul.f32 %v4394_v9, %v1141_v53 }
 0x2c8   : > { %v909_v8 = vadd.f32 %v908_v29, %v907_v42  ;;  %v1028_v13 = vadd.f32 %v1027_v37, %v1026_v6 }
 0x2c9   : > { %v1368_v54 = vsel %vm801_vm1, %v1367_v51, 0.0  ;;  %v1144_v27 = vsel %vm801_vm1, %v1143_v3, 0.0 }
 0x2ca   : > { %v1029_v17 = vrot.slane %v1028_v13, 2  ;;  %v1369_v5 = vrot.slane %v1368_v54, 4  ;;  %v1145_v52 = vrot.slane %v1144_v27, 4  ;;  %v1248_v44 = vpop.permute.xlu1 %1247  ;;  %v910_v14 = vrot.slane %v909_v8, 1 }
 0x2cb   : > { %v1250_v45 = vmul.f32 %v4407_v12, %v1248_v44 }
 0x2cc   : > { %v1030_v56 = vadd.f32 %v1029_v17, %v1028_v13  ;;  %v1370_v9 = vadd.f32 %v1369_v5, %v1368_v54  ;;  %v1146_v59 = vadd.f32 %v1145_v52, %v1144_v27  ;;  %v911_v35 = vadd.f32 %v910_v14, %v909_v8 }
 0x2cd   : > { %v1251_v19 = vsel %vm801_vm1, %v1250_v45, 0.0 }
 0x2ce   : > { %v1031_v20 = vrot.slane %v1030_v56, 1  ;;  %v1147_v62 = vrot.slane %v1146_v59, 2  ;;  %v1252_v63 = vrot.slane %v1251_v19, 4  ;;  %v1472_v23 = vpop.permute.xlu1 %1471  ;;  %v1371_v10 = vrot.slane %v1370_v9, 2 }
 0x2cf   : > { %v1474_v30 = vmul.f32 %v4427_v16, %v1472_v23 }
 0x2d0   : > { %v1032_v58 = vadd.f32 %v1031_v20, %v1030_v56  ;;  %v1148_v0 = vadd.f32 %v1147_v62, %v1146_v59  ;;  %v1253_v50 = vadd.f32 %v1252_v63, %v1251_v19  ;;  %v1372_v2 = vadd.f32 %v1371_v10, %v1370_v9 }
 0x2d1   : > { %v1475_v55 = vsel %vm801_vm1, %v1474_v30, 0.0 }
 0x2d2   : > { %v1036_v12 = vadd.f32 %v1032_v58, %v911_v35  ;;  %v1254_v61 = vrot.slane %v1253_v50, 2  ;;  %v1920_v11 = vpop.permute.xlu0 %1919  ;;  %v1589_v4 = vpop.permute.xlu1 %1588  ;;  %v1476_v48 = vrot.slane %v1475_v55, 4  ;;  %v1149_v57 = vrot.slane %v1148_v0, 1 }
 0x2d3   : > { %v1922_v18 = vmul.f32 %v4475_v26, %v1920_v11  ;;  %v1591_v38 = vmul.f32 %v4448_v21, %v1589_v4  ;;  %v1373_v8 = vrot.slane %v1372_v2, 1 }
 0x2d4   : > { %1037 = vst.msk [vmem:[#allocation4] sm:$0x1] %vm1033_vm2, %v1036_v12  ;;  %v1255_v39 = vadd.f32 %v1254_v61, %v1253_v50  ;;  %v1477_v42 = vadd.f32 %v1476_v48, %v1475_v55  ;;  %v1150_v27 = vadd.f32 %v1149_v57, %v1148_v0 }
 0x2d5   : > { %v1923_v6 = vsel %vm801_vm1, %v1922_v18, 0.0  ;;  %v1592_v29 = vsel %vm801_vm1, %v1591_v38, 0.0  ;;  %v1374_v30 = vadd.f32 %v1373_v8, %v1372_v2 }
 0x2d6   : > { %v1256_v37 = vrot.slane %v1255_v39, 1  ;;  %v1924_v24 = vrot.slane %v1923_v6, 4  ;;  %v1593_v53 = vrot.slane %v1592_v29, 4  ;;  %v2144_v51 = vpop.permute.xlu0 %2143  ;;  %v1696_v3 = vpop.permute.xlu1 %1695  ;;  %v1478_v13 = vrot.slane %v1477_v42, 2 }
 0x2d7   : > { %v2146_v49 = vmul.f32 %v4504_v34, %v2144_v51  ;;  %v1698_v54 = vmul.f32 %v4451_v22, %v1696_v3 }
 0x2d8   : > { %v1257_v17 = vadd.f32 %v1256_v37, %v1255_v39  ;;  %v1925_v5 = vadd.f32 %v1924_v24, %v1923_v6  ;;  %v1594_v52 = vadd.f32 %v1593_v53, %v1592_v29  ;;  %v1479_v44 = vadd.f32 %v1478_v13, %v1477_v42 }
 0x2d9   : > { %v2147_v45 = vsel %vm801_vm1, %v2146_v49, 0.0  ;;  %v1699_v14 = vsel %vm801_vm1, %v1698_v54, 0.0 }
 0x2da   : > { %v1260_v56 = vadd.f32 %v1257_v17, %v1150_v27  ;;  %v1595_v9 = vrot.slane %v1594_v52, 2  ;;  %v2148_v59 = vrot.slane %v2147_v45, 4  ;;  %v2368_v19 = vpop.permute.xlu0 %2367  ;;  %v1813_v20 = vpop.permute.xlu1 %1812  ;;  %v1480_v62 = vrot.slane %v1479_v44, 1 }
 0x2db   : > { %v1700_v63 = vrot.slane %v1699_v14, 4  ;;  %v2370_v23 = vmul.f32 %v4531_v41, %v2368_v19  ;;  %v1815_v10 = vmul.f32 %v4472_v25, %v1813_v20  ;;  %v1926_v35 = vrot.slane %v1925_v5, 2 }
 0x2dc   : > { %1261 = vst.msk [vmem:[#allocation4 + $0x1] sm:$0x1] %vm1033_vm2, %v1260_v56  ;;  %v1596_v58 = vadd.f32 %v1595_v9, %v1594_v52  ;;  %v2149_v0 = vadd.f32 %v2148_v59, %v2147_v45  ;;  %v1481_v50 = vadd.f32 %v1480_v62, %v1479_v44 }
 0x2dd   : > { %v1701_v55 = vadd.f32 %v1700_v63, %v1699_v14  ;;  %v2371_v12 = vsel %vm801_vm1, %v2370_v23, 0.0  ;;  %v1816_v61 = vsel %vm801_vm1, %v1815_v10, 0.0  ;;  %v1927_v39 = vadd.f32 %v1926_v35, %v1925_v5 }
 0x2de   : > { %v2372_v11 = vrot.slane %v2371_v12, 4  ;;  %v2037_v4 = vpop.permute.xlu1 %2036  ;;  %v1484_v48 = vadd.f32 %v1481_v50, %v1374_v30  ;;  %v1817_v38 = vrot.slane %v1816_v61, 4  ;;  %v2150_v2 = vrot.slane %v2149_v0, 2 }
 0x2df   : > { %v1702_v18 = vrot.slane %v1701_v55, 2  ;;  %v2039_v57 = vmul.f32 %v4497_v33, %v2037_v4  ;;  %v1597_v6 = vrot.slane %v1596_v58, 1  ;;  %v1928_v49 = vrot.slane %v1927_v39, 1 }
 0x2e0   : > { %v2373_v42 = vadd.f32 %v2372_v11, %v2371_v12  ;;  %1485 = vst.msk [vmem:[#allocation4 + $0x2] sm:$0x1] %vm1033_vm2, %v1484_v48  ;;  %v1818_v37 = vadd.f32 %v1817_v38, %v1816_v61  ;;  %v2151_v54 = vadd.f32 %v2150_v2, %v2149_v0 }
 0x2e1   : > { %v1703_v29 = vadd.f32 %v1702_v18, %v1701_v55  ;;  %v2040_v24 = vsel %vm801_vm1, %v2039_v57, 0.0  ;;  %v1598_v5 = vadd.f32 %v1597_v6, %v1596_v58  ;;  %v1929_v10 = vadd.f32 %v1928_v49, %v1927_v39 }
 0x2e2   : > { %v2041_v53 = vrot.slane %v2040_v24, 4  ;;  %v2261_v51 = vpop.permute.xlu1 %2260  ;;  %v1819_v8 = vrot.slane %v1818_v37, 2  ;;  %v2374_v27 = vrot.slane %v2373_v42, 2  ;;  %v2152_v20 = vrot.slane %v2151_v54, 1 }
 0x2e3   : > { %v1704_v3 = vrot.slane %v1703_v29, 1  ;;  %v2263_v13 = vmul.f32 %v4528_v40, %v2261_v51 }
 0x2e4   : > { %v2042_v17 = vadd.f32 %v2041_v53, %v2040_v24  ;;  %v1820_v44 = vadd.f32 %v1819_v8, %v1818_v37  ;;  %v2375_v62 = vadd.f32 %v2374_v27, %v2373_v42  ;;  %v2153_v12 = vadd.f32 %v2152_v20, %v2151_v54 }
 0x2e5   : > { %v1705_v52 = vadd.f32 %v1704_v3, %v1703_v29  ;;  %v2264_v45 = vsel %vm801_vm1, %v2263_v13, 0.0 }
 0x2e6   : > { %v2043_v14 = vrot.slane %v2042_v17, 2  ;;  %v2265_v56 = vrot.slane %v2264_v45, 4  ;;  %v5022_v9 = vpop.permute.xlu1 %2484  ;;  %v1821_v19 = vrot.slane %v1820_v44, 1  ;;  %v2376_v61 = vrot.slane %v2375_v62, 1 }
 0x2e7   : > { %v1708_v59 = vadd.f32 %v1705_v52, %v1598_v5 }
 0x2e8   : > { %v2044_v63 = vadd.f32 %v2043_v14, %v2042_v17  ;;  %v2266_v23 = vadd.f32 %v2265_v56, %v2264_v45  ;;  %v1822_v30 = vadd.f32 %v1821_v19, %v1820_v44  ;;  %v2377_v42 = vadd.f32 %v2376_v61, %v2375_v62 }
 0x2e9   : > { %1709 = vst.msk [vmem:[#allocation4 + $0x3] sm:$0x1] %vm1033_vm2, %v1708_v59 }
 0x2ea   : > { %v2045_v35 = vrot.slane %v2044_v63, 1  ;;  %v2267_v58 = vrot.slane %v2266_v23, 2  ;;  %v1352_v0 = vpop.permute.xlu1 %1351  ;;  %v1932_v50 = vadd.f32 %v1929_v10, %v1822_v30 }
 0x2eb   : > { %v1354_v55 = vmul.f32 %v4420_v15, %v1352_v0 }
 0x2ec   : > { %v2046_v11 = vadd.f32 %v2045_v35, %v2044_v63  ;;  %v2268_v4 = vadd.f32 %v2267_v58, %v2266_v23  ;;  %1933 = vst.msk [vmem:[#allocation4 + $0x4] sm:$0x1] %vm1033_vm2, %v1932_v50 }
 0x2ed   : > { %v1355_v48 = vsel %vm801_vm1, %v1354_v55, 0.0 }
 0x2ee   : > { %v2156_v18 = vadd.f32 %v2153_v12, %v2046_v11  ;;  %v2269_v38 = vrot.slane %v2268_v4, 1  ;;  %v1356_v57 = vrot.slane %v1355_v48, 4  ;;  %v1800_v39 = vpop.permute.xlu1 %1799 }
 0x2ef   : > { %v1802_v2 = vmul.f32 %v4472_v25, %v1800_v39 }
 0x2f0   : > { %2157 = vst.msk [vmem:[#allocation4 + $0x5] sm:$0x1] %vm1033_vm2, %v2156_v18  ;;  %v2270_v6 = vadd.f32 %v2269_v38, %v2268_v4  ;;  %v1357_v29 = vadd.f32 %v1356_v57, %v1355_v48 }
 0x2f1   : > { %v1803_v15 = vsel %vm801_vm1, %v1802_v2, 0.0 }
 0x2f2   : > { %v2380_v37 = vadd.f32 %v2377_v42, %v2270_v6  ;;  %v1358_v24 = vrot.slane %v1357_v29, 2  ;;  %v1804_v53 = vrot.slane %v1803_v15, 4  ;;  %v2248_v51 = vpop.permute.xlu1 %2247 }
 0x2f3   : > { %v2250_v3 = vmul.f32 %v4528_v40, %v2248_v51 }
 0x2f4   : > { %2381 = vst.msk [vmem:[#allocation4 + $0x6] sm:$0x1] %vm1033_vm2, %v2380_v37  ;;  %v1359_v8 = vadd.f32 %v1358_v24, %v1357_v29  ;;  %v1805_v13 = vadd.f32 %v1804_v53, %v1803_v15 }
 0x2f5   : > { %v2251_v49 = vsel %vm801_vm1, %v2250_v3, 0.0 }
 0x2f6   : > { %v1360_v25 = vrot.slane %v1359_v8, 1  ;;  %v1806_v54 = vrot.slane %v1805_v13, 2  ;;  %v2252_v27 = vrot.slane %v2251_v49, 4  ;;  %v1459_v17 = vpop.permute.xlu1 %1458 }
 0x2f7   : > { %v1461_v5 = vmul.f32 %v4427_v16, %v1459_v17 }
 0x2f8   : > { %v1361_v52 = vadd.f32 %v1360_v25, %v1359_v8  ;;  %v1807_v44 = vadd.f32 %v1806_v54, %v1805_v13  ;;  %v2253_v45 = vadd.f32 %v2252_v27, %v2251_v49 }
 0x2f9   : > { %v1462_v14 = vsel %vm801_vm1, %v1461_v5, 0.0 }
 0x2fa   : > { %1482 = vst.msk [vmem:[#allocation2 + $0x2] sm:$0x1] %vm1033_vm2, %v1361_v52  ;;  %v1808_v40 = vrot.slane %v1807_v44, 1  ;;  %v2254_v56 = vrot.slane %v2253_v45, 2  ;;  %v1463_v59 = vrot.slane %v1462_v14, 4  ;;  %v1907_v19 = vpop.permute.xlu1 %1906 }
 0x2fb   : > { %v1909_v20 = vmul.f32 %v4475_v26, %v1907_v19 }
 0x2fc   : > { %v1809_v62 = vadd.f32 %v1808_v40, %v1807_v44  ;;  %v2255_v63 = vadd.f32 %v2254_v56, %v2253_v45  ;;  %v1464_v23 = vadd.f32 %v1463_v59, %v1462_v14 }
 0x2fd   : > { %v1910_v10 = vsel %vm801_vm1, %v1909_v20, 0.0 }
 0x2fe   : > { %1930 = vst.msk [vmem:[#allocation2 + $0x4] sm:$0x1] %vm1033_vm2, %v1809_v62  ;;  %v2256_v16 = vrot.slane %v2255_v63, 1  ;;  %v1465_v30 = vrot.slane %v1464_v23, 2  ;;  %v1911_v35 = vrot.slane %v1910_v10, 4  ;;  %v2355_v58 = vpop.permute.xlu1 %2354 }
 0x2ff   : > { %v2357_v0 = vmul.f32 %v4531_v41, %v2355_v58  ;;  %v2487_v41 = vmul.f32 %v4554_v46, %v5022_v9 }
 0x300   : > { %v2257_v50 = vadd.f32 %v2256_v16, %v2255_v63  ;;  %v1466_v55 = vadd.f32 %v1465_v30, %v1464_v23  ;;  %v1912_v12 = vadd.f32 %v1911_v35, %v1910_v10 }
 0x301   : > { %v2358_v61 = vsel %vm801_vm1, %v2357_v0, 0.0  ;;  %v2488_v29 = vsel %vm801_vm1, %v2487_v41, 0.0 }
 0x302   : > { %2378 = vst.msk [vmem:[#allocation2 + $0x6] sm:$0x1] %vm1033_vm2, %v2257_v50  ;;  %v1467_v26 = vrot.slane %v1466_v55, 1  ;;  %v1913_v11 = vrot.slane %v1912_v12, 2  ;;  %v2359_v4 = vrot.slane %v2358_v61, 4  ;;  %v2489_v37 = vrot.slane %v2488_v29, 4 }
 0x304   : > { %v1468_v48 = vadd.f32 %v1467_v26, %v1466_v55  ;;  %v1914_v18 = vadd.f32 %v1913_v11, %v1912_v12  ;;  %v2360_v38 = vadd.f32 %v2359_v4, %v2358_v61  ;;  %v2490_v24 = vadd.f32 %v2489_v37, %v2488_v29 }
 0x306   : > { %1483 = vst.msk [vmem:[#allocation3 + $0x2] sm:$0x1] %vm1033_vm2, %v1468_v48  ;;  %v1915_v57 = vrot.slane %v1914_v18, 1  ;;  %v2361_v39 = vrot.slane %v2360_v38, 2  ;;  %v2491_v3 = vrot.slane %v2490_v24, 2 }
 0x308   : > { %v1916_v2 = vadd.f32 %v1915_v57, %v1914_v18  ;;  %v2362_v42 = vadd.f32 %v2361_v39, %v2360_v38  ;;  %v2492_v25 = vadd.f32 %v2491_v3, %v2490_v24  ;;  %v4057_v24 = vld [vmem:[%s5296_s9 + $0x8] sm:$0xff]  }
 0x30a   : > { %1931 = vst.msk [vmem:[#allocation3 + $0x4] sm:$0x1] %vm1033_vm2, %v1916_v2  ;;  %v2363_v6 = vrot.slane %v2362_v42, 1  ;;  %v2493_v45 = vrot.slane %v2492_v25, 1 }
 0x30c   : > { %v2364_v15 = vadd.f32 %v2363_v6, %v2362_v42  ;;  %v2494_v63 = vadd.f32 %v2493_v45, %v2492_v25 }
 0x30e   : > { %2379 = vst.msk [vmem:[#allocation3 + $0x6] sm:$0x1] %vm1033_vm2, %v2364_v15 }
 0x314   : > { %v2592_v53 = vpop.permute.xlu0 %2591 }
 0x315   : > { %v2594_v51 = vmul.f32 %v4557_v47, %v2592_v53 }
 0x317   : > { %v2595_v8 = vsel %vm801_vm1, %v2594_v51, 0.0 }
 0x318   : > { %v2596_v13 = vrot.slane %v2595_v8, 4  ;;  %v1576_v9 = vpop.permute.xlu0 %1575 }
 0x319   : > { %v1578_v49 = vmul.f32 %v4448_v21, %v1576_v9 }
 0x31a   : > { %v2597_v54 = vadd.f32 %v2596_v13, %v2595_v8 }
 0x31b   : > { %v1579_v27 = vsel %vm801_vm1, %v1578_v49, 0.0 }
 0x31c   : > { %v2598_v17 = vrot.slane %v2597_v54, 2  ;;  %v1580_v5 = vrot.slane %v1579_v27, 4  ;;  %v2024_v52 = vpop.permute.xlu0 %2023 }
 0x31d   : > { %v2026_v44 = vmul.f32 %v4497_v33, %v2024_v52 }
 0x31e   : > { %v2599_v14 = vadd.f32 %v2598_v17, %v2597_v54  ;;  %v1581_v40 = vadd.f32 %v1580_v5, %v1579_v27 }
 0x31f   : > { %v2027_v56 = vsel %vm801_vm1, %v2026_v44, 0.0 }
 0x320   : > { %v2600_v59 = vrot.slane %v2599_v14, 1  ;;  %v1582_v19 = vrot.slane %v1581_v40, 2  ;;  %v2028_v20 = vrot.slane %v2027_v56, 4  ;;  %v2472_v62 = vpop.permute.xlu0 %2471 }
 0x321   : > { %v2474_v21 = vmul.f32 %v4554_v46, %v2472_v62 }
 0x322   : > { %v2601_v23 = vadd.f32 %v2600_v59, %v2599_v14  ;;  %v1583_v10 = vadd.f32 %v1582_v19, %v1581_v40  ;;  %v2029_v16 = vadd.f32 %v2028_v20, %v2027_v56  ;;  %v2847_v20 = vrot.slane %v4987_v60, %v4543_v43 }
 0x323   : > { %v2475_v30 = vsel %vm801_vm1, %v2474_v21, 0.0 }
 0x324   : > { %v2604_v35 = vadd.f32 %v2601_v23, %v2494_v63  ;;  %v1584_v58 = vrot.slane %v1583_v10, 1  ;;  %v2030_v33 = vrot.slane %v2029_v16, 2  ;;  %v2476_v0 = vrot.slane %v2475_v30, 4  ;;  %v1683_v50 = vpop.permute.xlu0 %1682 }
 0x325   : > { %v1685_v55 = vmul.f32 %v4451_v22, %v1683_v50 }
 0x326   : > { %2605 = vst.msk [vmem:[#allocation4 + $0x7] sm:$0x1] %vm1033_vm2, %v2604_v35  ;;  %v1585_v12 = vadd.f32 %v1584_v58, %v1583_v10  ;;  %v2031_v61 = vadd.f32 %v2030_v33, %v2029_v16  ;;  %v2477_v26 = vadd.f32 %v2476_v0, %v2475_v30  ;;  %v2689_v30 = vrot.slane %v4987_v60, %v4708_v28 }
 0x327   : > { %v1686_v46 = vsel %vm801_vm1, %v1685_v55, 0.0 }
 0x328   : > { %1706 = vst.msk [vmem:[#allocation2 + $0x3] sm:$0x1] %vm1033_vm2, %v1585_v12  ;;  %v2032_v11 = vrot.slane %v2031_v61, 1  ;;  %v2478_v4 = vrot.slane %v2477_v26, 2  ;;  %v1687_v48 = vrot.slane %v1686_v46, 4  ;;  %v2131_v18 = vpop.permute.xlu0 %2130 }
 0x329   : > { %v2133_v38 = vmul.f32 %v4504_v34, %v2131_v18 }
 0x32a   : > { %v2033_v57 = vadd.f32 %v2032_v11, %v2031_v61  ;;  %v2479_v39 = vadd.f32 %v2478_v4, %v2477_v26  ;;  %v1688_v41 = vadd.f32 %v1687_v48, %v1686_v46  ;;  %v2768_v26 = vrot.slane %v4987_v60, %v4711_v32 }
 0x32b   : > { %v2134_v22 = vsel %vm801_vm1, %v2133_v38, 0.0 }
 0x32c   : > { %2154 = vst.msk [vmem:[#allocation2 + $0x5] sm:$0x1] %vm1033_vm2, %v2033_v57  ;;  %v2480_v2 = vrot.slane %v2479_v39, 1  ;;  %v1689_v42 = vrot.slane %v1688_v41, 2  ;;  %v2135_v6 = vrot.slane %v2134_v22, 4  ;;  %v2579_v29 = vpop.permute.xlu0 %2578 }
 0x32d   : > { %v2581_v15 = vmul.f32 %v4557_v47, %v2579_v29  ;;  %v2610_v37 = vld [vmem:[#allocation4] sm:$0xff]  ;;  %v4058_v47 = vld [vmem:[%s5296_s9] sm:$0xff]  }
 0x32e   : > { %v2481_v53 = vadd.f32 %v2480_v2, %v2479_v39  ;;  %v1690_v34 = vadd.f32 %v1689_v42, %v1688_v41  ;;  %v2136_v51 = vadd.f32 %v2135_v6, %v2134_v22  ;;  %v2626_v3 = vpack.c.bf16 %v2610_v37, %v2610_v37  ;;  %v2614_v41 = vld [vmem:[%s5299_s12] sm:$0xf] }
 0x32f   : > { %v2582_v8 = vsel %vm801_vm1, %v2581_v15, 0.0  ;;  %v2859_v22 = vrot.slane %v2614_v41, %v4543_v43  ;;  %v2755_v37 = vrot.slane %v2614_v41, %v4708_v28 }
 0x330   : > { %2602 = vst.msk [vmem:[#allocation2 + $0x7] sm:$0x1] %vm1033_vm2, %v2481_v53  ;;  %v1691_v13 = vrot.slane %v1690_v34, 1  ;;  %v2137_v9 = vrot.slane %v2136_v51, 2  ;;  %v2583_v49 = vrot.slane %v2582_v8, 4  ;;  %3962 = vmatmul.mubr.msk.bf16.vlgmr.msra.gmra.mxu0 %vm801_vm1, %v2626_v3  ;;  %v2834_v3 = vrot.slane %v2614_v41, %v4711_v32 }
 0x331   : > { %3974 = vmatpush3.bf16.msra.mxu0 %v4057_v24  ;;  %3977 = vmatprep.mubr.msk.bf16.mxu0 %vm4208_vm0, %v4207_v1 }
 0x332   : > { %v1692_v25 = vadd.f32 %v1691_v13, %v1690_v34  ;;  %v2138_v54 = vadd.f32 %v2137_v9, %v2136_v51  ;;  %v2584_v27 = vadd.f32 %v2583_v49, %v2582_v8  ;;  %3975 = vmatprep.subr.bf16.mxu0 %v4207_v1 }
 0x334   : > { %1707 = vst.msk [vmem:[#allocation3 + $0x3] sm:$0x1] %vm1033_vm2, %v1692_v25  ;;  %v2139_v17 = vrot.slane %v2138_v54, 1  ;;  %v2585_v5 = vrot.slane %v2584_v27, 2  ;;  %v2888_v25 = vrot.slane %v2614_v41, %v4990_v7  ;;  %v4064_v41 = vld [vmem:[%s5301_s14 + $0x20] sm:$0xff]  }
 0x335   : > { %3976 = vmatpush3.bf16.msra.mxu0 %v4058_v47  ;;  %v4059_v47 = vld [vmem:[%s5301_s14 + $0x8] sm:$0xff]  }
 0x336   : > { %v2140_v52 = vadd.f32 %v2139_v17, %v2138_v54  ;;  %v2586_v44 = vadd.f32 %v2585_v5, %v2584_v27  ;;  %3989 = vmatprep.subr.bf16.mxu0 %v4207_v1  ;;  %v2875_v54 = vpop.permute.xlu1 %2874 }
 0x337   : > { %v2608_v45 = vld [vmem:[#allocation2] sm:$0xff] }
 0x338   : > { %2155 = vst.msk [vmem:[#allocation3 + $0x5] sm:$0x1] %vm1033_vm2, %v2140_v52  ;;  %v2587_v14 = vrot.slane %v2586_v44, 1  ;;  %v2616_v40 = vpack.c.bf16 %v2608_v45, %v2608_v45 }
 0x33a   : > { %v2588_v56 = vadd.f32 %v2587_v14, %v2586_v44  ;;  %3970 = vmatmul.mubr.msk.bf16.vlgmr.msra.gmra.mxu1 %vm801_vm1, %v2616_v40  ;;  %v2615_v44 = vld [vmem:[%s5300_s13] sm:$0xf] }
 0x33b   : > { %3985 = vmatprep.mubr.msk.bf16.mxu1 %vm4208_vm0, %v4207_v1  ;;  %3982 = vmatpush3.bf16.msra.mxu1 %v4059_v47  ;;  %v2763_v45 = vrot.slane %v2615_v44, %v4708_v28  ;;  %v2867_v40 = vrot.slane %v2615_v44, %v4543_v43  ;;  %v2931_v47 = vld [vmem:[%s5303_s16] sm:$0x7] }
 0x33c   : > { %2603 = vst.msk [vmem:[#allocation3 + $0x7] sm:$0x1] %vm1033_vm2, %v2588_v56  ;;  %3983 = vmatprep.subr.bf16.mxu1 %v4207_v1 }
 0x343   : > { %v2609_v59 = vld [vmem:[#allocation3] sm:$0xff] }
 0x344   : > { %v2621_v19 = vpack.c.bf16 %v2609_v59, %v2609_v59  ;;  %v4060_v59 = vld [vmem:[%s5301_s14] sm:$0xff]  }
 0x345   : > { %3984 = vmatpush3.bf16.msra.mxu1 %v4060_v59 }
 0x346   : > { %3978 = vmatmul.mubr.msk.bf16.vlgmr.msra.gmra.mxu0 %vm801_vm1, %v2621_v19  ;;  %3997 = vmatprep.subr.bf16.mxu1 %v4207_v1 }
 0x347   : > { %3993 = vmatprep.mubr.msk.bf16.mxu0 %vm4208_vm0, %v4207_v1 }
 0x3f0   : > { %v2680_v62 = vpop.f32.mrf.mxu0 }
 0x3f1   : > { %v2848_v21 = vadd.f32 %v2847_v20, %v2680_v62  ;;  %v2877_v27 = vadd.f32 %v2875_v54, %v2680_v62  ;;  %v4061_v62 = vld [vmem:[%s5301_s14 + $0x18] sm:$0xff]   ;;  %v3007_v54 = vrot.slane %v2931_v47, %v4708_v28 }
 0x3f2   : > { %v3963_v63 = vpop.f32.mrf.mxu0  ;;  %3990 = vmatpush3.bf16.msra.mxu0 %v4061_v62  ;;  %v2932_v62 = vld [vmem:[%s5304_s17] sm:$0x7] }
 0x3f3   : > { %v3730_v23 = vmul.f32 -1.442695, %v2848_v21  ;;  %v3731_v17 = vmul.f32 -1.442695, %v2877_v27  ;;  %3991 = vmatprep.subr.bf16.mxu0 %v4207_v1 }
 0x3f4   : > { %v2683_v10 = vpop.f32.mrf.mxu0 }
 0x3f5   : > { %4129 = vpow2.f32 %v3730_v23 }
 0x3f6   : > { %v3964_v16 = vpop.f32.mrf.mxu0 }
 0x3f7   : > { %v4062_v16 = vld [vmem:[%s5301_s14 + $0x10] sm:$0xff]  }
 0x3f8   : > { %3992 = vmatpush3.bf16.msra.mxu0 %v4062_v16 }
 0x3fa   : > { %v2739_v35 = vpop.f32.mrf.mxu1 }
 0x3fb   : > { %v2740_v58 = vadd.f32 %v2739_v35, %v2689_v30 }
 0x3fc   : > { %v3971_v33 = vpop.f32.mrf.mxu1 }
 0x3fd   : > { %v3725_v0 = vmul.f32 -1.442695, %v2740_v58  ;;  %v5126_v33 = vld [vmem:[#allocation5] sm:$0xff] }
 0x3fe   : > { %v2742_v50 = vpop.f32.mrf.mxu1 }
 0x3ff   : > { %4131 = vpow2.f32 %v3725_v0 }
 0x400   : > { %v3972_v55 = vpop.f32.mrf.mxu1 }
 0x402   : > { %v4130_v12 = vpop.eup %4129 }
 0x403   : > { %v2852_v61 = vadd.f32 1.0, %v4130_v12 }
 0x405   : > { %4133 = vrcp.f32 %v2852_v61 }
 0x406   : > { %v2818_v46 = vpop.f32.mrf.mxu0 }
 0x407   : > { %v2819_v11 = vadd.f32 %v2818_v46, %v2768_v26  ;;  %v2612_v46 = vld [vmem:[#allocation6] sm:$0xff] }
 0x408   : > { %v3979_v4 = vpop.f32.mrf.mxu0 }
 0x409   : > { %v3729_v48 = vmul.f32 -1.442695, %v2819_v11 }
 0x40a   : > { %v2821_v18 = vpop.f32.mrf.mxu0 }
 0x40b   : > { %4135 = vpow2.f32 %v3729_v48  ;;  %v4063_v18 = vld [vmem:[%s5301_s14 + $0x28] sm:$0xff]  }
 0x40c   : > { %v4132_v38 = vpop.eup %4131  ;;  %v3980_v57 = vpop.f32.mrf.mxu0 }
 0x40d   : > { %v2748_v39 = vadd.f32 1.0, %v4132_v38  ;;  %v2904_v38 = vrot.slane %v2615_v44, %v4990_v7 }
 0x40f   : > { %4137 = vrcp.f32 %v2748_v39 }
 0x412   : > { %v4134_v2 = vpop.eup %4133 }
 0x413   : > { %v2855_v42 = vmul.f32 %v4134_v2, %v2848_v21  ;;  %v2842_v21 = vrot.slane %v2615_v44, %v4711_v32  ;;  %v3093_v44 = vrot.slane %v2931_v47, %v4711_v32 }
 0x415   : > { %v2860_v60 = vmul.f32 %v2859_v22, %v2855_v42  ;;  %v2930_v22 = vld [vmem:[%s5302_s15] sm:$0x7] }
 0x416   : > { %v2941_v2 = vrot.slane %v2930_v22, %v4708_v28 }
 0x417   : > { %v2861_v6 = vsel %vm801_vm1, %v2860_v60, 0.0 }
 0x418   : > { %v4136_v29 = vpop.eup %4135  ;;  %2862 = vadd.xlane.f32.xlu0 %v2861_v6 }
 0x419   : > { %v2827_v15 = vadd.f32 1.0, %v4136_v29 }
 0x41b   : > { %4139 = vrcp.f32 %v2827_v15 }
 0x41c   : > { %v4138_v24 = vpop.eup %4137  ;;  %4141 = vpow2.f32 %v3731_v17 }
 0x41d   : > { %v2751_v53 = vmul.f32 %v4138_v24, %v2740_v58 }
 0x41f   : > { %v2756_v34 = vmul.f32 %v2755_v37, %v2751_v53  ;;  %v3027_v37 = vrot.slane %v2930_v22, %v4711_v32 }
 0x421   : > { %v2757_v51 = vsel %vm801_vm1, %v2756_v34, 0.0 }
 0x422   : > { %2758 = vadd.xlane.f32.xlu1 %v2757_v51 }
 0x428   : > { %v4140_v8 = vpop.eup %4139 }
 0x429   : > { %v2830_v13 = vmul.f32 %v4140_v8, %v2819_v11  ;;  %v4142_v5 = vpop.eup %4141 }
 0x42a   : > { %v2881_v52 = vadd.f32 1.0, %v4142_v5 }
 0x42b   : > { %v2835_v9 = vmul.f32 %v2834_v3, %v2830_v13 }
 0x42c   : > { %4143 = vrcp.f32 %v2881_v52 }
 0x42d   : > { %v2836_v49 = vsel %vm801_vm1, %v2835_v9, 0.0 }
 0x42e   : > { %2837 = vadd.xlane.f32.xlu0 %v2836_v49 }
 0x439   : > { %v4144_v63 = vpop.eup %4143 }
 0x43a   : > { %v2884_v30 = vmul.f32 %v4144_v63, %v2877_v27 }
 0x444   : > { %2890 = vrot.lane.b32.xlu0 %v2888_v25, %s4209_s24 }
 0x4a1   : > { %v2863_v19 = vpop.xlane.xlu0 %2862 }
 0x4a2   : > { %v2868_v20 = vadd.f32 %v2867_v40, %v2863_v19 }
 0x4ab   : > { %v2759_v14 = vpop.xlane.xlu1 %2758 }
 0x4ac   : > { %v2764_v56 = vadd.f32 %v2763_v45, %v2759_v14 }
 0x4ae   : > { %2908 = vperm.xlu0 %4019, %v2764_v56  }
 0x4b2   : > { %2920 = vperm.xlu0 %4019, %v2868_v20  }
 0x4b7   : > { %v2838_v23 = vpop.xlane.xlu0 %2837 }
 0x4b8   : > { %v2843_v10 = vadd.f32 %v2842_v21, %v2838_v23  ;;  %v3101_v21 = vrot.slane %v2932_v62, %v4711_v32 }
 0x4ba   : > { %2914 = vperm.xlu0 %4019, %v2843_v10  }
 0x4bb   : > { %v2891_v35 = vpop.permute.xlu0 %2890 }
 0x4bc   : > { %v2893_v58 = vmul.f32 %v2891_v35, %v2884_v30 }
 0x4be   : > { %2895 = vrot.lane.b32.xlu1 %v2893_v58, %s4210_s27  ;;  %v3112_v58 = vrot.slane %v2930_v22, %v4543_v43  ;;  %v3178_v22 = vrot.slane %v2931_v47, %v4543_v43 }
 0x529   : > { %v2909_v0 = vpop.permute.xlu0 %2908 }
 0x52a   : > { %v5129_v50 = vmul.f32 %v2909_v0, %v5126_v33 }
 0x52c   : > { %v2933_v55 = vpack.c.bf16 %v5129_v50, %v5129_v50 }
 0x52d   : > { %v5136_v61 = vpop.permute.xlu0 %2920 }
 0x52e   : > { %3986 = vmatmul.mubr.msk.bf16.vlgmr.msra.gmra.mxu1 %vm801_vm1, %v2933_v55 }
 0x52f   : > { %4001 = vmatprep.mubr.msk.bf16.mxu1 %vm4208_vm0, %v4207_v1  ;;  %3998 = vmatpush3.bf16.msra.mxu1 %v4063_v18 }
 0x530   : > { %v2896_v12 = vpop.permute.xlu1 %2895  ;;  %3999 = vmatprep.subr.bf16.mxu1 %v4207_v1 }
 0x531   : > { %v2898_v26 = vsel %vm801_vm1, %v2896_v12, 0.0 }
 0x532   : > { %2899 = vadd.xlane.f32.xlu1 %v2898_v26 }
 0x533   : > { %4000 = vmatpush3.bf16.msra.mxu1 %v4064_v41 }
 0x535   : > { %v2915_v11 = vpop.permute.xlu0 %2914 }
 0x536   : > { %v5139_v4 = vmul.f32 %v2915_v11, %v2612_v46 }
 0x538   : > { %v3018_v48 = vpack.c.bf16 %v5139_v4, %v5139_v4 }
 0x53a   : > { %3994 = vmatmul.mubr.msk.bf16.vlgmr.msra.gmra.mxu0 %vm801_vm1, %v3018_v48  ;;  %v3016_v48 = vrot.slane %v2932_v62, %v4708_v28 }
 0x5bb   : > { %v2900_v57 = vpop.xlane.xlu1 %2899 }
 0x5bc   : > { %v2905_v39 = vadd.f32 %v2904_v38, %v2900_v57 }
 0x5be   : > { %2926 = vperm.xlu0 %4019, %v2905_v39  }
 0x5ee   : > { %v2991_v42 = vpop.f32.mrf.mxu1 }
 0x5ef   : > { %v2992_v60 = vadd.f32 %v2991_v42, %v2941_v2 }
 0x5f0   : > { %v3987_v6 = vpop.f32.mrf.mxu1 }
 0x5f1   : > { %v3735_v1 = vmul.f32 -1.442695, %v2992_v60 }
 0x5f2   : > { %v2994_v29 = vpop.f32.mrf.mxu1 }
 0x5f3   : > { %4145 = vpow2.f32 %v3735_v1 }
 0x5f4   : > { %v3988_v15 = vpop.f32.mrf.mxu1 }
 0x5fa   : > { %v3077_v24 = vpop.f32.mrf.mxu0 }
 0x5fb   : > { %v3078_v53 = vadd.f32 %v3077_v24, %v3027_v37  ;;  %v5183_v37 = vld [vmem:[%s5305_s18] sm:$0x3f] }
 0x5fc   : > { %v3995_v34 = vpop.f32.mrf.mxu0  ;;  %v3314_v24 = vrot.slane %v5183_v37, %v4990_v7  ;;  %v3219_v47 = vrot.slane %v5183_v37, %v4708_v28 }
 0x5fd   : > { %v3743_v51 = vmul.f32 -1.442695, %v3078_v53 }
 0x5fe   : > { %v3080_v3 = vpop.f32.mrf.mxu0 }
 0x5ff   : > { %4147 = vpow2.f32 %v3743_v51 }
 0x600   : > { %v4146_v8 = vpop.eup %4145  ;;  %v3996_v13 = vpop.f32.mrf.mxu0 }
 0x601   : > { %v3000_v9 = vadd.f32 1.0, %v4146_v8  ;;  %v3186_v8 = vrot.slane %v2932_v62, %v4543_v43 }
 0x603   : > { %4149 = vrcp.f32 %v3000_v9 }
 0x60c   : > { %v4148_v49 = vpop.eup %4147 }
 0x60d   : > { %v3086_v25 = vadd.f32 1.0, %v4148_v49 }
 0x60f   : > { %4151 = vrcp.f32 %v3086_v25  ;;  %v3249_v25 = vrot.slane %v5183_v37, %v4711_v32 }
 0x610   : > { %v4150_v27 = vpop.eup %4149 }
 0x611   : > { %v3003_v17 = vmul.f32 %v4150_v27, %v2992_v60 }
 0x613   : > { %v3008_v5 = vmul.f32 %v3007_v54, %v3003_v17 }
 0x615   : > { %v3010_v52 = vsel %vm3009_vm3, %v3008_v5, 0.0 }
 0x616   : > { %3011 = vadd.xlane.f32.xlu0 %v3010_v52 }
 0x61c   : > { %v4152_v45 = vpop.eup %4151 }
 0x61d   : > { %v3089_v14 = vmul.f32 %v4152_v45, %v3078_v53  ;;  %v5190_v53 = vld [vmem:[%s5306_s19] sm:$0x3f] }
 0x61e   : > { %v3319_v51 = vrot.slane %v5190_v53, %v4990_v7  ;;  %v3224_v27 = vrot.slane %v5190_v53, %v4708_v28  ;;  %v3254_v17 = vrot.slane %v5190_v53, %v4711_v32 }
 0x61f   : > { %v3094_v40 = vmul.f32 %v3093_v44, %v3089_v14 }
 0x621   : > { %v3095_v56 = vsel %vm3009_vm3, %v3094_v40, 0.0 }
 0x622   : > { %3096 = vadd.xlane.f32.xlu1 %v3095_v56 }
 0x639   : > { %v2927_v59 = vpop.permute.xlu0 %2926 }
 0x63a   : > { %v2929_v19 = vmul.f32 %v2927_v59, %v5126_v33 }
 0x63c   : > { %v3103_v20 = vpack.c.bf16 %v2929_v19, %v2929_v19  ;;  %v3284_v19 = vrot.slane %v5183_v37, %v4543_v43 }
 0x63e   : > { %4002 = vmatmul.mubr.msk.bf16.vlgmr.msra.gmra.mxu1 %vm801_vm1, %v3103_v20  ;;  %v3289_v20 = vrot.slane %v5190_v53, %v4543_v43 }
 0x69f   : > { %v3012_v18 = vpop.xlane.xlu0 %3011 }
 0x6a0   : > { %v5175_v38 = vadd.f32 %v3016_v48, %v3012_v18 }
 0x6a2   : > { %v3752_v39 = vmul.f32 -1.442695, %v5175_v38 }
 0x6ab   : > { %v3097_v63 = vpop.xlane.xlu1 %3096 }
 0x6ac   : > { %v5170_v23 = vadd.f32 %v3101_v21, %v3097_v63 }
 0x6ae   : > { %v3753_v10 = vmul.f32 -1.442695, %v5170_v23 }
 0x6b0   : > { %4153 = vpow2.f32 %v3753_v10 }
 0x6bd   : > { %v4154_v16 = vpop.eup %4153 }
 0x6be   : > { %v3197_v30 = vadd.f32 1.0, %v4154_v16 }
 0x6c0   : > { %4155 = vrcp.f32 %v3197_v30 }
 0x6cd   : > { %v4156_v35 = vpop.eup %4155 }
 0x6ce   : > { %3278 = vperm.xlu0 %4019, %v4156_v35  }
 0x6fe   : > { %v3162_v0 = vpop.f32.mrf.mxu1 }
 0x6ff   : > { %v3163_v55 = vadd.f32 %v3162_v0, %v3112_v58 }
 0x700   : > { %v4003_v12 = vpop.f32.mrf.mxu1 }
 0x701   : > { %v3751_v26 = vmul.f32 -1.442695, %v3163_v55 }
 0x702   : > { %v3165_v46 = vpop.f32.mrf.mxu1 }
 0x703   : > { %4157 = vpow2.f32 %v3751_v26 }
 0x704   : > { %v4004_v11 = vpop.f32.mrf.mxu1 }
 0x705   : > { %v3209_v11 = vld [vmem:[%s5307_s20] sm:$0x3f] }
 0x706   : > { %v3236_v18 = vrot.slane %v3209_v11, %v4708_v28 }
 0x710   : > { %v4158_v57 = vpop.eup %4157 }
 0x711   : > { %v3171_v41 = vadd.f32 1.0, %v4158_v57 }
 0x713   : > { %4159 = vrcp.f32 %v3171_v41 }
 0x714   : > { %4161 = vpow2.f32 %v3752_v39 }
 0x720   : > { %v4160_v2 = vpop.eup %4159 }
 0x721   : > { %v3174_v42 = vmul.f32 %v4160_v2, %v3163_v55  ;;  %v4162_v60 = vpop.eup %4161 }
 0x722   : > { %v3191_v1 = vadd.f32 1.0, %v4162_v60 }
 0x723   : > { %v3179_v6 = vmul.f32 %v3178_v22, %v3174_v42  ;;  %v3266_v22 = vrot.slane %v3209_v11, %v4711_v32 }
 0x724   : > { %4163 = vrcp.f32 %v3191_v1 }
 0x725   : > { %v3180_v29 = vsel %vm3009_vm3, %v3179_v6, 0.0 }
 0x726   : > { %3181 = vadd.xlane.f32.xlu1 %v3180_v29 }
 0x731   : > { %v4164_v15 = vpop.eup %4163 }
 0x737   : > { %3213 = vperm.xlu1 %4020, %v4164_v15  }
 0x749   : > { %v3279_v34 = vpop.permute.xlu0 %3278 }
 0x74a   : > { %v3315_v3 = vmul.f32 %v3314_v24, %v3279_v34  ;;  %v3285_v62 = vmul.f32 %v3284_v19, %v3279_v34  ;;  %v3331_v24 = vrot.slane %v3209_v11, %v4990_v7 }
 0x74c   : > { %v3320_v9 = vadd.f32 %v3319_v51, %v3315_v3  ;;  %v3290_v63 = vadd.f32 %v3289_v20, %v3285_v62 }
 0x74e   : > { %v3758_v52 = vmul.f32 -1.442695, %v3320_v9  ;;  %v3757_v30 = vmul.f32 -1.442695, %v3290_v63 }
 0x7af   : > { %v3182_v13 = vpop.xlane.xlu1 %3181 }
 0x7b0   : > { %v5195_v49 = vadd.f32 %v3186_v8, %v3182_v13 }
 0x7b2   : > { %v3754_v54 = vmul.f32 -1.442695, %v5195_v49 }
 0x7b3   : > { %v3214_v5 = vpop.permute.xlu1 %3213 }
 0x7b4   : > { %4165 = vpow2.f32 %v3754_v54  ;;  %v3220_v44 = vmul.f32 %v3219_v47, %v3214_v5  ;;  %v3250_v45 = vmul.f32 %v3249_v25, %v3214_v5  ;;  %v3301_v47 = vrot.slane %v3209_v11, %v4543_v43 }
 0x7b5   : > { %4167 = vpow2.f32 %v3758_v52  ;;  %v5229_v5 = vsub.s32 5, %v4514_v36 }
 0x7b6   : > { %v3225_v14 = vadd.f32 %v3224_v27, %v3220_v44  ;;  %v3255_v40 = vadd.f32 %v3254_v17, %v3250_v45  ;;  %v5226_v17 = vsub.s32 4, %v4514_v36 }
 0x7b7   : > { %v3379_v44 = vrot.slane %v5183_v37, %v5229_v5 }
 0x7b8   : > { %v3755_v56 = vmul.f32 -1.442695, %v3225_v14  ;;  %v3756_v59 = vmul.f32 -1.442695, %v3255_v40  ;;  %v3349_v52 = vrot.slane %v5183_v37, %v5226_v17  ;;  %v3354_v45 = vrot.slane %v5190_v53, %v5226_v17 }
 0x7b9   : > { %v3366_v37 = vrot.slane %v3209_v11, %v5226_v17 }
 0x7ba   : > { %4169 = vpow2.f32 %v3755_v56 }
 0x7bb   : > { %4171 = vpow2.f32 %v3756_v59 }
 0x7c1   : > { %v4166_v21 = vpop.eup %4165 }
 0x7c2   : > { %v3203_v10 = vadd.f32 1.0, %v4166_v21  ;;  %v4168_v16 = vpop.eup %4167 }
 0x7c3   : > { %v3324_v0 = vadd.f32 1.0, %v4168_v16 }
 0x7c4   : > { %4173 = vrcp.f32 %v3203_v10 }
 0x7c5   : > { %4175 = vpow2.f32 %v3757_v30 }
 0x7c7   : > { %v4170_v35 = vpop.eup %4169 }
 0x7c8   : > { %v4172_v58 = vpop.eup %4171  ;;  %v3229_v55 = vadd.f32 1.0, %v4170_v35 }
 0x7c9   : > { %v3259_v12 = vadd.f32 1.0, %v4172_v58  ;;  %v3396_v58 = vrot.slane %v3209_v11, %v5229_v5  ;;  %v3438_v11 = vsel %vm801_vm1, %v5129_v50, 0.0 }
 0x7ca   : > { %4177 = vrcp.f32 %v3229_v55 }
 0x7cb   : > { %4179 = vrcp.f32 %v3259_v12 }
 0x7cc   : > { %4181 = vrcp.f32 %v3324_v0 }
 0x7d1   : > { %v4174_v26 = vpop.eup %4173 }
 0x7d2   : > { %v3206_v46 = vsub.f32 1.0, %v4174_v26  ;;  %v4176_v48 = vpop.eup %4175 }
 0x7d3   : > { %v3294_v6 = vadd.f32 1.0, %v4176_v48 }
 0x7d4   : > { %3343 = vperm.xlu1 %4020, %v3206_v46  }
 0x7d5   : > { %4183 = vrcp.f32 %v3294_v6 }
 0x7d7   : > { %v4178_v57 = vpop.eup %4177 }
 0x7d8   : > { %v4180_v39 = vpop.eup %4179  ;;  %v3232_v41 = vmul.f32 %v4178_v57, %v3225_v14  ;;  %v3384_v14 = vrot.slane %v5190_v53, %v5229_v5 }
 0x7d9   : > { %v4182_v2 = vpop.eup %4181  ;;  %v3262_v42 = vmul.f32 %v4180_v39, %v3255_v40 }
 0x7da   : > { %v3237_v60 = vmul.f32 %v3236_v18, %v3232_v41  ;;  %v3327_v15 = vmul.f32 %v4182_v2, %v3320_v9  ;;  %v3406_v9 = vld [vmem:[%s5309_s22] sm:$0x1] }
 0x7db   : > { %v3267_v29 = vmul.f32 %v3266_v22, %v3262_v42  ;;  %v3407_v27 = vsel %vm1033_vm2, %v3406_v9, 0.0 }
 0x7dc   : > { %v3238_v1 = vsel %vm801_vm1, %v3237_v60, 0.0  ;;  %v3332_v51 = vmul.f32 %v3331_v24, %v3327_v15 }
 0x7dd   : > { %3239 = vadd.xlane.f32.xlu0 %v3238_v1  ;;  %v3268_v34 = vsel %vm801_vm1, %v3267_v29, 0.0 }
 0x7de   : > { %v3333_v3 = vsel %vm801_vm1, %v3332_v51, 0.0 }
 0x7e1   : > { %3269 = vadd.xlane.f32.xlu0 %v3268_v34 }
 0x7e2   : > { %v4184_v8 = vpop.eup %4183 }
 0x7e3   : > { %v3297_v13 = vmul.f32 %v4184_v8, %v3290_v63  ;;  %v3210_v8 = vld [vmem:[%s5308_s21] sm:$0x3f] }
 0x7e5   : > { %3334 = vadd.xlane.f32.xlu0 %v3333_v3  ;;  %v3302_v25 = vmul.f32 %v3301_v47, %v3297_v13  ;;  %v3244_v13 = vrot.slane %v3210_v8, %v4708_v28 }
 0x7e7   : > { %v3303_v54 = vsel %vm801_vm1, %v3302_v25, 0.0  ;;  %v3274_v25 = vrot.slane %v3210_v8, %v4711_v32 }
 0x7f8   : > { %3304 = vadd.xlane.f32.xlu1 %v3303_v54  ;;  %v3463_v54 = vsel %vm801_vm1, %v5139_v4, 0.0 }
 0x7fc   : > { %3408 = vadd.xlane.f32.xlu1 %v3407_v27 }
 0x84f   : > { %v3344_v40 = vpop.permute.xlu1 %3343 }
 0x850   : > { %v3350_v56 = vmul.f32 %v3349_v52, %v3344_v40  ;;  %v3380_v59 = vmul.f32 %v3379_v44, %v3344_v40 }
 0x852   : > { %v3355_v19 = vadd.f32 %v3354_v45, %v3350_v56  ;;  %v3385_v20 = vadd.f32 %v3384_v14, %v3380_v59 }
 0x854   : > { %v3759_v62 = vmul.f32 -1.442695, %v3355_v19  ;;  %v3760_v36 = vmul.f32 -1.442695, %v3385_v20 }
 0x856   : > { %4185 = vpow2.f32 %v3759_v62 }
 0x857   : > { %4187 = vpow2.f32 %v3760_v36 }
 0x863   : > { %v4186_v21 = vpop.eup %4185 }
 0x864   : > { %v4188_v63 = vpop.eup %4187  ;;  %v3359_v10 = vadd.f32 1.0, %v4186_v21 }
 0x865   : > { %v3389_v16 = vadd.f32 1.0, %v4188_v63  ;;  %v3374_v63 = vrot.slane %v3210_v8, %v5226_v17 }
 0x866   : > { %4189 = vrcp.f32 %v3359_v10  ;;  %v3240_v2 = vpop.xlane.xlu0 %3239 }
 0x867   : > { %4191 = vrcp.f32 %v3389_v16  ;;  %v3245_v47 = vadd.f32 %v3244_v13, %v3240_v2  ;;  %v3404_v16 = vrot.slane %v3210_v8, %v5229_v5 }
 0x86a   : > { %v3270_v42 = vpop.xlane.xlu0 %3269 }
 0x86e   : > { %v3335_v60 = vpop.xlane.xlu0 %3334 }
 0x873   : > { %v4190_v30 = vpop.eup %4189 }
 0x874   : > { %v4192_v35 = vpop.eup %4191  ;;  %v3362_v53 = vmul.f32 %v4190_v30, %v3355_v19 }
 0x875   : > { %v3392_v0 = vmul.f32 %v4192_v35, %v3385_v20 }
 0x876   : > { %v3367_v55 = vmul.f32 %v3366_v37, %v3362_v53  ;;  %v3339_v37 = vrot.slane %v3210_v8, %v4990_v7 }
 0x877   : > { %v3397_v26 = vmul.f32 %v3396_v58, %v3392_v0 }
 0x878   : > { %v3368_v12 = vsel %vm801_vm1, %v3367_v55, 0.0  ;;  %v3340_v35 = vadd.f32 %v3339_v37, %v3335_v60 }
 0x879   : > { %3369 = vadd.xlane.f32.xlu0 %v3368_v12  ;;  %v3398_v46 = vsel %vm801_vm1, %v3397_v26, 0.0 }
 0x87d   : > { %3399 = vadd.xlane.f32.xlu0 %v3398_v46 }
 0x881   : > { %v3305_v48 = vpop.xlane.xlu1 %3304 }
 0x885   : > { %v3409_v18 = vpop.xlane.xlu1 %3408 }
 0x886   : > { %v3410_v57 = vmul.f32 0.03125, %v3409_v18 }
 0x888   : > { %v5243_v39 = vsub.f32 %v3406_v9, %v3410_v57  ;;  %v3275_v9 = vadd.f32 %v3274_v25, %v3270_v42 }
 0x88a   : > { %v3412_v41 = vmul.f32 %v5243_v39, %v5243_v39 }
 0x88c   : > { %v3413_v22 = vsel %vm1033_vm2, %v3412_v41, 0.0 }
 0x88d   : > { %3414 = vadd.xlane.f32.xlu0 %v3413_v22 }
 0x891   : > { %3439 = vadd.xlane.f32.xlu0 %v3438_v11 }
 0x902   : > { %v3370_v6 = vpop.xlane.xlu0 %3369 }
 0x903   : > { %v3375_v10 = vadd.f32 %v3374_v63, %v3370_v6 }
 0x906   : > { %v3400_v1 = vpop.xlane.xlu0 %3399 }
 0x907   : > { %v3405_v30 = vadd.f32 %v3404_v16, %v3400_v1 }
 0x916   : > { %v3415_v29 = vpop.xlane.xlu0 %3414 }
 0x91a   : > { %v3440_v15 = vpop.xlane.xlu0 %3439 }
 0x91b   : > { %v3441_v24 = vmul.f32 0.03125, %v3440_v15 }
 0x91d   : > { %v3442_v34 = vsub.f32 %v5129_v50, %v3441_v24  ;;  %v2923_v50 = vmul.f32 %v5136_v61, %v5126_v33  ;;  %v3309_v33 = vrot.slane %v3210_v8, %v4543_v43 }
 0x91f   : > { %v3443_v51 = vmul.f32 %v3442_v34, %v3442_v34  ;;  %v3310_v61 = vadd.f32 %v3309_v33, %v3305_v48 }
 0x921   : > { %v3444_v3 = vsel %vm801_vm1, %v3443_v51, 0.0 }
 0x922   : > { %3445 = vadd.xlane.f32.xlu1 %v3444_v3 }
 0x933   : > { %3453 = vperm.xlu1 %4020, %v3245_v47  }
 0x937   : > { %3459 = vperm.xlu1 %4020, %v3275_v9  }
 0x95b   : > { %3464 = vadd.xlane.f32.xlu1 %v3463_v54 }
 0x96c   : > { %3493 = vrot.lane.b32.xlu1 %v2923_v50, %s4212_s1 }
 0x9ab   : > { %v3446_v27 = vpop.xlane.xlu1 %3445 }
 0x9ac   : > { %v3447_v52 = vadd.f32 2.3e-08, %v3446_v27 }
 0x9ae   : > { %v3448_v44 = vmul.f32 0.03125, %v3447_v52 }
 0x9af   : > { %v3454_v45 = vpop.permute.xlu1 %3453 }
 0x9b0   : > { %4193 = vrsqrt.f32 %v3448_v44 }
 0x9b3   : > { %v3460_v56 = vpop.permute.xlu1 %3459 }
 0x9bd   : > { %v4194_v14 = vpop.eup %4193 }
 0x9be   : > { %v3450_v40 = vmul.f32 %v4194_v14, %v3442_v34 }
 0x9c0   : > { %v3456_v32 = vadd.f32 %v3454_v45, %v3450_v40 }
 0x9c2   : > { %v3462_v59 = vmul.f32 %v3460_v56, %v3456_v32 }
 0x9e4   : > { %v3465_v19 = vpop.xlane.xlu1 %3464 }
 0x9e5   : > { %v3466_v20 = vmul.f32 0.03125, %v3465_v19 }
 0x9e7   : > { %v3467_v62 = vsub.f32 %v5139_v4, %v3466_v20  ;;  %v3416_v4 = vadd.f32 2.3e-08, %v3415_v29 }
 0x9e9   : > { %v3468_v36 = vmul.f32 %v3467_v62, %v3467_v62  ;;  %v3417_v43 = vmul.f32 0.03125, %v3416_v4 }
 0x9eb   : > { %v3469_v21 = vsel %vm801_vm1, %v3468_v36, 0.0  ;;  %4195 = vrsqrt.f32 %v3417_v43 }
 0x9ec   : > { %3470 = vadd.xlane.f32.xlu0 %v3469_v21 }
 0x9f8   : > { %v4196_v55 = vpop.eup %4195 }
 0x9f9   : > { %v3419_v46 = vmul.f32 %v4196_v55, %v5243_v39 }
 0xa02   : > { %3478 = vperm.xlu0 %4019, %v3310_v61  }
 0xa06   : > { %3428 = vperm.xlu0 %4019, %v3375_v10  }
 0xa0a   : > { %3434 = vperm.xlu0 %4019, %v3405_v30  }
 0xa0e   : > { %3484 = vperm.xlu0 %4019, %v3340_v35  }
 0xa12   : > { %3511 = vperm.xlu0 %4019, %v5175_v38  }
 0xa16   : > { %3518 = vperm.xlu0 %4019, %v5170_v23   ;;  %v3424_v23 = vrot.slane %v3419_v46, %v4708_v28  ;;  %v3494_v28 = vpop.permute.xlu1 %3493 }
 0xa75   : > { %v3471_v53 = vpop.xlane.xlu0 %3470 }
 0xa76   : > { %v3472_v58 = vadd.f32 2.3e-08, %v3471_v53 }
 0xa78   : > { %v3473_v17 = vmul.f32 0.03125, %v3472_v58 }
 0xa7a   : > { %4197 = vrsqrt.f32 %v3473_v17 }
 0xa7d   : > { %v3479_v0 = vpop.permute.xlu0 %3478 }
 0xa81   : > { %v3429_v5 = vpop.permute.xlu0 %3428 }
 0xa82   : > { %v3431_v57 = vadd.f32 %v3429_v5, %v3424_v23 }
 0xa85   : > { %v3435_v7 = vpop.permute.xlu0 %3434 }
 0xa86   : > { %v3437_v41 = vmul.f32 %v3435_v7, %v3431_v57 }
 0xa87   : > { %v4198_v12 = vpop.eup %4197 }
 0xa88   : > { %v3475_v26 = vmul.f32 %v4198_v12, %v3467_v62 }
 0xa89   : > { %v3485_v48 = vpop.permute.xlu0 %3484 }
 0xa8a   : > { %v3481_v38 = vadd.f32 %v3479_v0, %v3475_v26 }
 0xa8c   : > { %v3487_v18 = vmul.f32 %v3485_v48, %v3481_v38 }
 0xa8d   : > { %v3512_v22 = vpop.permute.xlu0 %3511 }
 0xa8e   : > { %3489 = vrot.lane.b32.xlu0 %v3487_v18, %s4209_s24  ;;  %s766_s24 = scalar_lea.vmem %s5310_s23, %s3637_s28 }
 0xa91   : > { %v3519_v11 = vpop.permute.xlu0 %3518 }
 0xa92   : > { %3497 = vrot.lane.b32.xlu0 %v3437_v41, %s4210_s27 }
 0xa96   : > { %3526 = vperm.xlu0 %4019, %v5195_v49   ;;  %v3507_v49 = vand.u32 127, %v852_v31 }
 0xa98   : > { %vm3515_vm6 = vcmp.eq.s32.totalorder %v3507_v49, 1  ;;  %vm3508_vm7 = vcmp.eq.s32.totalorder %v3507_v49, 0  ;;  %vm3523_vm8 = vcmp.eq.s32.totalorder %v3507_v49, 2 }
 0xa99   : > { %v3521_v1 = vsel %vm3515_vm6, %v3519_v11, 0.0  ;;  %v3514_v29 = vsel %vm3508_vm7, %v3512_v22, 0.0 }
 0xa9a   : > { %v3522_v15 = vadd.f32 %v3521_v1, %v3514_v29 }
 0xb00   : > { %v3490_v2 = vpop.permute.xlu0 %3489 }
 0xb01   : > { %v3500_v39 = vsel %vm801_vm1, %v3462_v59, %v3490_v2 }
 0xb02   : > { %v3502_v60 = vsel %vm3501_vm4, %v3500_v39, %v3494_v28 }
 0xb04   : > { %v3498_v42 = vpop.permute.xlu0 %3497 }
 0xb05   : > { %v3504_v6 = vsel %vm3503_vm5, %v3502_v60, %v3498_v42 }
 0xb06   : > { %3505 = vst [vmem:[%s766_s24] sm:$0xff] %v3504_v6 }
 0xb11   : > { %v3527_v24 = vpop.permute.xlu0 %3526 }
 0xb12   : > { %v3529_v34 = vsel %vm3523_vm8, %v3527_v24, 0.0 }
 0xb13   : > { %v3530_v51 = vadd.f32 %v3529_v34, %v3522_v15 }
 0xb15   : > { %3531 = vst [vmem:[%s770_s25] sm:$0xff] %v3530_v51 }
 0xb16 PF: > { %s5337_s5 = sld [smem:[#allocation7_spill]] }
 0xb1c   : > { %s35_s5 = sadd.s32 1, %s5337_s5  }
 0xb1d   : > { %p32_p5 = scmp.ge.s32.totalorder %s35_s5, 4  }
 0xb1f   :  { %34 = sbr.rel (!%p32_p5) target bundleno = 11 (0xb), region = 173 }

</bundles_post_ra>
